<compile_context>
chip_gen: v5e
topology: v5e:2x2
jax: 0.10.0
libtpu: 0.0.40
codegen_flags: <defaults>
</compile_context>

<pallas_src>
import math

import jax
import jax.numpy as jnp
from jax.experimental import pallas as pl
from jax.experimental.pallas import tpu as pltpu


_SUB_ROWS = 512      # rows per in-kernel compute sub-tile (keeps f32 h ~<=1 MiB)


def _round_up(x, m):
    return (x + m - 1) // m * m


def _vmem_capacity_bytes():
    try:
        return int(pltpu.get_tpu_info().vmem_capacity_bytes)
    except Exception:
        return 64 << 20          # conservative (v7x-sized) fallback


def _tpu_budgets():
    """(tile_budget_bytes, vmem_cap_bytes, max_block_rows) for this TPU generation."""
    vmem = _vmem_capacity_bytes()
    if vmem <= (64 << 20):                       # v7x: 64 MiB per TensorCore
        return 36 << 20, 56 << 20, 4096
    return 80 << 20, 112 << 20, 8192             # v5e / v6e: 128 MiB


def _invariant_spec(shape):
    """BlockSpec for a grid-invariant operand (same block every grid step):
    single-buffer it -- default pipelining would double-buffer it for nothing."""
    try:
        return pl.BlockSpec(shape, lambda i: (0, 0), pipeline_mode=pl.Buffered(1))
    except Exception:            # older BlockSpec without pipeline_mode
        return pl.BlockSpec(shape, lambda i: (0, 0))


# ----------------------------------------------------------------------------
# Kernel
# ----------------------------------------------------------------------------
def _make_kernel(block_rows, sub_rows):
    num_sub = block_rows // sub_rows

    def kernel(x_ref, w1_ref, b1_ref, w2_ref, b2_ref, o_ref):
        def compute(x):
            # Layer 1 on the MXU with f32 accumulation; bias + ReLU on the VPU in f32.
            h = jnp.dot(x, w1_ref[...], preferred_element_type=jnp.float32)
            h = jnp.maximum(h + b1_ref[...], 0.0)
            # Layer 2: cast h to the weight dtype right before the dot so bf16 mode
            # feeds the MXU bf16 operands while the VPU work above stays f32.
            y = jnp.dot(h.astype(w2_ref.dtype), w2_ref[...],
                        preferred_element_type=jnp.float32)
            return (y + b2_ref[...]).astype(o_ref.dtype)

        if num_sub == 1:
            o_ref[...] = compute(x_ref[...])
        else:
            # Sub-tile the block so the f32 hidden activation stays small even when
            # the DMA tile (block_rows) is thousands of rows.
            def body(j, carry):
                r = pl.multiple_of(j * sub_rows, sub_rows)
                o_ref[pl.ds(r, sub_rows), :] = compute(x_ref[pl.ds(r, sub_rows), :])
                return carry

            jax.lax.fori_loop(0, num_sub, body, 0)

    return kernel


# ----------------------------------------------------------------------------
# Module wrapper (packs/caches weights once; call with different x)
# ----------------------------------------------------------------------------
class EdgeFeatureMLP1Pallas:
    def __init__(self, w1, b1, w2, b2, *, use_bf16=True, out_dtype=None):
        d_in, hidden = w1.shape
        d_out = w2.shape[1]
        self.d_in, self.hidden, self.d_out = d_in, hidden, d_out
        self.out_dtype = out_dtype
        self.w_dtype = jnp.bfloat16 if use_bf16 else jnp.float32
        itemsize = jnp.dtype(self.w_dtype).itemsize

        tile_budget, _, _ = _tpu_budgets()

        # Lane packing: pack G consecutive rows into one row so the OUTPUT store is
        # lane-dense (multiple of 128 lanes).  Weights become kron(I_G, W): same
        # math, block-diagonal.  G is driven by d_out only to keep MXU waste minimal.
        G = 128 // math.gcd(128, d_out)
        if itemsize * G * G * (d_in * hidden + hidden * d_out) > tile_budget // 4:
            G = 1     # expanded weights would blow VMEM; fall back to plain layout
        self.G = G
        self.d_in_p, self.hid_p, self.d_out_p = G * d_in, G * hidden, G * d_out

        # Pack once at construction (not per call).
        if G > 1:
            eye = jnp.eye(G, dtype=jnp.float32)
            self.w1_p = jnp.kron(eye, w1.astype(jnp.float32)).astype(self.w_dtype)
            self.w2_p = jnp.kron(eye, w2.astype(jnp.float32)).astype(self.w_dtype)
            self.b1_p = jnp.tile(b1.astype(jnp.float32), G).reshape(1, self.hid_p)
            self.b2_p = jnp.tile(b2.astype(jnp.float32), G).reshape(1, self.d_out_p)
        else:
            self.w1_p = w1.astype(self.w_dtype)
            self.w2_p = w2.astype(self.w_dtype)
            self.b1_p = b1.astype(jnp.float32).reshape(1, self.hid_p)
            self.b2_p = b2.astype(jnp.float32).reshape(1, self.d_out_p)

    def __call__(self, x, *, block_rows=None):
        N, d_in = x.shape
        assert d_in == self.d_in, "feature dim mismatch"
        out_dtype = self.out_dtype if self.out_dtype is not None else x.dtype
        G = self.G
        d_in_p, hid_p, d_out_p = self.d_in_p, self.hid_p, self.d_out_p
        isz_x = jnp.dtype(self.w_dtype).itemsize
        isz_o = jnp.dtype(out_dtype).itemsize

        tile_budget, vmem_cap, max_rows = _tpu_budgets()
        rows_packed = -(-N // G)

        # ---- row tiling from the generation-aware VMEM budget ----------------
        w_bytes = (self.w1_p.size + self.w2_p.size) * isz_x + 4 * (hid_p + d_out_p)
        h_bytes = _SUB_ROWS * hid_p * 4                       # f32 hidden sub-tile
        per_row = 2 * isz_x * d_in_p + 2 * isz_o * d_out_p    # double-buffered x/out
        if block_rows is None:
            avail = max(tile_budget - w_bytes - h_bytes, per_row * 8)
            block_rows = max(8, min(max_rows, (avail // per_row) // 8 * 8))
        # Keep >= 2 grid steps so the 'parallel' row axis can shard across both
        # TensorCores on v7x.
        if rows_packed >= 16:
            block_rows = min(block_rows, _round_up(-(-rows_packed // 2), 8))
        block_rows = min(block_rows, _round_up(rows_packed, 8))
        block_rows = max(8, (block_rows // 8) * 8)
        if block_rows > _SUB_ROWS:
            block_rows = (block_rows // _SUB_ROWS) * _SUB_ROWS
            sub_rows = _SUB_ROWS
        else:
            sub_rows = block_rows

        rows_pad = _round_up(rows_packed, block_rows)
        n_pad = rows_pad * G

        x_in = x.astype(self.w_dtype)
        if n_pad != N:
            x_in = jnp.pad(x_in, ((0, n_pad - N), (0, 0)))
        x_packed = x_in.reshape(rows_pad, d_in_p)             # contiguous -> free

        grid = (rows_pad // block_rows,)

        # vmem limit from actual tile sizes (+headroom), clamped per generation.
        est = (2 * block_rows * d_in_p * isz_x + 2 * block_rows * d_out_p * isz_o
               + w_bytes + 2 * sub_rows * hid_p * 4)
        vmem_limit = min(vmem_cap, max(32 << 20, int(est * 1.3) + (16 << 20)))

        cost = pl.CostEstimate(
            flops=2 * rows_pad * (d_in_p * hid_p + hid_p * d_out_p),
            transcendentals=0,
            bytes_accessed=(x_packed.size * isz_x + rows_pad * d_out_p * isz_o
                            + (self.w1_p.size + self.w2_p.size) * isz_x
                            + (hid_p + d_out_p) * 4),
        )

        out_packed = pl.pallas_call(
            _make_kernel(block_rows, sub_rows),
            out_shape=jax.ShapeDtypeStruct((rows_pad, d_out_p), out_dtype),
            grid_spec=pltpu.PrefetchScalarGridSpec(
                num_scalar_prefetch=0,
                grid=grid,
                in_specs=[
                    pl.BlockSpec((block_rows, d_in_p), lambda i: (i, 0)),  # x tile
                    _invariant_spec((d_in_p, hid_p)),                      # W1 (full)
                    _invariant_spec((1, hid_p)),                           # b1
                    _invariant_spec((hid_p, d_out_p)),                     # W2 (full)
                    _invariant_spec((1, d_out_p)),                         # b2
                ],
                out_specs=pl.BlockSpec((block_rows, d_out_p), lambda i: (i, 0)),
            ),
            compiler_params=pltpu.CompilerParams(
                dimension_semantics=("parallel",),   # rows shard across TCs on v7x
                vmem_limit_bytes=int(vmem_limit),
            ),
            cost_estimate=cost,
        )(x_packed, self.w1_p, self.b1_p, self.w2_p, self.b2_p)

        # Packed output rows are exactly the row-major flattening of (n_pad, d_out).
        out = out_packed.reshape(n_pad, self.d_out)
        return out[:N]


def edge_feature_mlp1(x, w1, b1, w2, b2, *, use_bf16=True, out_dtype=None,
                      block_rows=None):
    """One-shot convenience.  For repeated calls build EdgeFeatureMLP1Pallas once
    (it caches the kron-packed weights) and call it."""
    mod = EdgeFeatureMLP1Pallas(w1, b1, w2, b2, use_bf16=use_bf16, out_dtype=out_dtype)
    return mod(x, block_rows=block_rows)


# ----------------------------------------------------------------------------
# Param init mimicking PyTorch nn.Linear (uniform +-1/sqrt(fan_in))
# ----------------------------------------------------------------------------
def init_params(key, input_dim, hidden_dim, output_dim):
    k1, k2, k3, k4 = jax.random.split(key, 4)
    lim1 = 1.0 / jnp.sqrt(input_dim)
    lim2 = 1.0 / jnp.sqrt(hidden_dim)
    w1 = jax.random.uniform(k1, (input_dim, hidden_dim), jnp.float32, -lim1, lim1)
    b1 = jax.random.uniform(k2, (hidden_dim,), jnp.float32, -lim1, lim1)
    w2 = jax.random.uniform(k3, (hidden_dim, output_dim), jnp.float32, -lim2, lim2)
    b2 = jax.random.uniform(k4, (output_dim,), jnp.float32, -lim2, lim2)
    return w1, b1, w2, b2


if __name__ == "__main__":
    # Make the pure-JAX reference use the exact f32 matmul path.
    jax.config.update("jax_default_matmul_precision", "highest")

    # Small deterministic example: input_dim=16, hidden=32, output=8.
    N, input_dim, hidden_dim, output_dim = 16, 16, 32, 8

    key = jax.random.PRNGKey(0)
    kx, kp = jax.random.split(key)
    x = jax.random.normal(kx, (N, input_dim), dtype=jnp.float32)
    w1, b1, w2, b2 = init_params(kp, input_dim, hidden_dim, output_dim)
    ref = jnp.maximum(x @ w1 + b1, 0.0) @ w2 + b2

    # Exact-precision path (f32 MXU operands).
    mlp_f32 = EdgeFeatureMLP1Pallas(w1, b1, w2, b2, use_bf16=False)
    out_f32 = jax.block_until_ready(mlp_f32(x))
    assert out_f32.shape == (N, output_dim)
    assert jnp.allclose(out_f32, ref, atol=2e-3, rtol=2e-3)

    # Default fast path: bf16 MXU operands, f32 accumulation / bias / ReLU.
    mlp = EdgeFeatureMLP1Pallas(w1, b1, w2, b2)          # use_bf16=True
    out = jax.block_until_ready(mlp(x))
    assert out.shape == (N, output_dim)
    assert jnp.allclose(out, ref, atol=5e-2, rtol=5e-2)

    # Padding path: N not a multiple of the packing factor or the row tile.
    N2 = 50
    x2 = jax.random.normal(jax.random.PRNGKey(1), (N2, input_dim), dtype=jnp.float32)
    ref2 = jnp.maximum(x2 @ w1 + b1, 0.0) @ w2 + b2
    out2 = jax.block_until_ready(mlp(x2))
    assert out2.shape == (N2, output_dim)
    assert jnp.allclose(out2, ref2, atol=5e-2, rtol=5e-2)

    print("KERNEL_OK")
</pallas_src>

<mosaic_0001>
module attributes {stable_mosaic.version = 11 : i64} {
  func.func @kernel(%arg0: i32, %arg1: memref<8x256xf32, #tpu.memory_space<vmem>>, %arg2: memref<256x512xf32, #tpu.memory_space<vmem>>, %arg3: memref<1x512xf32, #tpu.memory_space<vmem>>, %arg4: memref<512x128xf32, #tpu.memory_space<vmem>>, %arg5: memref<1x128xf32, #tpu.memory_space<vmem>>, %arg6: memref<8x128xf32, #tpu.memory_space<vmem>>) attributes {dimension_semantics = [#tpu.dimension_semantics<parallel>], iteration_bounds = array<i64: 1>, scalar_prefetch = 0 : i64, scratch_operands = 0 : i64, tpu.core_type = #tpu.core_type<tc>, window_params = [{transform_indices = @transform_0, window_bounds = array<i64: 8, 256>}, {pipeline_mode = #tpu.pipeline_mode<synchronous>, transform_indices = @transform_1, window_bounds = array<i64: 256, 512>}, {pipeline_mode = #tpu.pipeline_mode<synchronous>, transform_indices = @transform_2, window_bounds = array<i64: 1, 512>}, {pipeline_mode = #tpu.pipeline_mode<synchronous>, transform_indices = @transform_3, window_bounds = array<i64: 512, 128>}, {pipeline_mode = #tpu.pipeline_mode<synchronous>, transform_indices = @transform_4, window_bounds = array<i64: 1, 128>}, {transform_indices = @transform_5, window_bounds = array<i64: 8, 128>}]} {
    %c0 = arith.constant 0 : index
    %c0_0 = arith.constant 0 : index
    %0 = vector.load %arg1[%c0, %c0_0] : memref<8x256xf32, #tpu.memory_space<vmem>>, vector<8x256xf32>
    %c0_1 = arith.constant 0 : index
    %c0_2 = arith.constant 0 : index
    %1 = vector.load %arg2[%c0_1, %c0_2] : memref<256x512xf32, #tpu.memory_space<vmem>>, vector<256x512xf32>
    %cst = arith.constant dense<0.000000e+00> : vector<8x512xf32>
    %2 = tpu.matmul %0, %1, %cst {dimension_numbers = #tpu.dot_dimension_numbers<[1], [0], [0], [1], [0, 0, 1, 1], [], []>, precision = #tpu.contract_precision<fp32>} : vector<8x256xf32>, vector<256x512xf32>, vector<8x512xf32> -> vector<8x512xf32>
    %c0_3 = arith.constant 0 : index
    %c0_4 = arith.constant 0 : index
    %3 = vector.load %arg3[%c0_3, %c0_4] : memref<1x512xf32, #tpu.memory_space<vmem>>, vector<1x512xf32>
    %4 = vector.broadcast %3 : vector<1x512xf32> to vector<8x512xf32>
    %5 = arith.addf %2, %4 : vector<8x512xf32>
    %cst_5 = arith.constant 0.000000e+00 : f32
    %6 = vector.broadcast %cst_5 : f32 to vector<8x512xf32>
    %7 = arith.maximumf %5, %6 : vector<8x512xf32>
    %c0_6 = arith.constant 0 : index
    %c0_7 = arith.constant 0 : index
    %8 = vector.load %arg4[%c0_6, %c0_7] : memref<512x128xf32, #tpu.memory_space<vmem>>, vector<512x128xf32>
    %cst_8 = arith.constant dense<0.000000e+00> : vector<8x128xf32>
    %9 = tpu.matmul %7, %8, %cst_8 {dimension_numbers = #tpu.dot_dimension_numbers<[1], [0], [0], [1], [0, 0, 1, 1], [], []>, precision = #tpu.contract_precision<fp32>} : vector<8x512xf32>, vector<512x128xf32>, vector<8x128xf32> -> vector<8x128xf32>
    %c0_9 = arith.constant 0 : index
    %c0_10 = arith.constant 0 : index
    %10 = vector.load %arg5[%c0_9, %c0_10] : memref<1x128xf32, #tpu.memory_space<vmem>>, vector<1x128xf32>
    %11 = vector.broadcast %10 : vector<1x128xf32> to vector<8x128xf32>
    %12 = arith.addf %9, %11 : vector<8x128xf32>
    %c0_11 = arith.constant 0 : index
    %c0_12 = arith.constant 0 : index
    %13 = vector.load %arg6[%c0_11, %c0_12] : memref<8x128xf32, #tpu.memory_space<vmem>>, vector<8x128xf32>
    tpu.vector_store %arg6[%c0_11, %c0_12], %12 {strides = array<i32>} : memref<8x128xf32, #tpu.memory_space<vmem>>, vector<8x128xf32>,
    return
  }
  func.func @transform_0(%arg0: i32) -> (i32, i32) {
    %c0_i32 = arith.constant 0 : i32
    %c0_i32_0 = arith.constant 0 : i32
    return %arg0, %c0_i32 : i32, i32
  }
  func.func @transform_1(%arg0: i32) -> (i32, i32) {
    %c0_i32 = arith.constant 0 : i32
    %c0_i32_0 = arith.constant 0 : i32
    %c0_i32_1 = arith.constant 0 : i32
    return %c0_i32, %c0_i32_0 : i32, i32
  }
  func.func @transform_2(%arg0: i32) -> (i32, i32) {
    %c0_i32 = arith.constant 0 : i32
    %c0_i32_0 = arith.constant 0 : i32
    %c0_i32_1 = arith.constant 0 : i32
    return %c0_i32, %c0_i32_0 : i32, i32
  }
  func.func @transform_3(%arg0: i32) -> (i32, i32) {
    %c0_i32 = arith.constant 0 : i32
    %c0_i32_0 = arith.constant 0 : i32
    %c0_i32_1 = arith.constant 0 : i32
    return %c0_i32, %c0_i32_0 : i32, i32
  }
  func.func @transform_4(%arg0: i32) -> (i32, i32) {
    %c0_i32 = arith.constant 0 : i32
    %c0_i32_0 = arith.constant 0 : i32
    %c0_i32_1 = arith.constant 0 : i32
    return %c0_i32, %c0_i32_0 : i32, i32
  }
  func.func @transform_5(%arg0: i32) -> (i32, i32) {
    %c0_i32 = arith.constant 0 : i32
    %c0_i32_0 = arith.constant 0 : i32
    return %arg0, %c0_i32 : i32, i32
  }
}

</mosaic_0001>

<bundles_post_ra>
// kernel: tpu_custom_call.1
= control target key start
LH: loop header
LB: loop body
LE: loop exit
PB: predicated region body
PF: predicated region fallthrough
CT: control target
= control target key end

     0   :  { %10 = vsyncpa [#allocation3], 0  ;;  %s7623_s0 = inlined_call_operand.hbm [shape: f32[8,256], index: 0, kind: input, shape index: {}]   ;;  %s7624_s1 = inlined_call_operand.hbm [shape: f32[256,512], index: 1, kind: input, shape index: {}]   ;;  %s7625_s2 = inlined_call_operand.hbm [shape: f32[1,512], index: 2, kind: input, shape index: {}]   ;;  %s7626_s3 = inlined_call_operand.hbm [shape: f32[512,128], index: 3, kind: input, shape index: {}]   ;;  %s7627_s4 = inlined_call_operand.vmem [shape: f32[1,128], index: 4, kind: input, shape index: {}]   ;;  %s7628_s5 = inlined_call_operand.hbm [shape: f32[8,128], index: 5, kind: output, shape index: {}]  }
   0x1   :  { %11 = vsyncpa [#allocation6], 0 }
   0x2   :  { %12 = vsyncpa [#allocation9], 0  ;;  %s29_s20 = sshll.u32 %s7624_s1, 4  ;;  %s30_s20 = int_to_ptr.hbm [resolvable:$true] %s29_s20 }
   0x3   :  { %13 = vsyncpa [#allocation4], 0  ;;  %s4543_s21 = smov [#allocation5]   ;;  %s19_s25 = sshll.u32 %s7623_s0, 4  ;;  %s20_s25 = int_to_ptr.hbm [resolvable:$true] %s19_s25 }
   0x4   :  { %s31_s22 = sshll.u32 %s4543_s21, 4  ;;  %s4544_s26 = smov 512   ;;  %s32_s22 = int_to_ptr.vmem [resolvable:$true] %s31_s22 }
   0x5   :  { %s4545_s27 = smov 32   ;;  %s4546_s28 = smov [#allocation2]  }
   0x6   :  { %37 = dma.hbm_to_vmem [thread:$0]  %s30_s20, 16384, %s32_s22, [#allocation6], %s4544_s26, %s4544_s26, %s4545_s27  }
   0x7   :  { %s21_s29 = sshll.u32 %s4546_s28, 4  ;;  %s43_s7 = sshll.u32 %s7625_s2, 4  ;;  %s22_s29 = int_to_ptr.vmem [resolvable:$true] %s21_s29  ;;  %s44_s7 = int_to_ptr.hbm [resolvable:$true] %s43_s7 }
   0x8   :  { %24 = dma.hbm_to_vmem [thread:$0]  %s20_s25, 256, %s22_s29, [#allocation3]  }
   0x9   :  { %s53_s9 = sshll.u32 %s7626_s3, 4  ;;  %s4547_s10 = smov [#allocation7]   ;;  %s54_s9 = int_to_ptr.hbm [resolvable:$true] %s53_s9 }
   0xa   :  { %s45_s11 = sshll.u32 %s4547_s10, 4  ;;  %s4548_s0 = smov [#allocation8]   ;;  %s46_s11 = int_to_ptr.vmem [resolvable:$true] %s45_s11 }
   0xb   :  { %48 = dma.hbm_to_vmem [thread:$0]  %s44_s7, 64, %s46_s11, [#allocation6]  }
   0xc   :  { %s55_s12 = sshll.u32 %s4548_s0, 4  ;;  %s4549_s13 = smov 128   ;;  %s56_s12 = int_to_ptr.vmem [resolvable:$true] %s55_s12 }
   0xd   :  { %s4550_s14 = smov 8  }
   0xe   :  { %61 = dma.hbm_to_vmem [thread:$0]  %s54_s9, 8192, %s56_s12, [#allocation9], %s4549_s13, %s4549_s13, %s4550_s14  }
   0xf   :  { %4535 = dma.done.wait [#allocation3], 256  }
  0x10   :  { %4536 = vsyncadd [#allocation3], 4294967040 }
  0x11   :  { %4537 = dma.done.wait [#allocation6], 16448  }
  0x12   :  { %4538 = vsyncadd [#allocation6], 4294950848 }
  0x13   :  { %4539 = dma.done.wait [#allocation9], 8192  }
  0x14   :  { %4540 = vsyncadd [#allocation9], 4294959104  ;;  %v142_v0 = vld [vmem:[#allocation5 + $0x1e0] sm:$0xff]  ;;  %s4392_s18 = sshll.u32 %s7628_s5, 4  ;;  %s4393_s18 = int_to_ptr.hbm [resolvable:$true] %s4392_s18 }
  0x15   :  { %v138_v1 = vld [vmem:[#allocation5 + $0x1c0] sm:$0xff]  ;;  %v4594_v3 = vand.u32 4294901760, %v142_v0 }
  0x16   :  { %v134_v2 = vld [vmem:[#allocation5 + $0x1a0] sm:$0xff]  ;;  %v4596_v4 = vand.u32 4294901760, %v138_v1 }
  0x17   :  { %v4598_v5 = vand.u32 4294901760, %v134_v2  ;;  %v130_v6 = vld [vmem:[#allocation5 + $0x180] sm:$0xff]  ;;  %221 = vmatpush.msra.mxu0 %v4594_v3  ;;  %417 = vmatpush.msra.mxu3 %v4594_v3  ;;  %v4609_v14 = vsub.f32 %v142_v0, %v4594_v3 }
  0x18   :  { %v126_v7 = vld [vmem:[#allocation5 + $0x160] sm:$0xff]  ;;  %v4600_v9 = vand.u32 4294901760, %v130_v6  ;;  %v4612_v15 = vsub.f32 %v138_v1, %v4596_v4 }
  0x19   :  { %v122_v8 = vld [vmem:[#allocation5 + $0x140] sm:$0xff]  ;;  %v4602_v10 = vand.u32 4294901760, %v126_v7  ;;  %v4615_v16 = vsub.f32 %v134_v2, %v4598_v5  ;;  %223 = vmatpush.msra.mxu0 %v4596_v4  ;;  %364 = vmatpush.msra.mxu2 %v4609_v14  ;;  %v7643_v23 = vand.u32 4294901760, %v4609_v14 }
  0x1a   :  { %v4604_v11 = vand.u32 4294901760, %v122_v8  ;;  %v118_v12 = vld [vmem:[#allocation5 + $0x120] sm:$0xff]  ;;  %v4620_v19 = vsub.f32 %v130_v6, %v4600_v9  ;;  %v7641_v24 = vand.u32 4294901760, %v4612_v15  ;;  %419 = vmatpush.msra.mxu3 %v4596_v4 }
  0x1b   :  { %v114_v13 = vld [vmem:[#allocation5 + $0x100] sm:$0xff]  ;;  %v4617_v17 = vand.u32 4294901760, %v118_v12  ;;  %v4623_v20 = vsub.f32 %v126_v7, %v4602_v10  ;;  %v7640_v25 = vand.u32 4294901760, %v4615_v16  ;;  %225 = vmatpush.msra.mxu0 %v4598_v5  ;;  %367 = vmatpush.msra.mxu2 %v4612_v15  ;;  %v264_v30 = vsub.f32 %v4609_v14, %v7643_v23 }
  0x1c   :  { %v110_v18 = vld [vmem:[#allocation5 + $0xe0] sm:$0xff]  ;;  %v4626_v21 = vsub.f32 %v122_v8, %v4604_v11  ;;  %v4628_v22 = vand.u32 4294901760, %v114_v13  ;;  %v7639_v26 = vand.u32 4294901760, %v4620_v19  ;;  %v270_v31 = vsub.f32 %v4612_v15, %v7641_v24  ;;  %421 = vmatpush.msra.mxu3 %v4598_v5 }
  0x1d   :  { %v4638_v27 = vsub.f32 %v118_v12, %v4617_v17  ;;  %v4640_v28 = vand.u32 4294901760, %v110_v18  ;;  %v106_v29 = vld [vmem:[#allocation5 + $0xc0] sm:$0xff]  ;;  %v276_v32 = vsub.f32 %v4615_v16, %v7640_v25  ;;  %v7638_v33 = vand.u32 4294901760, %v4623_v20  ;;  %227 = vmatpush.msra.mxu0 %v4600_v9  ;;  %370 = vmatpush.msra.mxu2 %v4615_v16 }
  0x1e   :  { %v4656_v34 = vsub.f32 %v114_v13, %v4628_v22  ;;  %v7635_v35 = vand.u32 4294901760, %v4626_v21  ;;  %v102_v36 = vld [vmem:[#allocation5 + $0xa0] sm:$0xff]  ;;  %v265_v37 = vand.u32 4294901760, %v264_v30  ;;  %v271_v38 = vand.u32 4294901760, %v270_v31  ;;  %423 = vmatpush.msra.mxu3 %v4600_v9 }
  0x1f   :  { %v282_v39 = vsub.f32 %v4620_v19, %v7639_v26  ;;  %v4664_v40 = vand.u32 4294901760, %v106_v29  ;;  %v4668_v41 = vsub.f32 %v110_v18, %v4640_v28  ;;  %v7634_v42 = vand.u32 4294901760, %v4638_v27  ;;  %v98_v43 = vld [vmem:[#allocation5 + $0x80] sm:$0xff]  ;;  %229 = vmatpush.msra.mxu0 %v4602_v10  ;;  %373 = vmatpush.msra.mxu2 %v4620_v19 }
  0x20   :  { %266 = vmatpush.msra.mxu1 %v265_v37  ;;  %v277_v44 = vand.u32 4294901760, %v276_v32  ;;  %v288_v45 = vsub.f32 %v4623_v20, %v7638_v33  ;;  %v4675_v46 = vand.u32 4294901760, %v102_v36  ;;  %425 = vmatpush.msra.mxu3 %v4602_v10  ;;  %v294_v47 = vsub.f32 %v4626_v21, %v7635_v35  ;;  %v94_v49 = vld [vmem:[#allocation5 + $0x60] sm:$0xff] }
  0x21   :  { %v7632_v48 = vand.u32 4294901760, %v4656_v34  ;;  %231 = vmatpush.msra.mxu0 %v4604_v11  ;;  %v283_v50 = vand.u32 4294901760, %v282_v39  ;;  %v4685_v51 = vsub.f32 %v106_v29, %v4664_v40  ;;  %v4687_v52 = vand.u32 4294901760, %v98_v43  ;;  %376 = vmatpush.msra.mxu2 %v4623_v20  ;;  %v90_v55 = vld [vmem:[#allocation5 + $0x40] sm:$0xff] }
  0x22   :  { %272 = vmatpush.msra.mxu1 %v271_v38  ;;  %427 = vmatpush.msra.mxu3 %v4604_v11  ;;  %v300_v53 = vsub.f32 %v4638_v27, %v7634_v42  ;;  %v7631_v54 = vand.u32 4294901760, %v4668_v41  ;;  %v206_v56 = vld [vmem:[#allocation5 + $0x3e0] sm:$0xff]  ;;  %v289_v57 = vand.u32 4294901760, %v288_v45  ;;  %v4697_v58 = vsub.f32 %v102_v36, %v4675_v46 }
  0x23   :  { %233 = vmatpush.msra.mxu0 %v4617_v17  ;;  %v4699_v59 = vand.u32 4294901760, %v94_v49  ;;  %v202_v60 = vld [vmem:[#allocation5 + $0x3c0] sm:$0xff]  ;;  %379 = vmatpush.msra.mxu2 %v4626_v21  ;;  %v295_v61 = vand.u32 4294901760, %v294_v47  ;;  %v306_v62 = vsub.f32 %v4656_v34, %v7632_v48  ;;  %v4708_v0 = vsub.f32 %v98_v43, %v4687_v52 }
  0x24   :  { %278 = vmatpush.msra.mxu1 %v277_v44  ;;  %429 = vmatpush.msra.mxu3 %v4617_v17  ;;  %v86_v63 = vld [vmem:[#allocation5 + $0x20] sm:$0xff]  ;;  %v4710_v1 = vand.u32 4294901760, %v90_v55  ;;  %v7630_v2 = vand.u32 4294901760, %v4685_v51  ;;  %v4713_v6 = vand.u32 4294901760, %v206_v56  ;;  %v301_v8 = vand.u32 4294901760, %v300_v53 }
  0x25   :  { %7805 = vst [vmem:[#allocation15_spill] sm:$0xff] %v4699_v59  ;;  %235 = vmatpush.msra.mxu0 %v4628_v22  ;;  %v198_v7 = vld [vmem:[#allocation5 + $0x3a0] sm:$0xff]  ;;  %382 = vmatpush.msra.mxu2 %v4638_v27  ;;  %v312_v12 = vsub.f32 %v4668_v41, %v7631_v54  ;;  %v4720_v18 = vand.u32 4294901760, %v202_v60  ;;  %v4724_v29 = vsub.f32 %v94_v49, %v4699_v59  ;;  %v4726_v30 = vand.u32 4294901760, %v86_v63 }
  0x26   :  { %284 = vmatpush.msra.mxu1 %v283_v50  ;;  %7806 = vst [vmem:[#allocation16_spill] sm:$0xff] %v4710_v1  ;;  %431 = vmatpush.msra.mxu3 %v4628_v22  ;;  %v82_v13 = vld [vmem:[#allocation5] sm:$0xff]  ;;  %v7629_v31 = vand.u32 4294901760, %v4697_v58  ;;  %v4730_v32 = vsub.f32 %v206_v56, %v4713_v6  ;;  %v307_v37 = vand.u32 4294901760, %v306_v62  ;;  %v4734_v38 = vand.u32 4294901760, %v198_v7 }
  0x27   :  { %237 = vmatpush.msra.mxu0 %v4640_v28  ;;  %7807 = vst [vmem:[#allocation17_spill] sm:$0xff] %v4726_v30  ;;  %v194_v36 = vld [vmem:[#allocation5 + $0x380] sm:$0xff]  ;;  %385 = vmatpush.msra.mxu2 %v4656_v34  ;;  %v318_v39 = vsub.f32 %v4685_v51, %v7630_v2  ;;  %v4741_v43 = vsub.f32 %v90_v55, %v4710_v1  ;;  %v4743_v44 = vand.u32 4294901760, %v82_v13  ;;  %v7633_v45 = vand.u32 4294901760, %v4708_v0 }
  0x28   :  { %290 = vmatpush.msra.mxu1 %v289_v57  ;;  %433 = vmatpush.msra.mxu3 %v4640_v28  ;;  %v190_v47 = vld [vmem:[#allocation5 + $0x360] sm:$0xff]  ;;  %v313_v49 = vand.u32 4294901760, %v312_v12  ;;  %v4749_v50 = vsub.f32 %v202_v60, %v4720_v18  ;;  %v4751_v53 = vand.u32 4294901760, %v194_v36  ;;  %v324_v55 = vsub.f32 %v4697_v58, %v7629_v31 }
  0x29   :  { %239 = vmatpush.msra.mxu0 %v4664_v40  ;;  %7808 = vst [vmem:[#allocation18_spill] sm:$0xff] %v4743_v44  ;;  %388 = vmatpush.msra.mxu2 %v4668_v41  ;;  %v4758_v56 = vsub.f32 %v86_v63, %v4726_v30  ;;  %v7636_v57 = vand.u32 4294901760, %v4730_v32  ;;  %v186_v62 = vld [vmem:[#allocation5 + $0x340] sm:$0xff]  ;;  %v4765_v60 = vsub.f32 %v198_v7, %v4734_v38  ;;  %v319_v12 = vand.u32 4294901760, %v318_v39 }
  0x2a   :  { %296 = vmatpush.msra.mxu1 %v295_v61  ;;  %435 = vmatpush.msra.mxu3 %v4664_v40  ;;  %7809 = vst [vmem:[#allocation19_spill] sm:$0xff] %v4749_v50  ;;  %v7637_v61 = vand.u32 4294901760, %v4724_v29  ;;  %v330_v63 = vsub.f32 %v4708_v0, %v7633_v45  ;;  %v4774_v31 = vsub.f32 %v82_v13, %v4743_v44  ;;  %v7642_v2 = vand.u32 4294901760, %v4741_v43  ;;  %v182_v54 = vld [vmem:[#allocation5 + $0x320] sm:$0xff] }
  0x2b   :  { %241 = vmatpush.msra.mxu0 %v4675_v46  ;;  %391 = vmatpush.msra.mxu2 %v4685_v51  ;;  %7810 = vst [vmem:[#allocation20_spill] sm:$0xff] %v4765_v60  ;;  %v7644_v7 = vand.u32 4294901760, %v4749_v50  ;;  %v4781_v48 = vsub.f32 %v194_v36, %v4751_v53  ;;  %v325_v39 = vand.u32 4294901760, %v324_v55  ;;  %v605_v13 = vsub.f32 %v4730_v32, %v7636_v57  ;;  %v178_v35 = vld [vmem:[#allocation5 + $0x300] sm:$0xff] }
  0x2c   :  { %302 = vmatpush.msra.mxu1 %v301_v8  ;;  %437 = vmatpush.msra.mxu3 %v4675_v46  ;;  %v4767_v8 = vand.u32 4294901760, %v190_v47  ;;  %v336_v45 = vsub.f32 %v4724_v29, %v7637_v61  ;;  %v7645_v42 = vand.u32 4294901760, %v4758_v56  ;;  %v7648_v36 = vand.u32 4294901760, %v4765_v60  ;;  %v174_v26 = vld [vmem:[#allocation5 + $0x2e0] sm:$0xff] }
  0x2d   :  { %243 = vmatpush.msra.mxu0 %v4687_v52  ;;  %394 = vmatpush.msra.mxu2 %v4697_v58  ;;  %v4799_v55 = vand.u32 4294901760, %v182_v54  ;;  %v331_v57 = vand.u32 4294901760, %v330_v63  ;;  %v342_v61 = vsub.f32 %v4741_v43, %v7642_v2  ;;  %v4815_v63 = vand.u32 4294901760, %v178_v35  ;;  %v170_v24 = vld [vmem:[#allocation5 + $0x2c0] sm:$0xff] }
  0x2e   :  { %308 = vmatpush.msra.mxu1 %v307_v37  ;;  %439 = vmatpush.msra.mxu3 %v4687_v52  ;;  %v4783_v37 = vand.u32 4294901760, %v186_v62  ;;  %v606_v2 = vand.u32 4294901760, %v605_v13  ;;  %v337_v23 = vand.u32 4294901760, %v336_v45  ;;  %v348_v33 = vsub.f32 %v4758_v56, %v7645_v42  ;;  %v166_v45 = vld [vmem:[#allocation5 + $0x2a0] sm:$0xff] }
  0x2f   :  { %245 = vmatpush.msra.mxu0 %v4699_v59  ;;  %397 = vmatpush.msra.mxu2 %v4708_v0  ;;  %v4828_v25 = vsub.f32 %v182_v54, %v4799_v55  ;;  %v343_v13 = vand.u32 4294901760, %v342_v61  ;;  %v7811_v42 = vand.u32 4294901760, %v4774_v31  ;;  %v7812_v54 = vand.u32 4294901760, %v4781_v48 }
  0x30   :  { %314 = vmatpush.msra.mxu1 %v313_v49  ;;  %441 = vmatpush.msra.mxu3 %v4699_v59  ;;  %v4797_v49 = vsub.f32 %v190_v47, %v4767_v8  ;;  %v611_v47 = vsub.f32 %v4749_v50, %v7644_v7  ;;  %v7813_v61 = vand.u32 4294901760, %v4609_v14  ;;  %v4849_v50 = vand.u32 4294901760, %v166_v45  ;;  %v162_v59 = vld [vmem:[#allocation5 + $0x280] sm:$0xff] }
  0x31   :  { %247 = vmatpush.msra.mxu0 %v4710_v1  ;;  %400 = vmatpush.msra.mxu2 %v4724_v29  ;;  %v623_v7 = vsub.f32 %v4781_v48, %v7812_v54  ;;  %v7815_v14 = vand.u32 4294901760, %v4612_v15  ;;  %v7817_v15 = vand.u32 4294901760, %v4615_v16  ;;  %v7819_v16 = vand.u32 4294901760, %v4620_v19 }
  0x32   :  { %320 = vmatpush.msra.mxu1 %v319_v12  ;;  %443 = vmatpush.msra.mxu3 %v4710_v1  ;;  %v4813_v12 = vsub.f32 %v186_v62, %v4783_v37  ;;  %v617_v62 = vsub.f32 %v4765_v60, %v7648_v36  ;;  %v4836_v1 = vand.u32 4294901760, %v170_v24  ;;  %v612_v36 = vand.u32 4294901760, %v611_v47 }
  0x33   :  { %249 = vmatpush.msra.mxu0 %v4726_v30  ;;  %403 = vmatpush.msra.mxu2 %v4741_v43  ;;  %v4869_v60 = vand.u32 4294901760, %v162_v59  ;;  %v7820_v19 = vand.u32 4294901760, %v4623_v20  ;;  %v80_v20 = vld [vmem:[#allocation2] sm:$0xff] }
  0x34   :  { %326 = vmatpush.msra.mxu1 %v325_v39  ;;  %445 = vmatpush.msra.mxu3 %v4726_v30  ;;  %v4830_v39 = vand.u32 4294901760, %v174_v26  ;;  %v354_v30 = vsub.f32 %v4774_v31, %v7811_v42  ;;  %v349_v42 = vand.u32 4294901760, %v348_v33  ;;  %v618_v47 = vand.u32 4294901760, %v617_v62 }
  0x35   :  { %251 = vmatpush.msra.mxu0 %v4743_v44  ;;  %406 = vmatpush.msra.mxu2 %v4758_v56  ;;  %v624_v62 = vand.u32 4294901760, %v623_v7 }
  0x36   :  { %332 = vmatpush.msra.mxu1 %v331_v57  ;;  %447 = vmatpush.msra.mxu3 %v4743_v44  ;;  %v4845_v57 = vsub.f32 %v178_v35, %v4815_v63  ;;  %v7814_v44 = vand.u32 4294901760, %v4797_v49  ;;  %v4857_v35 = vsub.f32 %v174_v26, %v4830_v39  ;;  %v355_v33 = vand.u32 4294901760, %v354_v30  ;;  %v154_v30 = vld [vmem:[#allocation5 + $0x240] sm:$0xff] }
  0x37   :  { %458 = vmatpush.msrb.mxu0 %v7813_v61  ;;  %409 = vmatpush.msra.mxu2 %v4774_v31 }
  0x38   :  { %607 = vmatpush.msrb.mxu3 %v606_v2  ;;  %338 = vmatpush.msra.mxu1 %v337_v23  ;;  %v629_v54 = vsub.f32 %v4797_v49, %v7814_v44  ;;  %v4863_v23 = vsub.f32 %v170_v24, %v4836_v1  ;;  %v158_v2 = vld [vmem:[#allocation5 + $0x260] sm:$0xff]  ;;  %v7816_v44 = vand.u32 4294901760, %v4813_v12  ;;  %v7656_v26 = vand.u32 4294901760, %v4845_v57 }
  0x39   :  { %462 = vmatpush.msrb.mxu0 %v7815_v14  ;;  %562 = vmatpush.msrb.mxu2 %v4713_v6  ;;  %v4875_v24 = vsub.f32 %v166_v45, %v4849_v50  ;;  %v7655_v14 = vand.u32 4294901760, %v4857_v35  ;;  %v146_v45 = vld [vmem:[#allocation5 + $0x200] sm:$0xff] }
  0x3a   :  { %613 = vmatpush.msrb.mxu3 %v612_v36  ;;  %344 = vmatpush.msra.mxu1 %v343_v13  ;;  %v635_v61 = vsub.f32 %v4813_v12, %v7816_v44  ;;  %v630_v7 = vand.u32 4294901760, %v629_v54  ;;  %v7818_v36 = vand.u32 4294901760, %v4828_v25  ;;  %v4881_v44 = vand.u32 4294901760, %v158_v2 }
  0x3b   :  { %466 = vmatpush.msrb.mxu0 %v7817_v15  ;;  %564 = vmatpush.msrb.mxu2 %v4720_v18  ;;  %v150_v15 = vld [vmem:[#allocation5 + $0x220] sm:$0xff]  ;;  %v4891_v54 = vsub.f32 %v162_v59, %v4869_v60 }
  0x3c   :  { %619 = vmatpush.msrb.mxu3 %v618_v47  ;;  %350 = vmatpush.msra.mxu1 %v349_v42  ;;  %v641_v13 = vsub.f32 %v4828_v25, %v7818_v36  ;;  %v636_v42 = vand.u32 4294901760, %v635_v61  ;;  %v647_v47 = vsub.f32 %v4845_v57, %v7656_v26  ;;  %v4893_v36 = vand.u32 4294901760, %v154_v30 }
  0x3d   :  { %470 = vmatpush.msrb.mxu0 %v7819_v16  ;;  %566 = vmatpush.msrb.mxu2 %v4734_v38  ;;  %v664_v16 = vand.u32 4294901760, %v4875_v24  ;;  %v4904_v59 = vsub.f32 %v158_v2, %v4881_v44  ;;  %v4906_v61 = vand.u32 4294901760, %v150_v15  ;;  %v4919_v26 = vand.u32 4294901760, %v146_v45 }
  0x3e   :  { %625 = vmatpush.msrb.mxu3 %v624_v62  ;;  %356 = vmatpush.msra.mxu1 %v355_v33  ;;  %v642_v33 = vand.u32 4294901760, %v641_v13  ;;  %v653_v62 = vsub.f32 %v4857_v35, %v7655_v14  ;;  %v648_v13 = vand.u32 4294901760, %v647_v47  ;;  %v670_v14 = vand.u32 4294901760, %v4891_v54 }
  0x3f   :  { %474 = vmatpush.msrb.mxu0 %v7820_v19  ;;  %568 = vmatpush.msrb.mxu2 %v4751_v53  ;;  %v7821_v19 = vand.u32 4294901760, %v4626_v21  ;;  %v4917_v2 = vsub.f32 %v154_v30, %v4893_v36  ;;  %v7823_v21 = vand.u32 4294901760, %v4638_v27  ;;  %v676_v30 = vand.u32 4294901760, %v4904_v59 }
  0x40   :  { %525 = vmatpush.msrb.mxu1 %v4594_v3  ;;  %631 = vmatpush.msrb.mxu3 %v630_v7  ;;  %v7822_v3 = vand.u32 4294901760, %v4863_v23  ;;  %v4932_v47 = vsub.f32 %v150_v15, %v4906_v61  ;;  %v7825_v27 = vand.u32 4294901760, %v4656_v34  ;;  %v7826_v15 = vand.u32 4294901760, %v4668_v41 }
  0x41   :  { %478 = vmatpush.msrb.mxu0 %v7821_v19  ;;  %570 = vmatpush.msrb.mxu2 %v4767_v8  ;;  %v654_v19 = vand.u32 4294901760, %v653_v62  ;;  %v682_v62 = vand.u32 4294901760, %v4917_v2 }
  0x42   :  { %527 = vmatpush.msrb.mxu1 %v4596_v4  ;;  %v659_v7 = vsub.f32 %v4863_v23, %v7822_v3  ;;  %637 = vmatpush.msrb.mxu3 %v636_v42  ;;  %v4924_v4 = vand.u32 4294901760, %v80_v20  ;;  %v665_v42 = vsub.f32 %v4875_v24, %v664_v16  ;;  %v4943_v3 = vsub.f32 %v146_v45, %v4919_v26 }
  0x43   :  { %482 = vmatpush.msrb.mxu0 %v7823_v21  ;;  %572 = vmatpush.msrb.mxu2 %v4783_v37  ;;  %v7828_v45 = vand.u32 4294901760, %v4685_v51  ;;  %v683_v41 = vsub.f32 %v4917_v2, %v682_v62  ;;  %v7829_v21 = vand.u32 4294901760, %v4697_v58 }
  0x44   :  { %529 = vmatpush.msrb.mxu1 %v4598_v5  ;;  %7824 = vst [vmem:[#allocation21_spill] sm:$0xff] %v4924_v4  ;;  %643 = vmatpush.msrb.mxu3 %v642_v33  ;;  %v660_v5 = vand.u32 4294901760, %v659_v7  ;;  %v671_v33 = vsub.f32 %v4891_v54, %v670_v14  ;;  %v666_v34 = vand.u32 4294901760, %v665_v42  ;;  %v677_v7 = vsub.f32 %v4904_v59, %v676_v30 }
  0x45   :  { %486 = vmatpush.msrb.mxu0 %v7825_v27  ;;  %574 = vmatpush.msrb.mxu2 %v4799_v55  ;;  %v7831_v42 = vand.u32 4294901760, %v4708_v0  ;;  %v81_v27 = vld [vmem:[#allocation2 + $0x8] sm:$0xff] }
  0x46   :  { %531 = vmatpush.msrb.mxu1 %v4600_v9  ;;  %649 = vmatpush.msrb.mxu3 %v648_v13  ;;  %v4949_v9 = vsub.f32 %v80_v20, %v4924_v4  ;;  %v688_v13 = vand.u32 4294901760, %v4932_v47  ;;  %v694_v20 = vand.u32 4294901760, %v4943_v3 }
  0x47   :  { %490 = vmatpush.msrb.mxu0 %v7826_v15  ;;  %576 = vmatpush.msrb.mxu2 %v4815_v63  ;;  %v4990_v15 = vand.u32 4294901760, %v81_v27 }
  0x48   :  { %533 = vmatpush.msrb.mxu1 %v4602_v10  ;;  %7827 = vst [vmem:[#allocation22_spill] sm:$0xff] %v4949_v9  ;;  %655 = vmatpush.msrb.mxu3 %v654_v19  ;;  %v672_v10 = vand.u32 4294901760, %v671_v33  ;;  %v4968_v51 = vand.u32 4294901760, %v4949_v9  ;;  %v689_v19 = vsub.f32 %v4932_v47, %v688_v13  ;;  %v695_v58 = vsub.f32 %v4943_v3, %v694_v20 }
  0x49   :  { %494 = vmatpush.msrb.mxu0 %v7828_v45  ;;  %578 = vmatpush.msrb.mxu2 %v4830_v39  ;;  %v7833_v33 = vand.u32 4294901760, %v4741_v43  ;;  %7834 = vst [vmem:[#allocation24_spill] sm:$0xff] %v4990_v15  ;;  %v7836_v43 = vand.u32 4294901760, %v4774_v31  ;;  %v7840_v31 = vld [vmem:[#allocation19_spill] sm:$0xff]  ;;  %v7843_v45 = vld [vmem:[#allocation20_spill] sm:$0xff] }
  0x4a   :  { %535 = vmatpush.msrb.mxu1 %v4604_v11  ;;  %661 = vmatpush.msrb.mxu3 %v660_v5  ;;  %7830 = vst [vmem:[#allocation23_spill] sm:$0xff] %v4968_v51  ;;  %v678_v11 = vand.u32 4294901760, %v677_v7  ;;  %v7832_v5 = vand.u32 4294901760, %v4724_v29  ;;  %v255_v0 = vsub.f32 %v4949_v9, %v4968_v51  ;;  %v696_v29 = vand.u32 4294901760, %v695_v58  ;;  %v7842_v7 = vld [vmem:[#allocation16_spill] sm:$0xff] }
  0x4b   :  { %498 = vmatpush.msrb.mxu0 %v7829_v21  ;;  %580 = vmatpush.msrb.mxu2 %v4836_v1  ;;  %v7845_v21 = vld [vmem:[#allocation17_spill] sm:$0xff] }
  0x4c   :  { %537 = vmatpush.msrb.mxu1 %v4617_v17  ;;  %667 = vmatpush.msrb.mxu3 %v666_v34  ;;  %v684_v17 = vand.u32 4294901760, %v683_v41  ;;  %v4996_v34 = vand.u32 4294901760, %v255_v0 }
  0x4d   :  { %502 = vmatpush.msrb.mxu0 %v7831_v42  ;;  %582 = vmatpush.msrb.mxu2 %v4849_v50 }
  0x4e   :  { %539 = vmatpush.msrb.mxu1 %v4628_v22  ;;  %673 = vmatpush.msrb.mxu3 %v672_v10  ;;  %v690_v22 = vand.u32 4294901760, %v689_v19  ;;  %v7844_v10 = vand.u32 4294901760, %v7840_v31  ;;  %v7848_v19 = vand.u32 4294901760, %v4781_v48 }
  0x4f   :  { %506 = vmatpush.msrb.mxu0 %v7832_v5  ;;  %584 = vmatpush.msrb.mxu2 %v4869_v60  ;;  %v107_v5 = vld [vmem:[#allocation5 + $0xc8] sm:$0xff] }
  0x50   :  { %541 = vmatpush.msrb.mxu1 %v4640_v28  ;;  %679 = vmatpush.msrb.mxu3 %v678_v11  ;;  %v7835_v28 = vand.u32 4294901760, %v4758_v56  ;;  %v7841_v56 = vand.u32 4294901760, %v4730_v32  ;;  %v7847_v11 = vld [vmem:[#allocation18_spill] sm:$0xff] }
  0x51   :  { %510 = vmatpush.msrb.mxu0 %v7833_v33  ;;  %586 = vmatpush.msrb.mxu2 %v4881_v44 }
  0x52   :  { %543 = vmatpush.msrb.mxu1 %v4664_v40  ;;  %685 = vmatpush.msrb.mxu3 %v684_v17  ;;  %v5003_v40 = vsub.f32 %v81_v27, %v4990_v15  ;;  %v7850_v17 = vand.u32 4294901760, %v4797_v49 }
  0x53   :  { %514 = vmatpush.msrb.mxu0 %v7835_v28  ;;  %588 = vmatpush.msrb.mxu2 %v4893_v36  ;;  %v103_v28 = vld [vmem:[#allocation5 + $0xa8] sm:$0xff] }
  0x54   :  { %545 = vmatpush.msrb.mxu1 %v4675_v46  ;;  %691 = vmatpush.msrb.mxu3 %v690_v22  ;;  %7837 = vst [vmem:[#allocation25_spill] sm:$0xff] %v5003_v40  ;;  %v7838_v46 = vld [vmem:[#allocation15_spill] sm:$0xff] }
  0x55   :  { %518 = vmatpush.msrb.mxu0 %v7836_v43  ;;  %590 = vmatpush.msrb.mxu2 %v4906_v61 }
  0x56   :  { %547 = vmatpush.msrb.mxu1 %v4687_v52  ;;  %697 = vmatpush.msrb.mxu3 %v696_v29  ;;  %v5013_v52 = vand.u32 4294901760, %v5003_v40 }
  0x57   :  { %257 = vmatmul.f32.vlgmr.msra.gmra.mxu0 %v4996_v34  ;;  %451 = vmatmul.f32.vlgmr.msra.gmra.mxu3 %v4968_v51 }
  0x58   :  { %705 = vmatpush.msra.mxu0 %v4730_v32  ;;  %866 = vmatpush.msra.mxu3 %v4713_v6  ;;  %7839 = vst [vmem:[#allocation15_spill] sm:$0xff] %v5013_v52  ;;  %v596_v41 = vsub.f32 %v5003_v40, %v5013_v52  ;;  %v7846_v32 = vand.u32 4294901760, %v7843_v45 }
  0x59   :  { %549 = vmatpush.msrb.mxu1 %v7838_v46  ;;  %592 = vmatpush.msrb.mxu2 %v4919_v26 }
  0x5a   :  { %412 = vmatmul.f32.vlgmr.msra.gmra.mxu2 %v4949_v9  ;;  %708 = vmatpush.msra.mxu0 %v7840_v31  ;;  %v5037_v42 = vand.u32 4294901760, %v596_v41  ;;  %v5192_v41 = vand.u32 4294901760, %v103_v28 }
  0x5b   :  { %799 = vmatpush.msra.mxu2 %v7841_v56  ;;  %868 = vmatpush.msra.mxu3 %v4720_v18 }
  0x5c   :  { %551 = vmatpush.msrb.mxu1 %v7842_v7  ;;  %711 = vmatpush.msra.mxu0 %v7843_v45  ;;  %7849 = vst [vmem:[#allocation19_spill] sm:$0xff] %v5037_v42 }
  0x5d   :  { %803 = vmatpush.msra.mxu2 %v7844_v10  ;;  %870 = vmatpush.msra.mxu3 %v4734_v38 }
  0x5e   :  { %553 = vmatpush.msrb.mxu1 %v7845_v21  ;;  %714 = vmatpush.msra.mxu0 %v4781_v48  ;;  %v7851_v48 = vand.u32 4294901760, %v4813_v12 }
  0x5f   :  { %807 = vmatpush.msra.mxu2 %v7846_v32  ;;  %872 = vmatpush.msra.mxu3 %v4751_v53  ;;  %v207_v32 = vld [vmem:[#allocation5 + $0x3e8] sm:$0xff] }
  0x60   :  { %555 = vmatpush.msrb.mxu1 %v7847_v11  ;;  %717 = vmatpush.msra.mxu0 %v4797_v49  ;;  %v135_v49 = vld [vmem:[#allocation5 + $0x1a8] sm:$0xff] }
  0x61   :  { %358 = vmatmul.f32.vlgmr.msra.gmra.mxu1 %v4924_v4  ;;  %811 = vmatpush.msra.mxu2 %v7848_v19  ;;  %v95_v19 = vld [vmem:[#allocation5 + $0x68] sm:$0xff] }
  0x62   :  { %758 = vmatpush.msra.mxu1 %v4713_v6  ;;  %874 = vmatpush.msra.mxu3 %v4767_v8  ;;  %v7852_v6 = vand.u32 4294901760, %v4828_v25 }
  0x63   :  { %720 = vmatpush.msra.mxu0 %v4813_v12  ;;  %815 = vmatpush.msra.mxu2 %v7850_v17  ;;  %v131_v12 = vld [vmem:[#allocation5 + $0x188] sm:$0xff] }
  0x64   :  { %760 = vmatpush.msra.mxu1 %v4720_v18  ;;  %876 = vmatpush.msra.mxu3 %v4783_v37  ;;  %v7853_v18 = vand.u32 4294901760, %v4845_v57 }
  0x65   :  { %598 = vmatmul.f32.vlgmr.msrb.gmra.mxu2 %v5037_v42  ;;  %723 = vmatpush.msra.mxu0 %v4828_v25  ;;  %v7854_v25 = vand.u32 4294901760, %v4857_v35  ;;  %v175_v42 = vld [vmem:[#allocation5 + $0x2e8] sm:$0xff] }
  0x66   :  { %762 = vmatpush.msra.mxu1 %v4734_v38  ;;  %819 = vmatpush.msra.mxu2 %v7851_v48  ;;  %v143_v38 = vld [vmem:[#allocation5 + $0x1e8] sm:$0xff] }
  0x67   :  { %878 = vmatpush.msra.mxu3 %v4799_v55  ;;  %520 = vmatmul.f32.vlgmr.msrb.gmra.mxu0 %v4924_v4 }
  0x68   :  { %699 = vmatmul.f32.vlgmr.msrb.gmra.mxu3 %v4990_v15  ;;  %726 = vmatpush.msra.mxu0 %v4845_v57  ;;  %v127_v57 = vld [vmem:[#allocation5 + $0x168] sm:$0xff] }
  0x69   :  { %764 = vmatpush.msra.mxu1 %v4751_v53  ;;  %823 = vmatpush.msra.mxu2 %v7852_v6  ;;  %v7855_v53 = vand.u32 4294901760, %v4863_v23 }
  0x6a   :  { %880 = vmatpush.msra.mxu3 %v4815_v63  ;;  %557 = vmatmul.f32.vlgmr.msrb.gmra.mxu1 %v4924_v4 }
  0x6b   :  { %729 = vmatpush.msra.mxu0 %v4857_v35  ;;  %766 = vmatpush.msra.mxu1 %v4767_v8  ;;  %v139_v8 = vld [vmem:[#allocation5 + $0x1c8] sm:$0xff]  ;;  %v5107_v35 = vand.u32 4294901760, %v131_v12 }
  0x6c   :  { %827 = vmatpush.msra.mxu2 %v7853_v18  ;;  %882 = vmatpush.msra.mxu3 %v4830_v39 }
  0x6d   :  { %732 = vmatpush.msra.mxu0 %v4863_v23  ;;  %768 = vmatpush.msra.mxu1 %v4783_v37  ;;  %v5080_v37 = vand.u32 4294901760, %v143_v38  ;;  %v123_v23 = vld [vmem:[#allocation5 + $0x148] sm:$0xff] }
  0x6e   :  { %831 = vmatpush.msra.mxu2 %v7854_v25  ;;  %884 = vmatpush.msra.mxu3 %v4836_v1  ;;  %v203_v25 = vld [vmem:[#allocation5 + $0x3c8] sm:$0xff] }
  0x6f   :  { %735 = vmatpush.msra.mxu0 %v4875_v24  ;;  %770 = vmatpush.msra.mxu1 %v4799_v55  ;;  %v5087_v55 = vand.u32 4294901760, %v139_v8  ;;  %v5117_v24 = vand.u32 4294901760, %v127_v57 }
  0x70   :  { %835 = vmatpush.msra.mxu2 %v7855_v53  ;;  %886 = vmatpush.msra.mxu3 %v4849_v50  ;;  %v91_v53 = vld [vmem:[#allocation5 + $0x48] sm:$0xff] }
  0x71   :  { %738 = vmatpush.msra.mxu0 %v4891_v54  ;;  %772 = vmatpush.msra.mxu1 %v4815_v63  ;;  %v5095_v63 = vsub.f32 %v143_v38, %v5080_v37  ;;  %v119_v54 = vld [vmem:[#allocation5 + $0x128] sm:$0xff] }
  0x72   :  { %839 = vmatpush.msra.mxu2 %v664_v16  ;;  %888 = vmatpush.msra.mxu3 %v4869_v60  ;;  %v5127_v16 = vand.u32 4294901760, %v123_v23 }
  0x73   :  { %741 = vmatpush.msra.mxu0 %v4904_v59  ;;  %774 = vmatpush.msra.mxu1 %v4830_v39  ;;  %v5097_v39 = vand.u32 4294901760, %v135_v49 }
  0x74   :  { %843 = vmatpush.msra.mxu2 %v670_v14  ;;  %890 = vmatpush.msra.mxu3 %v4881_v44  ;;  %v7666_v14 = vand.u32 4294901760, %v5095_v63 }
  0x75   :  { %744 = vmatpush.msra.mxu0 %v4917_v2  ;;  %776 = vmatpush.msra.mxu1 %v4836_v1  ;;  %v5105_v1 = vsub.f32 %v139_v8, %v5087_v55  ;;  %v115_v2 = vld [vmem:[#allocation5 + $0x108] sm:$0xff]  ;;  %v5210_v8 = vand.u32 4294901760, %v207_v32 }
  0x76   :  { %847 = vmatpush.msra.mxu2 %v676_v30  ;;  %892 = vmatpush.msra.mxu3 %v4893_v36  ;;  %v5139_v30 = vsub.f32 %v127_v57, %v5117_v24  ;;  %v5154_v58 = vand.u32 4294901760, %v115_v2  ;;  %v5217_v57 = vsub.f32 %v103_v28, %v5192_v41  ;;  %v195_v28 = vld [vmem:[#allocation5 + $0x388] sm:$0xff] }
  0x77   :  { %747 = vmatpush.msra.mxu0 %v4932_v47  ;;  %778 = vmatpush.msra.mxu1 %v4849_v50  ;;  %v5115_v50 = vsub.f32 %v135_v49, %v5097_v39  ;;  %v7665_v59 = vand.u32 4294901760, %v5105_v1  ;;  %v5141_v47 = vand.u32 4294901760, %v119_v54 }
  0x78   :  { %851 = vmatpush.msra.mxu2 %v682_v62  ;;  %894 = vmatpush.msra.mxu3 %v4906_v61  ;;  %v7661_v29 = vand.u32 4294901760, %v5139_v30  ;;  %v5180_v31 = vsub.f32 %v115_v2, %v5154_v58 }
  0x79   :  { %750 = vmatpush.msra.mxu0 %v4943_v3  ;;  %780 = vmatpush.msra.mxu1 %v4869_v60  ;;  %v5125_v60 = vsub.f32 %v131_v12, %v5107_v35  ;;  %v7664_v62 = vand.u32 4294901760, %v5115_v50  ;;  %v111_v3 = vld [vmem:[#allocation5 + $0xe8] sm:$0xff]  ;;  %v5167_v33 = vsub.f32 %v119_v54, %v5141_v47 }
  0x7a   :  { %855 = vmatpush.msra.mxu2 %v688_v13  ;;  %896 = vmatpush.msra.mxu3 %v4919_v26  ;;  %v952_v13 = vsub.f32 %v5105_v1, %v7665_v59  ;;  %v970_v10 = vsub.f32 %v5139_v30, %v7661_v29  ;;  %v7657_v18 = vand.u32 4294901760, %v5180_v31  ;;  %v87_v54 = vld [vmem:[#allocation5 + $0x28] sm:$0xff] }
  0x7b   :  { %753 = vmatmul.f32.vlgmr.msra.gmra.mxu0 %v5003_v40  ;;  %782 = vmatpush.msra.mxu1 %v4881_v44  ;;  %v946_v44 = vsub.f32 %v5095_v63, %v7666_v14  ;;  %v7663_v27 = vand.u32 4294901760, %v5125_v60  ;;  %v958_v22 = vsub.f32 %v5115_v50, %v7664_v62  ;;  %v7659_v21 = vand.u32 4294901760, %v5167_v33 }
  0x7c   :  { %1099 = vmatpush.msrb.mxu3 %v5080_v37  ;;  %903 = vmatpush.msrb.mxu0 %v5080_v37  ;;  %v953_v43 = vand.u32 4294901760, %v952_v13  ;;  %v971_v49 = vand.u32 4294901760, %v970_v10  ;;  %v5243_v10 = vsub.f32 %v207_v32, %v5210_v8 }
  0x7d   :  { %859 = vmatpush.msra.mxu2 %v694_v20  ;;  %784 = vmatpush.msra.mxu1 %v4893_v36  ;;  %v5152_v20 = vsub.f32 %v123_v23, %v5127_v16  ;;  %v5159_v36 = vand.u32 4294901760, %v111_v3  ;;  %v947_v0 = vand.u32 4294901760, %v946_v44  ;;  %v964_v46 = vsub.f32 %v5125_v60, %v7663_v27  ;;  %v187_v27 = vld [vmem:[#allocation5 + $0x348] sm:$0xff] }
  0x7e   :  { %1101 = vmatpush.msrb.mxu3 %v5087_v55  ;;  %905 = vmatpush.msrb.mxu0 %v5087_v55  ;;  %v959_v45 = vand.u32 4294901760, %v958_v22  ;;  %v982_v12 = vsub.f32 %v5167_v33, %v7659_v21  ;;  %v5219_v23 = vand.u32 4294901760, %v95_v19  ;;  %v5224_v44 = vand.u32 4294901760, %v203_v25  ;;  %7859 = vst [vmem:[#allocation18_spill] sm:$0xff] %v5243_v10 }
  0x7f   :  { %1046 = vmatpush.msrb.mxu2 %v5095_v63  ;;  %786 = vmatpush.msra.mxu1 %v4906_v61  ;;  %v5172_v61 = vand.u32 4294901760, %v107_v5  ;;  %v7660_v56 = vand.u32 4294901760, %v5152_v20  ;;  %v5186_v7 = vsub.f32 %v111_v3, %v5159_v36  ;;  %v965_v17 = vand.u32 4294901760, %v964_v46  ;;  %v199_v3 = vld [vmem:[#allocation5 + $0x3a8] sm:$0xff] }
  0x80   :  { %861 = vmatmul.f32.vlgmr.msra.gmra.mxu2 %v4990_v15  ;;  %907 = vmatpush.msrb.mxu0 %v5097_v39  ;;  %7856 = vst [vmem:[#allocation16_spill] sm:$0xff] %v5219_v23  ;;  %v5233_v22 = vand.u32 4294901760, %v91_v53  ;;  %v5240_v46 = vand.u32 4294901760, %v87_v54 }
  0x81   :  { %1049 = vmatpush.msrb.mxu2 %v5105_v1  ;;  %1103 = vmatpush.msrb.mxu3 %v5097_v39  ;;  %v5198_v11 = vsub.f32 %v107_v5, %v5172_v61  ;;  %v976_v48 = vsub.f32 %v5152_v20, %v7660_v56  ;;  %v7658_v38 = vand.u32 4294901760, %v5186_v7  ;;  %v988_v5 = vsub.f32 %v5180_v31, %v7657_v18 }
  0x82   :  { %898 = vmatmul.f32.vlgmr.msra.gmra.mxu3 %v4990_v15  ;;  %909 = vmatpush.msrb.mxu0 %v5107_v35  ;;  %7857 = vst [vmem:[#allocation20_spill] sm:$0xff] %v5233_v22  ;;  %v5250_v18 = vand.u32 4294901760, %v199_v3  ;;  %v5264_v21 = vsub.f32 %v91_v53, %v5233_v22 }
  0x83   :  { %1052 = vmatpush.msrb.mxu2 %v5115_v50  ;;  %1105 = vmatpush.msrb.mxu3 %v5107_v35  ;;  %v7662_v2 = vand.u32 4294901760, %v5198_v11  ;;  %v977_v13 = vand.u32 4294901760, %v976_v48  ;;  %7858 = vst [vmem:[#allocation17_spill] sm:$0xff] %v5240_v46  ;;  %v7667_v48 = vand.u32 4294901760, %v5217_v57 }
  0x84   :  { %788 = vmatpush.msra.mxu1 %v4919_v26  ;;  %911 = vmatpush.msrb.mxu0 %v5117_v24  ;;  %v99_v26 = vld [vmem:[#allocation5 + $0x88] sm:$0xff]  ;;  %v5281_v62 = vsub.f32 %v199_v3, %v5250_v18 }
  0x85   :  { %792 = vmatmul.f32.vlgmr.msra.gmra.mxu1 %v5013_v52  ;;  %1055 = vmatpush.msrb.mxu2 %v5125_v60  ;;  %v5204_v6 = vand.u32 4294901760, %v99_v26  ;;  %v1000_v32 = vsub.f32 %v5198_v11, %v7662_v2  ;;  %v5272_v2 = vsub.f32 %v87_v54, %v5240_v46  ;;  %v1006_v53 = vsub.f32 %v5217_v57, %v7667_v48 }
  0x86   :  { %948 = vmatpush.msrb.mxu1 %v947_v0  ;;  %1107 = vmatpush.msrb.mxu3 %v5117_v24  ;;  %7862 = vst [vmem:[#allocation28_spill] sm:$0xff] %v5281_v62 }
  0x87   :  { %913 = vmatpush.msrb.mxu0 %v5127_v16  ;;  %1058 = vmatpush.msrb.mxu2 %v5139_v30  ;;  %v5231_v0 = vsub.f32 %v99_v26, %v5204_v6  ;;  %v983_v26 = vand.u32 4294901760, %v982_v12  ;;  %v191_v12 = vld [vmem:[#allocation5 + $0x368] sm:$0xff]  ;;  %v1001_v54 = vand.u32 4294901760, %v1000_v32 }
  0x88   :  { %954 = vmatpush.msrb.mxu1 %v953_v43  ;;  %1109 = vmatpush.msrb.mxu3 %v5127_v16  ;;  %v994_v43 = vsub.f32 %v5186_v7, %v7658_v38  ;;  %v5260_v38 = vand.u32 4294901760, %v195_v28  ;;  %v5283_v59 = vand.u32 4294901760, %v191_v12  ;;  %v179_v32 = vld [vmem:[#allocation5 + $0x308] sm:$0xff] }
  0x89   :  { %915 = vmatpush.msrb.mxu0 %v5141_v47  ;;  %1061 = vmatpush.msrb.mxu2 %v5152_v20  ;;  %v7670_v29 = vand.u32 4294901760, %v5231_v0 }
  0x8a   :  { %960 = vmatpush.msrb.mxu1 %v959_v45  ;;  %1111 = vmatpush.msrb.mxu3 %v5141_v47  ;;  %v83_v45 = vld [vmem:[#allocation5 + $0x8] sm:$0xff]  ;;  %v5289_v14 = vsub.f32 %v195_v28, %v5260_v38  ;;  %v7864_v28 = vand.u32 4294901760, %v5243_v10  ;;  %v5315_v15 = vsub.f32 %v191_v12, %v5283_v59  ;;  %v7867_v12 = vand.u32 4294901760, %v5264_v21 }
  0x8b   :  { %917 = vmatpush.msrb.mxu0 %v5154_v58  ;;  %1064 = vmatpush.msrb.mxu2 %v5167_v33  ;;  %v5266_v56 = vand.u32 4294901760, %v83_v45  ;;  %v1012_v3 = vsub.f32 %v5231_v0, %v7670_v29 }
  0x8c   :  { %966 = vmatpush.msrb.mxu1 %v965_v17  ;;  %1113 = vmatpush.msrb.mxu3 %v5154_v58  ;;  %v5247_v17 = vsub.f32 %v95_v19, %v5219_v23  ;;  %v989_v19 = vand.u32 4294901760, %v988_v5  ;;  %7863 = vst [vmem:[#allocation29_spill] sm:$0xff] %v5289_v14  ;;  %v1024_v40 = vsub.f32 %v5264_v21, %v7867_v12 }
  0x8d   :  { %919 = vmatpush.msrb.mxu0 %v5159_v36  ;;  %1067 = vmatpush.msrb.mxu2 %v5180_v31  ;;  %7861 = vst [vmem:[#allocation27_spill] sm:$0xff] %v5266_v56  ;;  %v5296_v48 = vsub.f32 %v83_v45, %v5266_v56  ;;  %v1007_v45 = vand.u32 4294901760, %v1006_v53  ;;  %v5323_v53 = vand.u32 4294901760, %v179_v32 }
  0x8e   :  { %972 = vmatpush.msrb.mxu1 %v971_v49  ;;  %1115 = vmatpush.msrb.mxu3 %v5159_v36  ;;  %v5258_v49 = vsub.f32 %v203_v25, %v5224_v44  ;;  %v995_v25 = vand.u32 4294901760, %v994_v43  ;;  %v183_v43 = vld [vmem:[#allocation5 + $0x328] sm:$0xff]  ;;  %v7865_v29 = vand.u32 4294901760, %v5247_v17 }
  0x8f   :  { %921 = vmatpush.msrb.mxu0 %v5172_v61  ;;  %1070 = vmatpush.msrb.mxu2 %v5186_v7  ;;  %v5307_v52 = vand.u32 4294901760, %v183_v43 }
  0x90   :  { %7860 = vst [vmem:[#allocation26_spill] sm:$0xff] %v5258_v49  ;;  %978 = vmatpush.msrb.mxu1 %v977_v13  ;;  %1117 = vmatpush.msrb.mxu3 %v5172_v61  ;;  %v5299_v13 = vand.u32 4294901760, %v187_v27  ;;  %v1018_v5 = vsub.f32 %v5247_v17, %v7865_v29  ;;  %v1013_v29 = vand.u32 4294901760, %v1012_v3 }
  0x91   :  { %923 = vmatpush.msrb.mxu0 %v5192_v41  ;;  %1073 = vmatpush.msrb.mxu2 %v5198_v11  ;;  %v5339_v3 = vsub.f32 %v183_v43, %v5307_v52  ;;  %v7870_v43 = vand.u32 4294901760, %v5289_v14 }
  0x92   :  { %984 = vmatpush.msrb.mxu1 %v983_v26  ;;  %1119 = vmatpush.msrb.mxu3 %v5192_v41  ;;  %v5331_v9 = vsub.f32 %v187_v27, %v5299_v13  ;;  %v7868_v26 = vand.u32 4294901760, %v5272_v2  ;;  %v1019_v12 = vand.u32 4294901760, %v1018_v5  ;;  %v7869_v27 = vand.u32 4294901760, %v5281_v62  ;;  %v167_v5 = vld [vmem:[#allocation5 + $0x2a8] sm:$0xff] }
  0x93   :  { %925 = vmatpush.msrb.mxu0 %v5204_v6  ;;  %1076 = vmatpush.msrb.mxu2 %v5217_v57 }
  0x94   :  { %990 = vmatpush.msrb.mxu1 %v989_v19  ;;  %1121 = vmatpush.msrb.mxu3 %v5204_v6  ;;  %v1287_v19 = vsub.f32 %v5243_v10, %v7864_v28  ;;  %v7866_v28 = vand.u32 4294901760, %v5258_v49  ;;  %v1299_v4 = vsub.f32 %v5281_v62, %v7869_v27  ;;  %v1025_v27 = vand.u32 4294901760, %v1024_v40 }
  0x95   :  { %927 = vmatpush.msrb.mxu0 %v5219_v23  ;;  %1079 = vmatpush.msrb.mxu2 %v5231_v0 }
  0x96   :  { %996 = vmatpush.msrb.mxu1 %v995_v25  ;;  %1123 = vmatpush.msrb.mxu3 %v5219_v23  ;;  %v1293_v25 = vsub.f32 %v5258_v49, %v7866_v28  ;;  %v1288_v28 = vand.u32 4294901760, %v1287_v19  ;;  %v5346_v23 = vand.u32 4294901760, %v175_v42  ;;  %v1305_v19 = vsub.f32 %v5289_v14, %v7870_v43  ;;  %v163_v14 = vld [vmem:[#allocation5 + $0x288] sm:$0xff] }
  0x97   :  { %929 = vmatpush.msrb.mxu0 %v5233_v22  ;;  %1082 = vmatpush.msrb.mxu2 %v5247_v17  ;;  %v7871_v49 = vand.u32 4294901760, %v5296_v48  ;;  %v1300_v40 = vand.u32 4294901760, %v1299_v4 }
  0x98   :  { %1002 = vmatpush.msrb.mxu1 %v1001_v54  ;;  %1125 = vmatpush.msrb.mxu3 %v5233_v22  ;;  %v1030_v54 = vsub.f32 %v5272_v2, %v7868_v26  ;;  %v171_v22 = vld [vmem:[#allocation5 + $0x2c8] sm:$0xff]  ;;  %v1294_v26 = vand.u32 4294901760, %v1293_v25  ;;  %v7872_v25 = vand.u32 4294901760, %v5095_v63  ;;  %v5371_v62 = vsub.f32 %v175_v42, %v5346_v23 }
  0x99   :  { %931 = vmatpush.msrb.mxu0 %v5240_v46  ;;  %1085 = vmatpush.msrb.mxu2 %v5264_v21  ;;  %v5361_v10 = vand.u32 4294901760, %v171_v22  ;;  %v7874_v63 = vand.u32 4294901760, %v5105_v1  ;;  %v7876_v1 = vand.u32 4294901760, %v5115_v50  ;;  %v7878_v50 = vand.u32 4294901760, %v5125_v60 }
  0x9a   :  { %1008 = vmatpush.msrb.mxu1 %v1007_v45  ;;  %1127 = vmatpush.msrb.mxu3 %v5240_v46  ;;  %v5354_v45 = vsub.f32 %v179_v32, %v5323_v53  ;;  %v1036_v46 = vsub.f32 %v5296_v48, %v7871_v49  ;;  %v1031_v43 = vand.u32 4294901760, %v1030_v54  ;;  %v5385_v32 = vand.u32 4294901760, %v163_v14 }
  0x9b   :  { %933 = vmatpush.msrb.mxu0 %v5266_v56  ;;  %1088 = vmatpush.msrb.mxu2 %v5272_v2  ;;  %v5383_v42 = vsub.f32 %v171_v22, %v5361_v10  ;;  %v7879_v60 = vand.u32 4294901760, %v5139_v30  ;;  %v7881_v30 = vand.u32 4294901760, %v5152_v20  ;;  %v7882_v20 = vand.u32 4294901760, %v5167_v33 }
  0x9c   :  { %1014 = vmatpush.msrb.mxu1 %v1013_v29  ;;  %1129 = vmatpush.msrb.mxu3 %v5266_v56  ;;  %v7873_v29 = vand.u32 4294901760, %v5315_v15  ;;  %v5373_v56 = vand.u32 4294901760, %v167_v5  ;;  %v7693_v54 = vand.u32 4294901760, %v5354_v45  ;;  %v1037_v4 = vand.u32 4294901760, %v1036_v46 }
  0x9d   :  { %1140 = vmatpush.msra.mxu0 %v7872_v25  ;;  %1091 = vmatpush.msrb.mxu2 %v5296_v48  ;;  %v7875_v25 = vand.u32 4294901760, %v5331_v9 }
  0x9e   :  { %1289 = vmatpush.msra.mxu3 %v1288_v28  ;;  %1020 = vmatpush.msrb.mxu1 %v1019_v12  ;;  %v1311_v49 = vsub.f32 %v5315_v15, %v7873_v29  ;;  %v1306_v28 = vand.u32 4294901760, %v1305_v19  ;;  %v159_v12 = vld [vmem:[#allocation5 + $0x268] sm:$0xff]  ;;  %v7877_v19 = vand.u32 4294901760, %v5339_v3  ;;  %v5395_v22 = vsub.f32 %v167_v5, %v5373_v56 }
  0x9f   :  { %1144 = vmatpush.msra.mxu0 %v7874_v63  ;;  %1244 = vmatpush.msra.mxu2 %v5210_v8  ;;  %v1317_v29 = vsub.f32 %v5331_v9, %v7875_v25  ;;  %v5397_v25 = vand.u32 4294901760, %v159_v12  ;;  %v5407_v5 = vsub.f32 %v163_v14, %v5385_v32  ;;  %v147_v63 = vld [vmem:[#allocation5 + $0x208] sm:$0xff] }
  0xa0   :  { %1295 = vmatpush.msra.mxu3 %v1294_v26  ;;  %1026 = vmatpush.msrb.mxu1 %v1025_v27  ;;  %v1323_v26 = vsub.f32 %v5339_v3, %v7877_v19  ;;  %v155_v27 = vld [vmem:[#allocation5 + $0x248] sm:$0xff]  ;;  %v1312_v46 = vand.u32 4294901760, %v1311_v49 }
  0xa1   :  { %1148 = vmatpush.msra.mxu0 %v7876_v1  ;;  %1246 = vmatpush.msra.mxu2 %v5224_v44  ;;  %v1329_v1 = vsub.f32 %v5354_v45, %v7693_v54  ;;  %v151_v19 = vld [vmem:[#allocation5 + $0x228] sm:$0xff]  ;;  %v5409_v49 = vand.u32 4294901760, %v155_v27  ;;  %v5420_v14 = vsub.f32 %v159_v12, %v5397_v25 }
  0xa2   :  { %1301 = vmatpush.msra.mxu3 %v1300_v40  ;;  %1032 = vmatpush.msrb.mxu1 %v1031_v43  ;;  %v1318_v43 = vand.u32 4294901760, %v1317_v29  ;;  %v1340_v40 = vand.u32 4294901760, %v5383_v42  ;;  %v1346_v29 = vand.u32 4294901760, %v5395_v22  ;;  %v5422_v54 = vand.u32 4294901760, %v151_v19 }
  0xa3   :  { %1152 = vmatpush.msra.mxu0 %v7878_v50  ;;  %1248 = vmatpush.msra.mxu2 %v5250_v18  ;;  %v1324_v50 = vand.u32 4294901760, %v1323_v26  ;;  %v5433_v12 = vsub.f32 %v155_v27, %v5409_v49 }
  0xa4   :  { %1307 = vmatpush.msra.mxu3 %v1306_v28  ;;  %1038 = vmatpush.msrb.mxu1 %v1037_v4  ;;  %v7880_v28 = vand.u32 4294901760, %v5371_v62  ;;  %v1341_v26 = vsub.f32 %v5383_v42, %v1340_v40  ;;  %v5446_v27 = vsub.f32 %v151_v19, %v5422_v54  ;;  %v7884_v19 = vand.u32 4294901760, %v5186_v7 }
  0xa5   :  { %1156 = vmatpush.msra.mxu0 %v7879_v60  ;;  %1250 = vmatpush.msra.mxu2 %v5260_v38  ;;  %v5435_v60 = vand.u32 4294901760, %v147_v63 }
  0xa6   :  { %1207 = vmatpush.msra.mxu1 %v5080_v37  ;;  %1313 = vmatpush.msra.mxu3 %v1312_v46  ;;  %v1335_v4 = vsub.f32 %v5371_v62, %v7880_v28  ;;  %v1330_v37 = vand.u32 4294901760, %v1329_v1  ;;  %v1352_v46 = vand.u32 4294901760, %v5407_v5  ;;  %v1347_v1 = vsub.f32 %v5395_v22, %v1346_v29 }
  0xa7   :  { %1160 = vmatpush.msra.mxu0 %v7881_v30  ;;  %1252 = vmatpush.msra.mxu2 %v5283_v59  ;;  %v7883_v28 = vand.u32 4294901760, %v5180_v31  ;;  %v1370_v30 = vand.u32 4294901760, %v5446_v27 }
  0xa8   :  { %1209 = vmatpush.msra.mxu1 %v5087_v55  ;;  %1319 = vmatpush.msra.mxu3 %v1318_v43  ;;  %v1336_v55 = vand.u32 4294901760, %v1335_v4  ;;  %v1358_v43 = vand.u32 4294901760, %v5420_v14  ;;  %v1353_v33 = vsub.f32 %v5407_v5, %v1352_v46  ;;  %v5457_v4 = vsub.f32 %v147_v63, %v5435_v60 }
  0xa9   :  { %1164 = vmatpush.msra.mxu0 %v7882_v20  ;;  %1254 = vmatpush.msra.mxu2 %v5299_v13  ;;  %v7887_v20 = vand.u32 4294901760, %v5231_v0 }
  0xaa   :  { %1211 = vmatpush.msra.mxu1 %v5097_v39  ;;  %1325 = vmatpush.msra.mxu3 %v1324_v50  ;;  %v1342_v39 = vand.u32 4294901760, %v1341_v26  ;;  %v1364_v50 = vand.u32 4294901760, %v5433_v12  ;;  %v1359_v31 = vsub.f32 %v5420_v14, %v1358_v43  ;;  %v1354_v7 = vand.u32 4294901760, %v1353_v33  ;;  %v7900_v33 = vld [vmem:[#allocation17_spill] sm:$0xff] }
  0xab   :  { %1168 = vmatpush.msra.mxu0 %v7883_v28  ;;  %1256 = vmatpush.msra.mxu2 %v5307_v52  ;;  %v1376_v63 = vand.u32 4294901760, %v5457_v4  ;;  %v7886_v26 = vand.u32 4294901760, %v5217_v57  ;;  %v7890_v28 = vand.u32 4294901760, %v5272_v2  ;;  %v7895_v2 = vld [vmem:[#allocation26_spill] sm:$0xff] }
  0xac   :  { %1213 = vmatpush.msra.mxu1 %v5107_v35  ;;  %1331 = vmatpush.msra.mxu3 %v1330_v37  ;;  %v1348_v35 = vand.u32 4294901760, %v1347_v1  ;;  %v7885_v37 = vand.u32 4294901760, %v5198_v11  ;;  %v1360_v11 = vand.u32 4294901760, %v1359_v31  ;;  %v7889_v1 = vand.u32 4294901760, %v5264_v21  ;;  %v7894_v21 = vld [vmem:[#allocation22_spill] sm:$0xff]  ;;  %v7903_v31 = vld [vmem:[#allocation27_spill] sm:$0xff] }
  0xad   :  { %1172 = vmatpush.msra.mxu0 %v7884_v19  ;;  %1258 = vmatpush.msra.mxu2 %v5323_v53  ;;  %v7901_v19 = vld [vmem:[#allocation29_spill] sm:$0xff] }
  0xae   :  { %1215 = vmatpush.msra.mxu1 %v5117_v24  ;;  %1337 = vmatpush.msra.mxu3 %v1336_v55  ;;  %v1365_v24 = vsub.f32 %v5433_v12, %v1364_v50  ;;  %v7888_v55 = vand.u32 4294901760, %v5247_v17  ;;  %v7897_v17 = vld [vmem:[#allocation20_spill] sm:$0xff] }
  0xaf   :  { %1176 = vmatpush.msra.mxu0 %v7885_v37  ;;  %1260 = vmatpush.msra.mxu2 %v5346_v23  ;;  %v7904_v37 = vld [vmem:[#allocation21_spill] sm:$0xff] }
  0xb0   :  { %1217 = vmatpush.msra.mxu1 %v5127_v16  ;;  %1343 = vmatpush.msra.mxu3 %v1342_v39  ;;  %v1371_v16 = vsub.f32 %v5446_v27, %v1370_v30  ;;  %v1366_v57 = vand.u32 4294901760, %v1365_v24  ;;  %v7899_v39 = vand.u32 4294901760, %v7895_v2  ;;  %v7906_v24 = vand.u32 4294901760, %v5315_v15 }
  0xb1   :  { %1180 = vmatpush.msra.mxu0 %v7886_v26  ;;  %1262 = vmatpush.msra.mxu2 %v5361_v10  ;;  %v7907_v26 = vld [vmem:[#allocation19_spill] sm:$0xff] }
  0xb2   :  { %1219 = vmatpush.msra.mxu1 %v5141_v47  ;;  %1349 = vmatpush.msra.mxu3 %v1348_v35  ;;  %v1377_v47 = vsub.f32 %v5457_v4, %v1376_v63  ;;  %v1372_v0 = vand.u32 4294901760, %v1371_v16 }
  0xb3   :  { %1184 = vmatpush.msra.mxu0 %v7887_v20  ;;  %1264 = vmatpush.msra.mxu2 %v5373_v56 }
  0xb4   :  { %1221 = vmatpush.msra.mxu1 %v5154_v58  ;;  %1355 = vmatpush.msra.mxu3 %v1354_v7  ;;  %v1378_v58 = vand.u32 4294901760, %v1377_v47  ;;  %v7905_v7 = vand.u32 4294901760, %v7901_v19 }
  0xb5   :  { %1188 = vmatpush.msra.mxu0 %v7888_v55  ;;  %1266 = vmatpush.msra.mxu2 %v5385_v32 }
  0xb6   :  { %1223 = vmatpush.msra.mxu1 %v5159_v36  ;;  %1361 = vmatpush.msra.mxu3 %v1360_v11  ;;  %v7891_v36 = vand.u32 4294901760, %v5296_v48  ;;  %v7898_v48 = vld [vmem:[#allocation28_spill] sm:$0xff]  ;;  %v7908_v11 = vand.u32 4294901760, %v5331_v9 }
  0xb7   :  { %1192 = vmatpush.msra.mxu0 %v7889_v1  ;;  %1268 = vmatpush.msra.mxu2 %v5397_v25  ;;  %v7902_v35 = vand.u32 4294901760, %v7898_v48 }
  0xb8   :  { %1225 = vmatpush.msra.mxu1 %v5172_v61  ;;  %1367 = vmatpush.msra.mxu3 %v1366_v57  ;;  %v7892_v61 = vld [vmem:[#allocation18_spill] sm:$0xff]  ;;  %v108_v57 = vld [vmem:[#allocation5 + $0xd0] sm:$0xff] }
  0xb9   :  { %1196 = vmatpush.msra.mxu0 %v7890_v28  ;;  %1270 = vmatpush.msra.mxu2 %v5409_v49 }
  0xba   :  { %1227 = vmatpush.msra.mxu1 %v5192_v41  ;;  %1373 = vmatpush.msra.mxu3 %v1372_v0  ;;  %v7893_v41 = vld [vmem:[#allocation16_spill] sm:$0xff] }
  0xbb   :  { %1200 = vmatpush.msra.mxu0 %v7891_v36  ;;  %1272 = vmatpush.msra.mxu2 %v5422_v54 }
  0xbc   :  { %1229 = vmatpush.msra.mxu1 %v5204_v6  ;;  %1379 = vmatpush.msra.mxu3 %v1378_v58  ;;  %v7896_v6 = vand.u32 4294901760, %v7892_v61  ;;  %v104_v58 = vld [vmem:[#allocation5 + $0xb0] sm:$0xff] }
  0xbd   :  { %939 = vmatmul.f32.vlgmr.msrb.gmra.mxu0 %v4996_v34  ;;  %1133 = vmatmul.f32.vlgmr.msrb.gmra.mxu3 %v4968_v51  ;;  %v164_v51 = vld [vmem:[#allocation5 + $0x290] sm:$0xff] }
  0xbe   :  { %1387 = vmatpush.msrb.mxu0 %v7892_v61  ;;  %1548 = vmatpush.msrb.mxu3 %v5210_v8 }
  0xbf   :  { %1231 = vmatpush.msra.mxu1 %v7893_v41  ;;  %1274 = vmatpush.msra.mxu2 %v5435_v60 }
  0xc0   :  { %1094 = vmatmul.f32.vlgmr.msrb.gmra.mxu2 %v7894_v21  ;;  %1390 = vmatpush.msrb.mxu0 %v7895_v2  ;;  %v7914_v2 = vld [vmem:[#allocation15_spill] sm:$0xff] }
  0xc1   :  { %1481 = vmatpush.msrb.mxu2 %v7896_v6  ;;  %1550 = vmatpush.msrb.mxu3 %v5224_v44 }
  0xc2   :  { %1233 = vmatpush.msra.mxu1 %v7897_v17  ;;  %1393 = vmatpush.msrb.mxu0 %v7898_v48 }
  0xc3   :  { %1485 = vmatpush.msrb.mxu2 %v7899_v39  ;;  %1552 = vmatpush.msrb.mxu3 %v5250_v18  ;;  %v5684_v39 = vand.u32 4294901760, %v104_v58 }
  0xc4   :  { %1235 = vmatpush.msra.mxu1 %v7900_v33  ;;  %1396 = vmatpush.msrb.mxu0 %v7901_v19  ;;  %v208_v19 = vld [vmem:[#allocation5 + $0x3f0] sm:$0xff] }
  0xc5   :  { %1489 = vmatpush.msrb.mxu2 %v7902_v35  ;;  %1554 = vmatpush.msrb.mxu3 %v5260_v38 }
  0xc6   :  { %1237 = vmatpush.msra.mxu1 %v7903_v31  ;;  %1399 = vmatpush.msrb.mxu0 %v5315_v15  ;;  %v7910_v15 = vand.u32 4294901760, %v5339_v3  ;;  %v96_v31 = vld [vmem:[#allocation5 + $0x70] sm:$0xff] }
  0xc7   :  { %1040 = vmatmul.f32.vlgmr.msrb.gmra.mxu1 %v7904_v37  ;;  %1493 = vmatpush.msrb.mxu2 %v7905_v7 }
  0xc8   :  { %1440 = vmatpush.msrb.mxu1 %v5210_v8  ;;  %1556 = vmatpush.msrb.mxu3 %v5283_v59  ;;  %v7909_v8 = vld [vmem:[#allocation24_spill] sm:$0xff] }
  0xc9   :  { %1402 = vmatpush.msrb.mxu0 %v5331_v9  ;;  %1497 = vmatpush.msrb.mxu2 %v7906_v24  ;;  %v7911_v9 = vand.u32 4294901760, %v5354_v45 }
  0xca   :  { %1442 = vmatpush.msrb.mxu1 %v5224_v44  ;;  %1558 = vmatpush.msrb.mxu3 %v5299_v13 }
  0xcb   :  { %1280 = vmatmul.f32.vlgmr.msra.gmra.mxu2 %v7907_v26  ;;  %1405 = vmatpush.msrb.mxu0 %v5339_v3  ;;  %v128_v3 = vld [vmem:[#allocation5 + $0x170] sm:$0xff] }
  0xcc   :  { %1444 = vmatpush.msrb.mxu1 %v5250_v18  ;;  %1501 = vmatpush.msrb.mxu2 %v7908_v11  ;;  %v7912_v18 = vand.u32 4294901760, %v5371_v62  ;;  %v176_v26 = vld [vmem:[#allocation5 + $0x2f0] sm:$0xff] }
  0xcd   :  { %1560 = vmatpush.msrb.mxu3 %v5307_v52  ;;  %1202 = vmatmul.f32.vlgmr.msra.gmra.mxu0 %v7904_v37 }
  0xce   :  { %1381 = vmatmul.f32.vlgmr.msra.gmra.mxu3 %v7909_v8  ;;  %1408 = vmatpush.msrb.mxu0 %v5354_v45 }
  0xcf   :  { %1446 = vmatpush.msrb.mxu1 %v5260_v38  ;;  %1505 = vmatpush.msrb.mxu2 %v7910_v15  ;;  %v144_v38 = vld [vmem:[#allocation5 + $0x1f0] sm:$0xff] }
  0xd0   :  { %1562 = vmatpush.msrb.mxu3 %v5323_v53  ;;  %1239 = vmatmul.f32.vlgmr.msra.gmra.mxu1 %v7904_v37 }
  0xd1   :  { %1411 = vmatpush.msrb.mxu0 %v5371_v62  ;;  %1448 = vmatpush.msrb.mxu1 %v5283_v59  ;;  %v140_v59 = vld [vmem:[#allocation5 + $0x1d0] sm:$0xff]  ;;  %v5572_v62 = vand.u32 4294901760, %v144_v38 }
  0xd2   :  { %1509 = vmatpush.msrb.mxu2 %v7911_v9  ;;  %1564 = vmatpush.msrb.mxu3 %v5346_v23  ;;  %v5579_v44 = vand.u32 4294901760, %v140_v59  ;;  %v204_v9 = vld [vmem:[#allocation5 + $0x3d0] sm:$0xff] }
  0xd3   :  { %1414 = vmatpush.msrb.mxu0 %v5383_v42  ;;  %1450 = vmatpush.msrb.mxu1 %v5299_v13  ;;  %v132_v13 = vld [vmem:[#allocation5 + $0x190] sm:$0xff] }
  0xd4   :  { %1513 = vmatpush.msrb.mxu2 %v7912_v18  ;;  %1566 = vmatpush.msrb.mxu3 %v5361_v10  ;;  %v5599_v45 = vand.u32 4294901760, %v132_v13  ;;  %v124_v42 = vld [vmem:[#allocation5 + $0x150] sm:$0xff] }
  0xd5   :  { %1417 = vmatpush.msrb.mxu0 %v5395_v22  ;;  %1452 = vmatpush.msrb.mxu1 %v5307_v52  ;;  %v136_v52 = vld [vmem:[#allocation5 + $0x1b0] sm:$0xff]  ;;  %v5609_v22 = vand.u32 4294901760, %v128_v3 }
  0xd6   :  { %1517 = vmatpush.msrb.mxu2 %v1340_v40  ;;  %1568 = vmatpush.msrb.mxu3 %v5373_v56 }
  0xd7   :  { %1420 = vmatpush.msrb.mxu0 %v5407_v5  ;;  %1454 = vmatpush.msrb.mxu1 %v5323_v53  ;;  %v5589_v53 = vand.u32 4294901760, %v136_v52  ;;  %v7913_v5 = vld [vmem:[#allocation25_spill] sm:$0xff] }
  0xd8   :  { %1521 = vmatpush.msrb.mxu2 %v1346_v29  ;;  %1570 = vmatpush.msrb.mxu3 %v5385_v32  ;;  %v120_v29 = vld [vmem:[#allocation5 + $0x130] sm:$0xff] }
  0xd9   :  { %1423 = vmatpush.msrb.mxu0 %v5420_v14  ;;  %1456 = vmatpush.msrb.mxu1 %v5346_v23  ;;  %v5587_v23 = vsub.f32 %v144_v38, %v5572_v62  ;;  %v5619_v14 = vand.u32 4294901760, %v124_v42  ;;  %v92_v38 = vld [vmem:[#allocation5 + $0x50] sm:$0xff] }
  0xda   :  { %1525 = vmatpush.msrb.mxu2 %v1352_v46  ;;  %1572 = vmatpush.msrb.mxu3 %v5397_v25 }
  0xdb   :  { %1426 = vmatpush.msrb.mxu0 %v5433_v12  ;;  %1458 = vmatpush.msrb.mxu1 %v5361_v10  ;;  %v5597_v10 = vsub.f32 %v140_v59, %v5579_v44  ;;  %v7703_v40 = vand.u32 4294901760, %v5587_v23  ;;  %v116_v12 = vld [vmem:[#allocation5 + $0x110] sm:$0xff]  ;;  %v5702_v59 = vand.u32 4294901760, %v208_v19 }
  0xdc   :  { %1529 = vmatpush.msrb.mxu2 %v1358_v43  ;;  %1574 = vmatpush.msrb.mxu3 %v5409_v49  ;;  %v5631_v43 = vsub.f32 %v128_v3, %v5609_v22  ;;  %v5646_v16 = vand.u32 4294901760, %v116_v12  ;;  %v5709_v3 = vsub.f32 %v104_v58, %v5684_v39  ;;  %v84_v58 = vld [vmem:[#allocation5 + $0x10] sm:$0xff] }
  0xdd   :  { %1429 = vmatpush.msrb.mxu0 %v5446_v27  ;;  %1460 = vmatpush.msrb.mxu1 %v5373_v56  ;;  %v5607_v56 = vsub.f32 %v136_v52, %v5589_v53  ;;  %v7702_v46 = vand.u32 4294901760, %v5597_v10  ;;  %v5633_v27 = vand.u32 4294901760, %v120_v29 }
  0xde   :  { %1533 = vmatpush.msrb.mxu2 %v1364_v50  ;;  %1576 = vmatpush.msrb.mxu3 %v5422_v54  ;;  %v7698_v1 = vand.u32 4294901760, %v5631_v43  ;;  %v5672_v61 = vsub.f32 %v116_v12, %v5646_v16 }
  0xdf   :  { %1432 = vmatpush.msrb.mxu0 %v5457_v4  ;;  %1462 = vmatpush.msrb.mxu1 %v5385_v32  ;;  %v5617_v32 = vsub.f32 %v132_v13, %v5599_v45  ;;  %v7701_v50 = vand.u32 4294901760, %v5607_v56  ;;  %v112_v4 = vld [vmem:[#allocation5 + $0xf0] sm:$0xff]  ;;  %v5659_v0 = vsub.f32 %v120_v29, %v5633_v27 }
  0xe0   :  { %1537 = vmatpush.msrb.mxu2 %v1370_v30  ;;  %1578 = vmatpush.msrb.mxu3 %v5435_v60  ;;  %v1634_v30 = vsub.f32 %v5597_v10, %v7702_v46  ;;  %v1652_v48 = vsub.f32 %v5631_v43, %v7698_v1  ;;  %v7694_v15 = vand.u32 4294901760, %v5672_v61  ;;  %v88_v29 = vld [vmem:[#allocation5 + $0x30] sm:$0xff] }
  0xe1   :  { %1435 = vmatmul.f32.vlgmr.msrb.gmra.mxu0 %v7913_v5  ;;  %1464 = vmatpush.msrb.mxu1 %v5397_v25  ;;  %v1628_v25 = vsub.f32 %v5587_v23, %v7703_v40  ;;  %v7700_v20 = vand.u32 4294901760, %v5617_v32  ;;  %v1640_v55 = vsub.f32 %v5607_v56, %v7701_v50  ;;  %v7696_v33 = vand.u32 4294901760, %v5659_v0 }
  0xe2   :  { %1781 = vmatpush.msra.mxu3 %v5572_v62  ;;  %1585 = vmatpush.msra.mxu0 %v5572_v62  ;;  %v1635_v28 = vand.u32 4294901760, %v1634_v30  ;;  %v1653_v52 = vand.u32 4294901760, %v1652_v48  ;;  %v196_v48 = vld [vmem:[#allocation5 + $0x390] sm:$0xff] }
  0xe3   :  { %1541 = vmatpush.msrb.mxu2 %v1376_v63  ;;  %1466 = vmatpush.msrb.mxu1 %v5409_v49  ;;  %v5644_v63 = vsub.f32 %v124_v42, %v5619_v14  ;;  %v5651_v49 = vand.u32 4294901760, %v112_v4  ;;  %v1629_v47 = vand.u32 4294901760, %v1628_v25  ;;  %v1646_v36 = vsub.f32 %v5617_v32, %v7700_v20  ;;  %v188_v20 = vld [vmem:[#allocation5 + $0x350] sm:$0xff] }
  0xe4   :  { %1783 = vmatpush.msra.mxu3 %v5579_v44  ;;  %1587 = vmatpush.msra.mxu0 %v5579_v44  ;;  %v1641_v17 = vand.u32 4294901760, %v1640_v55  ;;  %v1664_v13 = vsub.f32 %v5659_v0, %v7696_v33  ;;  %v5711_v42 = vand.u32 4294901760, %v96_v31  ;;  %v5716_v25 = vand.u32 4294901760, %v204_v9 }
  0xe5   :  { %1728 = vmatpush.msra.mxu2 %v5587_v23  ;;  %1468 = vmatpush.msrb.mxu1 %v5422_v54  ;;  %v5664_v54 = vand.u32 4294901760, %v108_v57  ;;  %v7697_v41 = vand.u32 4294901760, %v5644_v63  ;;  %v5678_v6 = vsub.f32 %v112_v4, %v5651_v49  ;;  %v1647_v7 = vand.u32 4294901760, %v1646_v36  ;;  %v200_v4 = vld [vmem:[#allocation5 + $0x3b0] sm:$0xff] }
  0xe6   :  { %1543 = vmatmul.f32.vlgmr.msrb.gmra.mxu2 %v7909_v8  ;;  %1589 = vmatpush.msra.mxu0 %v5589_v53  ;;  %7915 = vst [vmem:[#allocation18_spill] sm:$0xff] %v5711_v42  ;;  %v5725_v55 = vand.u32 4294901760, %v92_v38  ;;  %v5732_v36 = vand.u32 4294901760, %v88_v29  ;;  %v5759_v1 = vand.u32 4294901760, %v196_v48 }
  0xe7   :  { %1731 = vmatpush.msra.mxu2 %v5597_v10  ;;  %1785 = vmatpush.msra.mxu3 %v5589_v53  ;;  %v5690_v35 = vsub.f32 %v108_v57, %v5664_v54  ;;  %v1658_v24 = vsub.f32 %v5644_v63, %v7697_v41  ;;  %v7695_v18 = vand.u32 4294901760, %v5678_v6  ;;  %v1670_v57 = vsub.f32 %v5672_v61, %v7694_v15 }
  0xe8   :  { %1580 = vmatmul.f32.vlgmr.msrb.gmra.mxu3 %v7909_v8  ;;  %1591 = vmatpush.msra.mxu0 %v5599_v45  ;;  %7916 = vst [vmem:[#allocation16_spill] sm:$0xff] %v5725_v55  ;;  %v5742_v15 = vand.u32 4294901760, %v200_v4  ;;  %v5756_v33 = vsub.f32 %v92_v38, %v5725_v55 }
  0xe9   :  { %1734 = vmatpush.msra.mxu2 %v5607_v56  ;;  %1787 = vmatpush.msra.mxu3 %v5599_v45  ;;  %v7699_v12 = vand.u32 4294901760, %v5690_v35  ;;  %v1659_v30 = vand.u32 4294901760, %v1658_v24  ;;  %7917 = vst [vmem:[#allocation26_spill] sm:$0xff] %v5732_v36  ;;  %v7704_v24 = vand.u32 4294901760, %v5709_v3 }
  0xea   :  { %1470 = vmatpush.msrb.mxu1 %v5435_v60  ;;  %1593 = vmatpush.msra.mxu0 %v5609_v22  ;;  %v100_v60 = vld [vmem:[#allocation5 + $0x90] sm:$0xff]  ;;  %v5773_v50 = vsub.f32 %v200_v4, %v5742_v15 }
  0xeb   :  { %1474 = vmatmul.f32.vlgmr.msrb.gmra.mxu1 %v7914_v2  ;;  %1737 = vmatpush.msra.mxu2 %v5617_v32  ;;  %v5696_v11 = vand.u32 4294901760, %v100_v60  ;;  %v1688_v38 = vsub.f32 %v5709_v3, %v7704_v24 }
  0xec   :  { %1630 = vmatpush.msra.mxu1 %v1629_v47  ;;  %1789 = vmatpush.msra.mxu3 %v5609_v22  ;;  %7921 = vst [vmem:[#allocation29_spill] sm:$0xff] %v5773_v50 }
  0xed   :  { %1595 = vmatpush.msra.mxu0 %v5619_v14  ;;  %1740 = vmatpush.msra.mxu2 %v5631_v43  ;;  %v5723_v47 = vsub.f32 %v100_v60, %v5696_v11  ;;  %v1665_v60 = vand.u32 4294901760, %v1664_v13  ;;  %v192_v13 = vld [vmem:[#allocation5 + $0x370] sm:$0xff] }
  0xee   :  { %1636 = vmatpush.msra.mxu1 %v1635_v28  ;;  %1791 = vmatpush.msra.mxu3 %v5619_v14  ;;  %v1676_v28 = vsub.f32 %v5678_v6, %v7695_v18  ;;  %v5749_v18 = vand.u32 4294901760, %v84_v58  ;;  %v5775_v46 = vand.u32 4294901760, %v192_v13 }
  0xef   :  { %1597 = vmatpush.msra.mxu0 %v5633_v27  ;;  %1743 = vmatpush.msra.mxu2 %v5644_v63  ;;  %v7705_v41 = vand.u32 4294901760, %v5723_v47 }
  0xf0   :  { %1642 = vmatpush.msra.mxu1 %v1641_v17  ;;  %1793 = vmatpush.msra.mxu3 %v5633_v27  ;;  %v5735_v17 = vsub.f32 %v208_v19, %v5702_v59  ;;  %v1682_v19 = vsub.f32 %v5690_v35, %v7699_v12  ;;  %7919 = vst [vmem:[#allocation28_spill] sm:$0xff] %v5749_v18  ;;  %v1677_v12 = vand.u32 4294901760, %v1676_v28  ;;  %v184_v28 = vld [vmem:[#allocation5 + $0x330] sm:$0xff] }
  0xf1   :  { %1599 = vmatpush.msra.mxu0 %v5646_v16  ;;  %1746 = vmatpush.msra.mxu2 %v5659_v0  ;;  %v1694_v4 = vsub.f32 %v5723_v47, %v7705_v41  ;;  %v5799_v2 = vand.u32 4294901760, %v184_v28  ;;  %v5807_v8 = vsub.f32 %v192_v13, %v5775_v46  ;;  %v7925_v13 = vand.u32 4294901760, %v5756_v33 }
  0xf2   :  { %1648 = vmatpush.msra.mxu1 %v1647_v7  ;;  %1795 = vmatpush.msra.mxu3 %v5646_v16  ;;  %7918 = vst [vmem:[#allocation20_spill] sm:$0xff] %v5735_v17  ;;  %v5739_v7 = vsub.f32 %v96_v31, %v5711_v42  ;;  %v1671_v31 = vand.u32 4294901760, %v1670_v57  ;;  %v5789_v57 = vsub.f32 %v196_v48, %v5759_v1  ;;  %v1689_v48 = vand.u32 4294901760, %v1688_v38 }
  0xf3   :  { %1601 = vmatpush.msra.mxu0 %v5651_v49  ;;  %1749 = vmatpush.msra.mxu2 %v5672_v61  ;;  %v1706_v5 = vsub.f32 %v5756_v33, %v7925_v13 }
  0xf4   :  { %1654 = vmatpush.msra.mxu1 %v1653_v52  ;;  %1797 = vmatpush.msra.mxu3 %v5651_v49  ;;  %v5752_v52 = vsub.f32 %v204_v9, %v5716_v25  ;;  %v5764_v9 = vsub.f32 %v88_v29, %v5732_v36  ;;  %v1683_v29 = vand.u32 4294901760, %v1682_v19  ;;  %v180_v19 = vld [vmem:[#allocation5 + $0x310] sm:$0xff]  ;;  %v7923_v41 = vand.u32 4294901760, %v5739_v7 }
  0xf5   :  { %1603 = vmatpush.msra.mxu0 %v5664_v54  ;;  %1752 = vmatpush.msra.mxu2 %v5678_v6  ;;  %v5815_v38 = vand.u32 4294901760, %v180_v19 }
  0xf6   :  { %7920 = vst [vmem:[#allocation17_spill] sm:$0xff] %v5752_v52  ;;  %1660 = vmatpush.msra.mxu1 %v1659_v30  ;;  %1799 = vmatpush.msra.mxu3 %v5664_v54  ;;  %v5791_v30 = vand.u32 4294901760, %v188_v20  ;;  %v1700_v24 = vsub.f32 %v5739_v7, %v7923_v41  ;;  %v1695_v41 = vand.u32 4294901760, %v1694_v4  ;;  %v7926_v40 = vand.u32 4294901760, %v5764_v9 }
  0xf7   :  { %1605 = vmatpush.msra.mxu0 %v5684_v39  ;;  %1755 = vmatpush.msra.mxu2 %v5690_v35  ;;  %v5831_v4 = vsub.f32 %v184_v28, %v5799_v2 }
  0xf8   :  { %1666 = vmatpush.msra.mxu1 %v1665_v60  ;;  %1801 = vmatpush.msra.mxu3 %v5684_v39  ;;  %v5780_v60 = vsub.f32 %v84_v58, %v5749_v18  ;;  %v7922_v58 = vand.u32 4294901760, %v5735_v17  ;;  %v5823_v21 = vsub.f32 %v188_v20, %v5791_v30  ;;  %v1701_v13 = vand.u32 4294901760, %v1700_v24  ;;  %v168_v24 = vld [vmem:[#allocation5 + $0x2b0] sm:$0xff] }
  0xf9   :  { %1607 = vmatpush.msra.mxu0 %v5696_v11  ;;  %1758 = vmatpush.msra.mxu2 %v5709_v3  ;;  %v7927_v20 = vand.u32 4294901760, %v5773_v50 }
  0xfa   :  { %1672 = vmatpush.msra.mxu1 %v1671_v31  ;;  %1803 = vmatpush.msra.mxu3 %v5696_v11  ;;  %v1969_v31 = vsub.f32 %v5735_v17, %v7922_v58  ;;  %v7924_v58 = vand.u32 4294901760, %v5752_v52  ;;  %v7928_v28 = vand.u32 4294901760, %v5780_v60 }
  0xfb   :  { %1609 = vmatpush.msra.mxu0 %v5711_v42  ;;  %1761 = vmatpush.msra.mxu2 %v5723_v47  ;;  %v1981_v37 = vsub.f32 %v5773_v50, %v7927_v20  ;;  %v1707_v20 = vand.u32 4294901760, %v1706_v5 }
  0xfc   :  { %1678 = vmatpush.msra.mxu1 %v1677_v12  ;;  %1805 = vmatpush.msra.mxu3 %v5711_v42  ;;  %v1975_v12 = vsub.f32 %v5752_v52, %v7924_v58  ;;  %v1970_v58 = vand.u32 4294901760, %v1969_v31  ;;  %v5838_v42 = vand.u32 4294901760, %v176_v26  ;;  %v1718_v31 = vsub.f32 %v5780_v60, %v7928_v28 }
  0xfd   :  { %1611 = vmatpush.msra.mxu0 %v5725_v55  ;;  %1764 = vmatpush.msra.mxu2 %v5739_v7  ;;  %v7929_v52 = vand.u32 4294901760, %v5789_v57  ;;  %v1982_v5 = vand.u32 4294901760, %v1981_v37 }
  0xfe   :  { %1684 = vmatpush.msra.mxu1 %v1683_v29  ;;  %1807 = vmatpush.msra.mxu3 %v5725_v55  ;;  %v1712_v29 = vsub.f32 %v5764_v9, %v7926_v40  ;;  %v172_v55 = vld [vmem:[#allocation5 + $0x2d0] sm:$0xff]  ;;  %v1976_v40 = vand.u32 4294901760, %v1975_v12  ;;  %v7930_v12 = vand.u32 4294901760, %v5587_v23  ;;  %v5863_v50 = vsub.f32 %v176_v26, %v5838_v42 }
  0xff   :  { %1613 = vmatpush.msra.mxu0 %v5732_v36  ;;  %1767 = vmatpush.msra.mxu2 %v5756_v33  ;;  %v5853_v17 = vand.u32 4294901760, %v172_v55  ;;  %v7932_v23 = vand.u32 4294901760, %v5597_v10  ;;  %v7934_v10 = vand.u32 4294901760, %v5607_v56  ;;  %v7936_v56 = vand.u32 4294901760, %v5617_v32 }
 0x100   :  { %1690 = vmatpush.msra.mxu1 %v1689_v48  ;;  %1809 = vmatpush.msra.mxu3 %v5732_v36  ;;  %v5846_v48 = vsub.f32 %v180_v19, %v5815_v38  ;;  %v1987_v36 = vsub.f32 %v5789_v57, %v7929_v52  ;;  %v1713_v28 = vand.u32 4294901760, %v1712_v29  ;;  %v5877_v19 = vand.u32 4294901760, %v164_v51 }
 0x101   :  { %1615 = vmatpush.msra.mxu0 %v5749_v18  ;;  %1770 = vmatpush.msra.mxu2 %v5764_v9  ;;  %v5875_v26 = vsub.f32 %v172_v55, %v5853_v17  ;;  %v7937_v32 = vand.u32 4294901760, %v5631_v43  ;;  %v7939_v43 = vand.u32 4294901760, %v5644_v63  ;;  %v7940_v63 = vand.u32 4294901760, %v5659_v0 }
 0x102   :  { %1696 = vmatpush.msra.mxu1 %v1695_v41  ;;  %1811 = vmatpush.msra.mxu3 %v5749_v18  ;;  %v7931_v41 = vand.u32 4294901760, %v5807_v8  ;;  %v5865_v18 = vand.u32 4294901760, %v168_v24  ;;  %v7720_v29 = vand.u32 4294901760, %v5846_v48  ;;  %v1988_v37 = vand.u32 4294901760, %v1987_v36 }
 0x103   :  { %1822 = vmatpush.msrb.mxu0 %v7930_v12  ;;  %1773 = vmatpush.msra.mxu2 %v5780_v60  ;;  %v7933_v12 = vand.u32 4294901760, %v5823_v21 }
 0x104   :  { %1971 = vmatpush.msrb.mxu3 %v1970_v58  ;;  %1702 = vmatpush.msra.mxu1 %v1701_v13  ;;  %v1993_v52 = vsub.f32 %v5807_v8, %v7931_v41  ;;  %v1719_v58 = vand.u32 4294901760, %v1718_v31  ;;  %v160_v13 = vld [vmem:[#allocation5 + $0x270] sm:$0xff]  ;;  %v7935_v31 = vand.u32 4294901760, %v5831_v4  ;;  %v5887_v55 = vsub.f32 %v168_v24, %v5865_v18 }
 0x105   :  { %1826 = vmatpush.msrb.mxu0 %v7932_v23  ;;  %1926 = vmatpush.msrb.mxu2 %v5702_v59  ;;  %v1999_v41 = vsub.f32 %v5823_v21, %v7933_v12  ;;  %v5889_v12 = vand.u32 4294901760, %v160_v13  ;;  %v5899_v24 = vsub.f32 %v164_v51, %v5877_v19  ;;  %v148_v23 = vld [vmem:[#allocation5 + $0x210] sm:$0xff] }
 0x106   :  { %1977 = vmatpush.msrb.mxu3 %v1976_v40  ;;  %1708 = vmatpush.msra.mxu1 %v1707_v20  ;;  %v2005_v40 = vsub.f32 %v5831_v4, %v7935_v31  ;;  %v156_v20 = vld [vmem:[#allocation5 + $0x250] sm:$0xff]  ;;  %v1994_v36 = vand.u32 4294901760, %v1993_v52 }
 0x107   :  { %1830 = vmatpush.msrb.mxu0 %v7934_v10  ;;  %1928 = vmatpush.msrb.mxu2 %v5716_v25  ;;  %v2011_v10 = vsub.f32 %v5846_v48, %v7720_v29  ;;  %v152_v31 = vld [vmem:[#allocation5 + $0x230] sm:$0xff]  ;;  %v5901_v52 = vand.u32 4294901760, %v156_v20  ;;  %v5912_v51 = vsub.f32 %v160_v13, %v5889_v12 }
 0x108   :  { %1983 = vmatpush.msrb.mxu3 %v1982_v5  ;;  %1714 = vmatpush.msra.mxu1 %v1713_v28  ;;  %v2000_v28 = vand.u32 4294901760, %v1999_v41  ;;  %v2022_v5 = vand.u32 4294901760, %v5875_v26  ;;  %v2028_v41 = vand.u32 4294901760, %v5887_v55  ;;  %v5914_v29 = vand.u32 4294901760, %v152_v31 }
 0x109   :  { %1834 = vmatpush.msrb.mxu0 %v7936_v56  ;;  %1930 = vmatpush.msrb.mxu2 %v5742_v15  ;;  %v2006_v56 = vand.u32 4294901760, %v2005_v40  ;;  %v5925_v13 = vsub.f32 %v156_v20, %v5901_v52 }
 0x10a   :  { %1989 = vmatpush.msrb.mxu3 %v1988_v37  ;;  %1720 = vmatpush.msra.mxu1 %v1719_v58  ;;  %v7938_v58 = vand.u32 4294901760, %v5863_v50  ;;  %v2023_v40 = vsub.f32 %v5875_v26, %v2022_v5  ;;  %v5938_v20 = vsub.f32 %v152_v31, %v5914_v29  ;;  %v7942_v31 = vand.u32 4294901760, %v5678_v6 }
 0x10b   :  { %1838 = vmatpush.msrb.mxu0 %v7937_v32  ;;  %1932 = vmatpush.msrb.mxu2 %v5759_v1  ;;  %v5927_v32 = vand.u32 4294901760, %v148_v23 }
 0x10c   :  { %1889 = vmatpush.msrb.mxu1 %v5572_v62  ;;  %1995 = vmatpush.msrb.mxu3 %v1994_v36  ;;  %v2017_v37 = vsub.f32 %v5863_v50, %v7938_v58  ;;  %v2012_v62 = vand.u32 4294901760, %v2011_v10  ;;  %v2034_v36 = vand.u32 4294901760, %v5899_v24  ;;  %v2029_v10 = vsub.f32 %v5887_v55, %v2028_v41 }
 0x10d   :  { %1842 = vmatpush.msrb.mxu0 %v7939_v43  ;;  %1934 = vmatpush.msrb.mxu2 %v5775_v46  ;;  %v7941_v58 = vand.u32 4294901760, %v5672_v61  ;;  %v2052_v43 = vand.u32 4294901760, %v5938_v20 }
 0x10e   :  { %1891 = vmatpush.msrb.mxu1 %v5579_v44  ;;  %2001 = vmatpush.msrb.mxu3 %v2000_v28  ;;  %v2018_v44 = vand.u32 4294901760, %v2017_v37  ;;  %v2040_v28 = vand.u32 4294901760, %v5912_v51  ;;  %v2035_v0 = vsub.f32 %v5899_v24, %v2034_v36  ;;  %v5949_v37 = vsub.f32 %v148_v23, %v5927_v32 }
 0x10f   :  { %1846 = vmatpush.msrb.mxu0 %v7940_v63  ;;  %1936 = vmatpush.msrb.mxu2 %v5791_v30  ;;  %v7945_v63 = vand.u32 4294901760, %v5723_v47 }
 0x110   :  { %1893 = vmatpush.msrb.mxu1 %v5589_v53  ;;  %2007 = vmatpush.msrb.mxu3 %v2006_v56  ;;  %v2024_v53 = vand.u32 4294901760, %v2023_v40  ;;  %v2046_v56 = vand.u32 4294901760, %v5925_v13  ;;  %v2041_v61 = vsub.f32 %v5912_v51, %v2040_v28  ;;  %v2036_v6 = vand.u32 4294901760, %v2035_v0 }
 0x111   :  { %1850 = vmatpush.msrb.mxu0 %v7941_v58  ;;  %1938 = vmatpush.msrb.mxu2 %v5799_v2  ;;  %v2058_v23 = vand.u32 4294901760, %v5949_v37  ;;  %v7944_v40 = vand.u32 4294901760, %v5709_v3  ;;  %v7948_v58 = vand.u32 4294901760, %v5764_v9  ;;  %v7954_v9 = vld [vmem:[#allocation17_spill] sm:$0xff] }
 0x112   :  { %1895 = vmatpush.msrb.mxu1 %v5599_v45  ;;  %2013 = vmatpush.msrb.mxu3 %v2012_v62  ;;  %v2030_v45 = vand.u32 4294901760, %v2029_v10  ;;  %v7943_v62 = vand.u32 4294901760, %v5690_v35  ;;  %v2042_v35 = vand.u32 4294901760, %v2041_v61  ;;  %v7947_v10 = vand.u32 4294901760, %v5756_v33  ;;  %v7951_v33 = vld [vmem:[#allocation20_spill] sm:$0xff] }
 0x113   :  { %1854 = vmatpush.msrb.mxu0 %v7942_v31  ;;  %1940 = vmatpush.msrb.mxu2 %v5815_v38  ;;  %v7958_v0 = vand.u32 4294901760, %v7954_v9  ;;  %v7959_v31 = vld [vmem:[#allocation26_spill] sm:$0xff]  ;;  %v7961_v61 = vld [vmem:[#allocation28_spill] sm:$0xff] }
 0x114   :  { %1897 = vmatpush.msrb.mxu1 %v5609_v22  ;;  %2019 = vmatpush.msrb.mxu3 %v2018_v44  ;;  %v2047_v22 = vsub.f32 %v5925_v13, %v2046_v56  ;;  %v7946_v44 = vand.u32 4294901760, %v5739_v7  ;;  %v7953_v7 = vld [vmem:[#allocation22_spill] sm:$0xff] }
 0x115   :  { %1858 = vmatpush.msrb.mxu0 %v7943_v62  ;;  %1942 = vmatpush.msrb.mxu2 %v5838_v42  ;;  %v7962_v62 = vld [vmem:[#allocation21_spill] sm:$0xff] }
 0x116   :  { %1899 = vmatpush.msrb.mxu1 %v5619_v14  ;;  %2025 = vmatpush.msrb.mxu3 %v2024_v53  ;;  %v2053_v14 = vsub.f32 %v5938_v20, %v2052_v43  ;;  %v2048_v3 = vand.u32 4294901760, %v2047_v22  ;;  %v7957_v53 = vld [vmem:[#allocation29_spill] sm:$0xff]  ;;  %v7964_v22 = vand.u32 4294901760, %v5807_v8 }
 0x117   :  { %1862 = vmatpush.msrb.mxu0 %v7944_v40  ;;  %1944 = vmatpush.msrb.mxu2 %v5853_v17  ;;  %v7965_v40 = vld [vmem:[#allocation19_spill] sm:$0xff] }
 0x118   :  { %1901 = vmatpush.msrb.mxu1 %v5633_v27  ;;  %2031 = vmatpush.msrb.mxu3 %v2030_v45  ;;  %v2059_v27 = vsub.f32 %v5949_v37, %v2058_v23  ;;  %v2054_v47 = vand.u32 4294901760, %v2053_v14  ;;  %v7960_v45 = vand.u32 4294901760, %v7957_v53 }
 0x119   :  { %1866 = vmatpush.msrb.mxu0 %v7945_v63  ;;  %1946 = vmatpush.msrb.mxu2 %v5865_v18  ;;  %v109_v63 = vld [vmem:[#allocation5 + $0xd8] sm:$0xff] }
 0x11a   :  { %1903 = vmatpush.msrb.mxu1 %v5646_v16  ;;  %2037 = vmatpush.msrb.mxu3 %v2036_v6  ;;  %v2060_v16 = vand.u32 4294901760, %v2059_v27  ;;  %v7963_v6 = vand.u32 4294901760, %v5789_v57 }
 0x11b   :  { %1870 = vmatpush.msrb.mxu0 %v7946_v44  ;;  %1948 = vmatpush.msrb.mxu2 %v5877_v19 }
 0x11c   :  { %1905 = vmatpush.msrb.mxu1 %v5651_v49  ;;  %2043 = vmatpush.msrb.mxu3 %v2042_v35  ;;  %v7949_v49 = vand.u32 4294901760, %v5780_v60  ;;  %v7956_v60 = vld [vmem:[#allocation16_spill] sm:$0xff] }
 0x11d   :  { %1874 = vmatpush.msrb.mxu0 %v7947_v10  ;;  %1950 = vmatpush.msrb.mxu2 %v5889_v12  ;;  %v105_v10 = vld [vmem:[#allocation5 + $0xb8] sm:$0xff] }
 0x11e   :  { %1907 = vmatpush.msrb.mxu1 %v5664_v54  ;;  %2049 = vmatpush.msrb.mxu3 %v2048_v3  ;;  %v7950_v54 = vld [vmem:[#allocation23_spill] sm:$0xff] }
 0x11f   :  { %1878 = vmatpush.msrb.mxu0 %v7948_v58  ;;  %1952 = vmatpush.msrb.mxu2 %v5901_v52 }
 0x120   :  { %1909 = vmatpush.msrb.mxu1 %v5684_v39  ;;  %2055 = vmatpush.msrb.mxu3 %v2054_v47  ;;  %v7952_v39 = vld [vmem:[#allocation18_spill] sm:$0xff] }
 0x121   :  { %1882 = vmatpush.msrb.mxu0 %v7949_v49  ;;  %1954 = vmatpush.msrb.mxu2 %v5914_v29 }
 0x122   :  { %1911 = vmatpush.msrb.mxu1 %v5696_v11  ;;  %2061 = vmatpush.msrb.mxu3 %v2060_v16  ;;  %v7955_v11 = vand.u32 4294901760, %v7951_v33 }
 0x123   :  { %1621 = vmatmul.f32.vlgmr.msra.gmra.mxu0 %v4996_v34  ;;  %1815 = vmatmul.f32.vlgmr.msra.gmra.mxu3 %v7950_v54  ;;  %v165_v54 = vld [vmem:[#allocation5 + $0x298] sm:$0xff] }
 0x124   :  { %2069 = vmatpush.msra.mxu0 %v7951_v33  ;;  %2230 = vmatpush.msra.mxu3 %v5702_v59 }
 0x125   :  { %1913 = vmatpush.msrb.mxu1 %v7952_v39  ;;  %1956 = vmatpush.msrb.mxu2 %v5927_v32  ;;  %v7972_v39 = vld [vmem:[#allocation15_spill] sm:$0xff] }
 0x126   :  { %1776 = vmatmul.f32.vlgmr.msra.gmra.mxu2 %v7953_v7  ;;  %2072 = vmatpush.msra.mxu0 %v7954_v9 }
 0x127   :  { %2163 = vmatpush.msra.mxu2 %v7955_v11  ;;  %2232 = vmatpush.msra.mxu3 %v5716_v25 }
 0x128   :  { %1915 = vmatpush.msrb.mxu1 %v7956_v60  ;;  %2075 = vmatpush.msra.mxu0 %v7957_v53  ;;  %v6176_v53 = vand.u32 4294901760, %v105_v10 }
 0x129   :  { %2167 = vmatpush.msra.mxu2 %v7958_v0  ;;  %2234 = vmatpush.msra.mxu3 %v5742_v15 }
 0x12a   :  { %1917 = vmatpush.msrb.mxu1 %v7959_v31  ;;  %2078 = vmatpush.msra.mxu0 %v5789_v57  ;;  %v7966_v57 = vand.u32 4294901760, %v5823_v21  ;;  %v209_v31 = vld [vmem:[#allocation5 + $0x3f8] sm:$0xff] }
 0x12b   :  { %2171 = vmatpush.msra.mxu2 %v7960_v45  ;;  %2236 = vmatpush.msra.mxu3 %v5759_v1 }
 0x12c   :  { %1919 = vmatpush.msrb.mxu1 %v7961_v61  ;;  %2081 = vmatpush.msra.mxu0 %v5807_v8  ;;  %v7968_v8 = vand.u32 4294901760, %v5831_v4  ;;  %v97_v61 = vld [vmem:[#allocation5 + $0x78] sm:$0xff] }
 0x12d   :  { %1722 = vmatmul.f32.vlgmr.msra.gmra.mxu1 %v7962_v62  ;;  %2175 = vmatpush.msra.mxu2 %v7963_v6 }
 0x12e   :  { %2122 = vmatpush.msra.mxu1 %v5702_v59  ;;  %2238 = vmatpush.msra.mxu3 %v5775_v46  ;;  %v7967_v59 = vld [vmem:[#allocation24_spill] sm:$0xff] }
 0x12f   :  { %2084 = vmatpush.msra.mxu0 %v5823_v21  ;;  %2179 = vmatpush.msra.mxu2 %v7964_v22  ;;  %v7969_v21 = vand.u32 4294901760, %v5846_v48 }
 0x130   :  { %2124 = vmatpush.msra.mxu1 %v5716_v25  ;;  %2240 = vmatpush.msra.mxu3 %v5791_v30 }
 0x131   :  { %1962 = vmatmul.f32.vlgmr.msrb.gmra.mxu2 %v7965_v40  ;;  %2087 = vmatpush.msra.mxu0 %v5831_v4  ;;  %v129_v4 = vld [vmem:[#allocation5 + $0x178] sm:$0xff] }
 0x132   :  { %2126 = vmatpush.msra.mxu1 %v5742_v15  ;;  %2183 = vmatpush.msra.mxu2 %v7966_v57  ;;  %v145_v15 = vld [vmem:[#allocation5 + $0x1f8] sm:$0xff] }
 0x133   :  { %2242 = vmatpush.msra.mxu3 %v5799_v2  ;;  %1884 = vmatmul.f32.vlgmr.msrb.gmra.mxu0 %v7962_v62  ;;  %v177_v40 = vld [vmem:[#allocation5 + $0x2f8] sm:$0xff] }
 0x134   :  { %2063 = vmatmul.f32.vlgmr.msrb.gmra.mxu3 %v7967_v59  ;;  %2090 = vmatpush.msra.mxu0 %v5846_v48 }
 0x135   :  { %2128 = vmatpush.msra.mxu1 %v5759_v1  ;;  %2187 = vmatpush.msra.mxu2 %v7968_v8  ;;  %v7970_v1 = vand.u32 4294901760, %v5863_v50 }
 0x136   :  { %2244 = vmatpush.msra.mxu3 %v5815_v38  ;;  %1921 = vmatmul.f32.vlgmr.msrb.gmra.mxu1 %v7962_v62 }
 0x137   :  { %2093 = vmatpush.msra.mxu0 %v5863_v50  ;;  %2130 = vmatpush.msra.mxu1 %v5775_v46  ;;  %v141_v46 = vld [vmem:[#allocation5 + $0x1d8] sm:$0xff]  ;;  %v6064_v50 = vand.u32 4294901760, %v145_v15 }
 0x138   :  { %2191 = vmatpush.msra.mxu2 %v7969_v21  ;;  %2246 = vmatpush.msra.mxu3 %v5838_v42  ;;  %v6071_v25 = vand.u32 4294901760, %v141_v46  ;;  %v205_v21 = vld [vmem:[#allocation5 + $0x3d8] sm:$0xff] }
 0x139   :  { %2096 = vmatpush.msra.mxu0 %v5875_v26  ;;  %2132 = vmatpush.msra.mxu1 %v5791_v30  ;;  %v133_v30 = vld [vmem:[#allocation5 + $0x198] sm:$0xff] }
 0x13a   :  { %2195 = vmatpush.msra.mxu2 %v7970_v1  ;;  %2248 = vmatpush.msra.mxu3 %v5853_v17  ;;  %v6091_v48 = vand.u32 4294901760, %v133_v30  ;;  %v125_v26 = vld [vmem:[#allocation5 + $0x158] sm:$0xff] }
 0x13b   :  { %2099 = vmatpush.msra.mxu0 %v5887_v55  ;;  %2134 = vmatpush.msra.mxu1 %v5799_v2  ;;  %v137_v2 = vld [vmem:[#allocation5 + $0x1b8] sm:$0xff]  ;;  %v6101_v55 = vand.u32 4294901760, %v129_v4 }
 0x13c   :  { %2199 = vmatpush.msra.mxu2 %v2022_v5  ;;  %2250 = vmatpush.msra.mxu3 %v5865_v18 }
 0x13d   :  { %2102 = vmatpush.msra.mxu0 %v5899_v24  ;;  %2136 = vmatpush.msra.mxu1 %v5815_v38  ;;  %v6081_v38 = vand.u32 4294901760, %v137_v2  ;;  %v7971_v24 = vld [vmem:[#allocation25_spill] sm:$0xff] }
 0x13e   :  { %2203 = vmatpush.msra.mxu2 %v2028_v41  ;;  %2252 = vmatpush.msra.mxu3 %v5877_v19  ;;  %v121_v41 = vld [vmem:[#allocation5 + $0x138] sm:$0xff] }
 0x13f   :  { %2105 = vmatpush.msra.mxu0 %v5912_v51  ;;  %2138 = vmatpush.msra.mxu1 %v5838_v42  ;;  %v6079_v42 = vsub.f32 %v145_v15, %v6064_v50  ;;  %v6111_v51 = vand.u32 4294901760, %v125_v26  ;;  %v93_v15 = vld [vmem:[#allocation5 + $0x58] sm:$0xff] }
 0x140   :  { %2207 = vmatpush.msra.mxu2 %v2034_v36  ;;  %2254 = vmatpush.msra.mxu3 %v5889_v12 }
 0x141   :  { %2108 = vmatpush.msra.mxu0 %v5925_v13  ;;  %2140 = vmatpush.msra.mxu1 %v5853_v17  ;;  %v6089_v17 = vsub.f32 %v141_v46, %v6071_v25  ;;  %v7730_v5 = vand.u32 4294901760, %v6079_v42  ;;  %v117_v13 = vld [vmem:[#allocation5 + $0x118] sm:$0xff]  ;;  %v6194_v46 = vand.u32 4294901760, %v209_v31 }
 0x142   :  { %2211 = vmatpush.msra.mxu2 %v2040_v28  ;;  %2256 = vmatpush.msra.mxu3 %v5901_v52  ;;  %v6123_v28 = vsub.f32 %v129_v4, %v6101_v55  ;;  %v6138_v35 = vand.u32 4294901760, %v117_v13  ;;  %v6201_v4 = vsub.f32 %v105_v10, %v6176_v53  ;;  %v85_v10 = vld [vmem:[#allocation5 + $0x18] sm:$0xff] }
 0x143   :  { %2111 = vmatpush.msra.mxu0 %v5938_v20  ;;  %2142 = vmatpush.msra.mxu1 %v5865_v18  ;;  %v6099_v18 = vsub.f32 %v137_v2, %v6081_v38  ;;  %v7729_v36 = vand.u32 4294901760, %v6089_v17  ;;  %v6125_v20 = vand.u32 4294901760, %v121_v41 }
 0x144   :  { %2215 = vmatpush.msra.mxu2 %v2046_v56  ;;  %2258 = vmatpush.msra.mxu3 %v5914_v29  ;;  %v7725_v47 = vand.u32 4294901760, %v6123_v28  ;;  %v6164_v49 = vsub.f32 %v117_v13, %v6138_v35 }
 0x145   :  { %2114 = vmatpush.msra.mxu0 %v5949_v37  ;;  %2144 = vmatpush.msra.mxu1 %v5877_v19  ;;  %v6109_v19 = vsub.f32 %v133_v30, %v6091_v48  ;;  %v7728_v56 = vand.u32 4294901760, %v6099_v18  ;;  %v113_v37 = vld [vmem:[#allocation5 + $0xf8] sm:$0xff]  ;;  %v6151_v44 = vsub.f32 %v121_v41, %v6125_v20 }
 0x146   :  { %2219 = vmatpush.msra.mxu2 %v2052_v43  ;;  %2260 = vmatpush.msra.mxu3 %v5927_v32  ;;  %v2316_v43 = vsub.f32 %v6089_v17, %v7729_v36  ;;  %v2334_v60 = vsub.f32 %v6123_v28, %v7725_v47  ;;  %v7721_v8 = vand.u32 4294901760, %v6164_v49  ;;  %v89_v41 = vld [vmem:[#allocation5 + $0x38] sm:$0xff] }
 0x147   :  { %2117 = vmatmul.f32.vlgmr.msra.gmra.mxu0 %v7971_v24  ;;  %2146 = vmatpush.msra.mxu1 %v5889_v12  ;;  %v2310_v12 = vsub.f32 %v6079_v42, %v7730_v5  ;;  %v7727_v14 = vand.u32 4294901760, %v6109_v19  ;;  %v2322_v27 = vsub.f32 %v6099_v18, %v7728_v56  ;;  %v7723_v0 = vand.u32 4294901760, %v6151_v44 }
 0x148   :  { %2463 = vmatpush.msrb.mxu3 %v6064_v50  ;;  %2267 = vmatpush.msrb.mxu0 %v6064_v50  ;;  %v2317_v16 = vand.u32 4294901760, %v2316_v43  ;;  %v2335_v2 = vand.u32 4294901760, %v2334_v60  ;;  %v197_v60 = vld [vmem:[#allocation5 + $0x398] sm:$0xff] }
 0x149   :  { %2223 = vmatpush.msra.mxu2 %v2058_v23  ;;  %2148 = vmatpush.msra.mxu1 %v5901_v52  ;;  %v6136_v23 = vsub.f32 %v125_v26, %v6111_v51  ;;  %v6143_v52 = vand.u32 4294901760, %v113_v37  ;;  %v2311_v3 = vand.u32 4294901760, %v2310_v12  ;;  %v2328_v58 = vsub.f32 %v6109_v19, %v7727_v14  ;;  %v189_v14 = vld [vmem:[#allocation5 + $0x358] sm:$0xff] }
 0x14a   :  { %2465 = vmatpush.msrb.mxu3 %v6071_v25  ;;  %2269 = vmatpush.msrb.mxu0 %v6071_v25  ;;  %v2323_v11 = vand.u32 4294901760, %v2322_v27  ;;  %v2346_v30 = vsub.f32 %v6151_v44, %v7723_v0  ;;  %v6203_v26 = vand.u32 4294901760, %v97_v61  ;;  %v6208_v12 = vand.u32 4294901760, %v205_v21 }
 0x14b   :  { %2410 = vmatpush.msrb.mxu2 %v6079_v42  ;;  %2150 = vmatpush.msra.mxu1 %v5914_v29  ;;  %v6156_v29 = vand.u32 4294901760, %v109_v63  ;;  %v7724_v33 = vand.u32 4294901760, %v6136_v23  ;;  %v6170_v9 = vsub.f32 %v113_v37, %v6143_v52  ;;  %v2329_v6 = vand.u32 4294901760, %v2328_v58  ;;  %v201_v37 = vld [vmem:[#allocation5 + $0x3b8] sm:$0xff] }
 0x14c   :  { %2225 = vmatmul.f32.vlgmr.msra.gmra.mxu2 %v7967_v59  ;;  %2271 = vmatpush.msrb.mxu0 %v6081_v38  ;;  %7973 = vst [vmem:[#allocation27_spill] sm:$0xff] %v6203_v26  ;;  %v6217_v27 = vand.u32 4294901760, %v93_v15  ;;  %v6224_v58 = vand.u32 4294901760, %v89_v41  ;;  %v6251_v47 = vand.u32 4294901760, %v197_v60 }
 0x14d   :  { %2413 = vmatpush.msrb.mxu2 %v6089_v17  ;;  %2467 = vmatpush.msrb.mxu3 %v6081_v38  ;;  %v6182_v45 = vsub.f32 %v109_v63, %v6156_v29  ;;  %v2340_v22 = vsub.f32 %v6136_v23, %v7724_v33  ;;  %v7722_v1 = vand.u32 4294901760, %v6170_v9  ;;  %v2352_v63 = vsub.f32 %v6164_v49, %v7721_v8 }
 0x14e   :  { %2262 = vmatmul.f32.vlgmr.msra.gmra.mxu3 %v7967_v59  ;;  %2273 = vmatpush.msrb.mxu0 %v6091_v48  ;;  %7974 = vst [vmem:[#allocation20_spill] sm:$0xff] %v6217_v27  ;;  %v6234_v8 = vand.u32 4294901760, %v201_v37  ;;  %v6248_v0 = vsub.f32 %v93_v15, %v6217_v27 }
 0x14f   :  { %2416 = vmatpush.msrb.mxu2 %v6099_v18  ;;  %2469 = vmatpush.msrb.mxu3 %v6091_v48  ;;  %v7726_v13 = vand.u32 4294901760, %v6182_v45  ;;  %v2341_v43 = vand.u32 4294901760, %v2340_v22  ;;  %7975 = vst [vmem:[#allocation18_spill] sm:$0xff] %v6224_v58  ;;  %v7731_v22 = vand.u32 4294901760, %v6201_v4 }
 0x150   :  { %2152 = vmatpush.msra.mxu1 %v5927_v32  ;;  %2275 = vmatpush.msrb.mxu0 %v6101_v55  ;;  %v101_v32 = vld [vmem:[#allocation5 + $0x98] sm:$0xff]  ;;  %v6265_v56 = vsub.f32 %v201_v37, %v6234_v8 }
 0x151   :  { %2156 = vmatmul.f32.vlgmr.msra.gmra.mxu1 %v7972_v39  ;;  %2419 = vmatpush.msrb.mxu2 %v6109_v19  ;;  %v6188_v57 = vand.u32 4294901760, %v101_v32  ;;  %v2370_v15 = vsub.f32 %v6201_v4, %v7731_v22 }
 0x152   :  { %2312 = vmatpush.msrb.mxu1 %v2311_v3  ;;  %2471 = vmatpush.msrb.mxu3 %v6101_v55  ;;  %7979 = vst [vmem:[#allocation26_spill] sm:$0xff] %v6265_v56 }
 0x153   :  { %2277 = vmatpush.msrb.mxu0 %v6111_v51  ;;  %2422 = vmatpush.msrb.mxu2 %v6123_v28  ;;  %v6215_v3 = vsub.f32 %v101_v32, %v6188_v57  ;;  %v2347_v32 = vand.u32 4294901760, %v2346_v30  ;;  %v193_v30 = vld [vmem:[#allocation5 + $0x378] sm:$0xff] }
 0x154   :  { %2318 = vmatpush.msrb.mxu1 %v2317_v16  ;;  %2473 = vmatpush.msrb.mxu3 %v6111_v51  ;;  %v2358_v16 = vsub.f32 %v6170_v9, %v7722_v1  ;;  %v6241_v1 = vand.u32 4294901760, %v85_v10  ;;  %v6267_v36 = vand.u32 4294901760, %v193_v30 }
 0x155   :  { %2279 = vmatpush.msrb.mxu0 %v6125_v20  ;;  %2425 = vmatpush.msrb.mxu2 %v6136_v23  ;;  %v7732_v33 = vand.u32 4294901760, %v6215_v3 }
 0x156   :  { %2324 = vmatpush.msrb.mxu1 %v2323_v11  ;;  %2475 = vmatpush.msrb.mxu3 %v6125_v20  ;;  %v6227_v11 = vsub.f32 %v209_v31, %v6194_v46  ;;  %v2364_v31 = vsub.f32 %v6182_v45, %v7726_v13  ;;  %7977 = vst [vmem:[#allocation16_spill] sm:$0xff] %v6241_v1  ;;  %v2359_v13 = vand.u32 4294901760, %v2358_v16  ;;  %v185_v16 = vld [vmem:[#allocation5 + $0x338] sm:$0xff] }
 0x157   :  { %2281 = vmatpush.msrb.mxu0 %v6138_v35  ;;  %2428 = vmatpush.msrb.mxu2 %v6151_v44  ;;  %v2376_v37 = vsub.f32 %v6215_v3, %v7732_v33  ;;  %v6291_v39 = vand.u32 4294901760, %v185_v16  ;;  %v6299_v59 = vsub.f32 %v193_v30, %v6267_v36  ;;  %v7983_v30 = vand.u32 4294901760, %v6248_v0 }
 0x158   :  { %2330 = vmatpush.msrb.mxu1 %v2329_v6  ;;  %2477 = vmatpush.msrb.mxu3 %v6138_v35  ;;  %7976 = vst [vmem:[#allocation17_spill] sm:$0xff] %v6227_v11  ;;  %v6231_v6 = vsub.f32 %v97_v61, %v6203_v26  ;;  %v2353_v61 = vand.u32 4294901760, %v2352_v63  ;;  %v6281_v63 = vsub.f32 %v197_v60, %v6251_v47  ;;  %v2371_v60 = vand.u32 4294901760, %v2370_v15 }
 0x159   :  { %2283 = vmatpush.msrb.mxu0 %v6143_v52  ;;  %2431 = vmatpush.msrb.mxu2 %v6164_v49  ;;  %v2388_v24 = vsub.f32 %v6248_v0, %v7983_v30 }
 0x15a   :  { %2336 = vmatpush.msrb.mxu1 %v2335_v2  ;;  %2479 = vmatpush.msrb.mxu3 %v6143_v52  ;;  %v6244_v2 = vsub.f32 %v205_v21, %v6208_v12  ;;  %v6256_v21 = vsub.f32 %v89_v41, %v6224_v58  ;;  %v2365_v41 = vand.u32 4294901760, %v2364_v31  ;;  %v181_v31 = vld [vmem:[#allocation5 + $0x318] sm:$0xff]  ;;  %v7981_v33 = vand.u32 4294901760, %v6231_v6 }
 0x15b   :  { %2285 = vmatpush.msrb.mxu0 %v6156_v29  ;;  %2434 = vmatpush.msrb.mxu2 %v6170_v9  ;;  %v6307_v15 = vand.u32 4294901760, %v181_v31 }
 0x15c   :  { %7978 = vst [vmem:[#allocation29_spill] sm:$0xff] %v6244_v2  ;;  %2342 = vmatpush.msrb.mxu1 %v2341_v43  ;;  %2481 = vmatpush.msrb.mxu3 %v6156_v29  ;;  %v6283_v43 = vand.u32 4294901760, %v189_v14  ;;  %v2382_v22 = vsub.f32 %v6231_v6, %v7981_v33  ;;  %v2377_v33 = vand.u32 4294901760, %v2376_v37  ;;  %v7984_v5 = vand.u32 4294901760, %v6256_v21 }
 0x15d   :  { %2287 = vmatpush.msrb.mxu0 %v6176_v53  ;;  %2437 = vmatpush.msrb.mxu2 %v6182_v45  ;;  %v6323_v37 = vsub.f32 %v185_v16, %v6291_v39 }
 0x15e   :  { %2348 = vmatpush.msrb.mxu1 %v2347_v32  ;;  %2483 = vmatpush.msrb.mxu3 %v6176_v53  ;;  %v6272_v32 = vsub.f32 %v85_v10, %v6241_v1  ;;  %v7980_v10 = vand.u32 4294901760, %v6227_v11  ;;  %v6315_v7 = vsub.f32 %v189_v14, %v6283_v43  ;;  %v2383_v30 = vand.u32 4294901760, %v2382_v22  ;;  %v169_v22 = vld [vmem:[#allocation5 + $0x2b8] sm:$0xff] }
 0x15f   :  { %2289 = vmatpush.msrb.mxu0 %v6188_v57  ;;  %2440 = vmatpush.msrb.mxu2 %v6201_v4  ;;  %v7985_v14 = vand.u32 4294901760, %v6265_v56 }
 0x160   :  { %2354 = vmatpush.msrb.mxu1 %v2353_v61  ;;  %2485 = vmatpush.msrb.mxu3 %v6188_v57  ;;  %v2651_v61 = vsub.f32 %v6227_v11, %v7980_v10  ;;  %v7982_v10 = vand.u32 4294901760, %v6244_v2  ;;  %v7986_v16 = vand.u32 4294901760, %v6272_v32 }
 0x161   :  { %2291 = vmatpush.msrb.mxu0 %v6203_v26  ;;  %2443 = vmatpush.msrb.mxu2 %v6215_v3  ;;  %v2663_v62 = vsub.f32 %v6265_v56, %v7985_v14  ;;  %v2389_v14 = vand.u32 4294901760, %v2388_v24 }
 0x162   :  { %2360 = vmatpush.msrb.mxu1 %v2359_v13  ;;  %2487 = vmatpush.msrb.mxu3 %v6203_v26  ;;  %v2657_v13 = vsub.f32 %v6244_v2, %v7982_v10  ;;  %v2652_v10 = vand.u32 4294901760, %v2651_v61  ;;  %v6330_v26 = vand.u32 4294901760, %v177_v40  ;;  %v2400_v61 = vsub.f32 %v6272_v32, %v7986_v16 }
 0x163   :  { %2293 = vmatpush.msrb.mxu0 %v6217_v27  ;;  %2446 = vmatpush.msrb.mxu2 %v6231_v6  ;;  %v7987_v2 = vand.u32 4294901760, %v6281_v63  ;;  %v2664_v24 = vand.u32 4294901760, %v2663_v62 }
 0x164   :  { %2366 = vmatpush.msrb.mxu1 %v2365_v41  ;;  %2489 = vmatpush.msrb.mxu3 %v6217_v27  ;;  %v2394_v41 = vsub.f32 %v6256_v21, %v7984_v5  ;;  %v173_v27 = vld [vmem:[#allocation5 + $0x2d8] sm:$0xff]  ;;  %v2658_v5 = vand.u32 4294901760, %v2657_v13  ;;  %v7988_v13 = vand.u32 4294901760, %v6079_v42  ;;  %v6355_v56 = vsub.f32 %v177_v40, %v6330_v26 }
 0x165   :  { %2295 = vmatpush.msrb.mxu0 %v6224_v58  ;;  %2449 = vmatpush.msrb.mxu2 %v6248_v0  ;;  %v6345_v11 = vand.u32 4294901760, %v173_v27  ;;  %v7990_v42 = vand.u32 4294901760, %v6089_v17  ;;  %v7992_v17 = vand.u32 4294901760, %v6099_v18  ;;  %v7994_v18 = vand.u32 4294901760, %v6109_v19 }
 0x166   :  { %2372 = vmatpush.msrb.mxu1 %v2371_v60  ;;  %2491 = vmatpush.msrb.mxu3 %v6224_v58  ;;  %v6338_v60 = vsub.f32 %v181_v31, %v6307_v15  ;;  %v2669_v58 = vsub.f32 %v6281_v63, %v7987_v2  ;;  %v2395_v16 = vand.u32 4294901760, %v2394_v41  ;;  %v6369_v31 = vand.u32 4294901760, %v165_v54 }
 0x167   :  { %2297 = vmatpush.msrb.mxu0 %v6241_v1  ;;  %2452 = vmatpush.msrb.mxu2 %v6256_v21  ;;  %v6367_v40 = vsub.f32 %v173_v27, %v6345_v11  ;;  %v7995_v19 = vand.u32 4294901760, %v6123_v28  ;;  %v7997_v28 = vand.u32 4294901760, %v6136_v23  ;;  %v7998_v23 = vand.u32 4294901760, %v6151_v44 }
 0x168   :  { %2378 = vmatpush.msrb.mxu1 %v2377_v33  ;;  %2493 = vmatpush.msrb.mxu3 %v6241_v1  ;;  %v7989_v33 = vand.u32 4294901760, %v6299_v59  ;;  %v6357_v1 = vand.u32 4294901760, %v169_v22  ;;  %v7745_v41 = vand.u32 4294901760, %v6338_v60  ;;  %v2670_v62 = vand.u32 4294901760, %v2669_v58 }
 0x169   :  { %2504 = vmatpush.msra.mxu0 %v7988_v13  ;;  %2455 = vmatpush.msrb.mxu2 %v6272_v32  ;;  %v7991_v13 = vand.u32 4294901760, %v6315_v7 }
 0x16a   :  { %2653 = vmatpush.msra.mxu3 %v2652_v10  ;;  %2384 = vmatpush.msrb.mxu1 %v2383_v30  ;;  %v2675_v2 = vsub.f32 %v6299_v59, %v7989_v33  ;;  %v2401_v10 = vand.u32 4294901760, %v2400_v61  ;;  %v161_v30 = vld [vmem:[#allocation5 + $0x278] sm:$0xff]  ;;  %v7993_v61 = vand.u32 4294901760, %v6323_v37  ;;  %v6379_v27 = vsub.f32 %v169_v22, %v6357_v1 }
 0x16b   :  { %2508 = vmatpush.msra.mxu0 %v7990_v42  ;;  %2608 = vmatpush.msra.mxu2 %v6194_v46  ;;  %v2681_v33 = vsub.f32 %v6315_v7, %v7991_v13  ;;  %v6381_v13 = vand.u32 4294901760, %v161_v30  ;;  %v6391_v22 = vsub.f32 %v165_v54, %v6369_v31  ;;  %v149_v42 = vld [vmem:[#allocation5 + $0x218] sm:$0xff] }
 0x16c   :  { %2659 = vmatpush.msra.mxu3 %v2658_v5  ;;  %2390 = vmatpush.msrb.mxu1 %v2389_v14  ;;  %v2687_v5 = vsub.f32 %v6323_v37, %v7993_v61  ;;  %v157_v14 = vld [vmem:[#allocation5 + $0x258] sm:$0xff]  ;;  %v2676_v58 = vand.u32 4294901760, %v2675_v2 }
 0x16d   :  { %2512 = vmatpush.msra.mxu0 %v7992_v17  ;;  %2610 = vmatpush.msra.mxu2 %v6208_v12  ;;  %v2693_v17 = vsub.f32 %v6338_v60, %v7745_v41  ;;  %v153_v61 = vld [vmem:[#allocation5 + $0x238] sm:$0xff]  ;;  %v6393_v2 = vand.u32 4294901760, %v157_v14  ;;  %v6404_v54 = vsub.f32 %v161_v30, %v6381_v13 }
 0x16e   :  { %2665 = vmatpush.msra.mxu3 %v2664_v24  ;;  %2396 = vmatpush.msrb.mxu1 %v2395_v16  ;;  %v2682_v16 = vand.u32 4294901760, %v2681_v33  ;;  %v2704_v24 = vand.u32 4294901760, %v6367_v40  ;;  %v2710_v33 = vand.u32 4294901760, %v6379_v27  ;;  %v6406_v41 = vand.u32 4294901760, %v153_v61 }
 0x16f   :  { %2516 = vmatpush.msra.mxu0 %v7994_v18  ;;  %2612 = vmatpush.msra.mxu2 %v6234_v8  ;;  %v2688_v18 = vand.u32 4294901760, %v2687_v5  ;;  %v6417_v30 = vsub.f32 %v157_v14, %v6393_v2 }
 0x170   :  { %2671 = vmatpush.msra.mxu3 %v2670_v62  ;;  %2402 = vmatpush.msrb.mxu1 %v2401_v10  ;;  %v7996_v10 = vand.u32 4294901760, %v6355_v56  ;;  %v2705_v5 = vsub.f32 %v6367_v40, %v2704_v24  ;;  %v6430_v14 = vsub.f32 %v153_v61, %v6406_v41  ;;  %v8000_v61 = vand.u32 4294901760, %v6170_v9 }
 0x171   :  { %2520 = vmatpush.msra.mxu0 %v7995_v19  ;;  %2614 = vmatpush.msra.mxu2 %v6251_v47  ;;  %v6419_v19 = vand.u32 4294901760, %v149_v42 }
 0x172   :  { %2571 = vmatpush.msra.mxu1 %v6064_v50  ;;  %2677 = vmatpush.msra.mxu3 %v2676_v58  ;;  %v2699_v62 = vsub.f32 %v6355_v56, %v7996_v10  ;;  %v2694_v50 = vand.u32 4294901760, %v2693_v17  ;;  %v2716_v58 = vand.u32 4294901760, %v6391_v22  ;;  %v2711_v17 = vsub.f32 %v6379_v27, %v2710_v33 }
 0x173   :  { %2524 = vmatpush.msra.mxu0 %v7997_v28  ;;  %2616 = vmatpush.msra.mxu2 %v6267_v36  ;;  %v7999_v10 = vand.u32 4294901760, %v6164_v49  ;;  %v2734_v28 = vand.u32 4294901760, %v6430_v14 }
 0x174   :  { %2573 = vmatpush.msra.mxu1 %v6071_v25  ;;  %2683 = vmatpush.msra.mxu3 %v2682_v16  ;;  %v2700_v25 = vand.u32 4294901760, %v2699_v62  ;;  %v2722_v16 = vand.u32 4294901760, %v6404_v54  ;;  %v2717_v44 = vsub.f32 %v6391_v22, %v2716_v58  ;;  %v6441_v62 = vsub.f32 %v149_v42, %v6419_v19 }
 0x175   :  { %2528 = vmatpush.msra.mxu0 %v7998_v23  ;;  %2618 = vmatpush.msra.mxu2 %v6283_v43  ;;  %v8003_v23 = vand.u32 4294901760, %v6215_v3 }
 0x176   :  { %2575 = vmatpush.msra.mxu1 %v6081_v38  ;;  %2689 = vmatpush.msra.mxu3 %v2688_v18  ;;  %v2706_v38 = vand.u32 4294901760, %v2705_v5  ;;  %v2728_v18 = vand.u32 4294901760, %v6417_v30  ;;  %v2723_v49 = vsub.f32 %v6404_v54, %v2722_v16  ;;  %v2718_v9 = vand.u32 4294901760, %v2717_v44  ;;  %v8010_v44 = vld [vmem:[#allocation27_spill] sm:$0xff] }
 0x177   :  { %2532 = vmatpush.msra.mxu0 %v7999_v10  ;;  %2620 = vmatpush.msra.mxu2 %v6291_v39  ;;  %v2740_v42 = vand.u32 4294901760, %v6441_v62  ;;  %v8002_v5 = vand.u32 4294901760, %v6201_v4 }
 0x178   :  { %2577 = vmatpush.msra.mxu1 %v6091_v48  ;;  %2695 = vmatpush.msra.mxu3 %v2694_v50  ;;  %v2712_v48 = vand.u32 4294901760, %v2711_v17  ;;  %v8001_v50 = vand.u32 4294901760, %v6182_v45  ;;  %v2724_v45 = vand.u32 4294901760, %v2723_v49  ;;  %v8005_v17 = vand.u32 4294901760, %v6248_v0  ;;  %v8015_v49 = vld [vmem:[#allocation26_spill] sm:$0xff] }
 0x179   :  { %2536 = vmatpush.msra.mxu0 %v8000_v61  ;;  %2622 = vmatpush.msra.mxu2 %v6307_v15  ;;  %v8007_v0 = vand.u32 4294901760, %v6272_v32  ;;  %v359_v32 = vpop.f32.mrf.mxu1  ;;  %v8011_v61 = vld [vmem:[#allocation22_spill] sm:$0xff] }
 0x17a   :  { %2579 = vmatpush.msra.mxu1 %v6101_v55  ;;  %2701 = vmatpush.msra.mxu3 %v2700_v25  ;;  %v2729_v55 = vsub.f32 %v6417_v30, %v2728_v18  ;;  %v8004_v25 = vand.u32 4294901760, %v6231_v6  ;;  %v8006_v6 = vand.u32 4294901760, %v6256_v21  ;;  %v8008_v21 = vld [vmem:[#allocation23_spill] sm:$0xff] }
 0x17b   :  { %2540 = vmatpush.msra.mxu0 %v8001_v50  ;;  %2624 = vmatpush.msra.mxu2 %v6330_v26 }
 0x17c   :  { %2581 = vmatpush.msra.mxu1 %v6111_v51  ;;  %2707 = vmatpush.msra.mxu3 %v2706_v38  ;;  %v2735_v51 = vsub.f32 %v6430_v14, %v2734_v28  ;;  %v2730_v4 = vand.u32 4294901760, %v2729_v55  ;;  %v8009_v38 = vld [vmem:[#allocation17_spill] sm:$0xff]  ;;  %v413_v55 = vpop.f32.mrf.mxu2 }
 0x17d   :  { %2544 = vmatpush.msra.mxu0 %v8002_v5  ;;  %2626 = vmatpush.msra.mxu2 %v6345_v11  ;;  %v8017_v5 = vld [vmem:[#allocation18_spill] sm:$0xff] }
 0x17e   :  { %2583 = vmatpush.msra.mxu1 %v6125_v20  ;;  %2713 = vmatpush.msra.mxu3 %v2712_v48  ;;  %v2741_v20 = vsub.f32 %v6441_v62, %v2740_v42  ;;  %v2736_v3 = vand.u32 4294901760, %v2735_v51  ;;  %v8013_v48 = vand.u32 4294901760, %v8009_v38  ;;  %v8019_v51 = vld [vmem:[#allocation16_spill] sm:$0xff] }
 0x17f   :  { %2548 = vmatpush.msra.mxu0 %v8003_v23  ;;  %2628 = vmatpush.msra.mxu2 %v6357_v1 }
 0x180   :  { %2585 = vmatpush.msra.mxu1 %v6138_v35  ;;  %2719 = vmatpush.msra.mxu3 %v2718_v9  ;;  %v6480_v35 = vld [vmem:[#allocation7] sm:$0xf]  ;;  %v2742_v10 = vand.u32 4294901760, %v2741_v20  ;;  %v8021_v20 = vand.u32 4294901760, %v6281_v63 }
 0x181   :  { %2552 = vmatpush.msra.mxu0 %v8004_v25  ;;  %2630 = vmatpush.msra.mxu2 %v6369_v31  ;;  %v452_v25 = vpop.f32.mrf.mxu3 }
 0x182   :  { %2587 = vmatpush.msra.mxu1 %v6143_v52  ;;  %2725 = vmatpush.msra.mxu3 %v2724_v45  ;;  %v212_v52 = vperm.slane %v6480_v35, 0  ;;  %v8018_v45 = vand.u32 4294901760, %v8015_v49 }
 0x183   :  { %2556 = vmatpush.msra.mxu0 %v8005_v17  ;;  %2632 = vmatpush.msra.mxu2 %v6381_v13 }
 0x184   :  { %2589 = vmatpush.msra.mxu1 %v6156_v29  ;;  %2731 = vmatpush.msra.mxu3 %v2730_v4  ;;  %v258_v29 = vpop.f32.mrf.mxu0  ;;  %v8020_v4 = vld [vmem:[#allocation21_spill] sm:$0xff] }
 0x185   :  { %2560 = vmatpush.msra.mxu0 %v8006_v6  ;;  %2634 = vmatpush.msra.mxu2 %v6393_v2  ;;  %v8026_v6 = vand.u32 4294901760, %v6323_v37 }
 0x186   :  { %2591 = vmatpush.msra.mxu1 %v6176_v53  ;;  %2737 = vmatpush.msra.mxu3 %v2736_v3  ;;  %v259_v53 = vadd.f32 %v258_v29, %v212_v52  ;;  %v8022_v3 = vand.u32 4294901760, %v6299_v59  ;;  %v558_v52 = vpop.f32.mrf.mxu1 }
 0x187   :  { %2564 = vmatpush.msra.mxu0 %v8007_v0  ;;  %2636 = vmatpush.msra.mxu2 %v6406_v41  ;;  %v2967_v0 = vld [vmem:[#allocation8 + $0x78] sm:$0xff] }
 0x188   :  { %2593 = vmatpush.msra.mxu1 %v6188_v57  ;;  %2743 = vmatpush.msra.mxu3 %v2742_v10  ;;  %v8012_v57 = vld [vmem:[#allocation29_spill] sm:$0xff]  ;;  %v360_v50 = vadd.f32 %v359_v32, %v259_v53  ;;  %v8023_v10 = vld [vmem:[#allocation19_spill] sm:$0xff]  ;;  %v213_v53 = vperm.slane %v6480_v35, 1 }
 0x189   :  { %2303 = vmatmul.f32.vlgmr.msrb.gmra.mxu0 %v4996_v34  ;;  %2497 = vmatmul.f32.vlgmr.msrb.gmra.mxu3 %v8008_v21  ;;  %v8014_v34 = vld [vmem:[#allocation20_spill] sm:$0xff]  ;;  %v8016_v9 = vand.u32 4294901760, %v8012_v57  ;;  %v2963_v21 = vld [vmem:[#allocation8 + $0x58] sm:$0xff]  ;;  %v2961_v32 = vld [vmem:[#allocation8 + $0x48] sm:$0xff] }
 0x18a   :  { %2751 = vmatpush.msrb.mxu0 %v8009_v38  ;;  %2912 = vmatpush.msrb.mxu3 %v6194_v46  ;;  %v414_v23 = vadd.f32 %v413_v55, %v360_v50  ;;  %v2962_v38 = vld [vmem:[#allocation8 + $0x50] sm:$0xff]  ;;  %v6621_v50 = vand.u32 4294901760, %v2961_v32  ;;  %v2959_v55 = vld [vmem:[#allocation8 + $0x38] sm:$0xff] }
 0x18b   :  { %2595 = vmatpush.msra.mxu1 %v8010_v44  ;;  %2638 = vmatpush.msra.mxu2 %v6419_v19  ;;  %v8029_v44 = vld [vmem:[#allocation25_spill] sm:$0xff] }
 0x18c   :  { %2458 = vmatmul.f32.vlgmr.msrb.gmra.mxu2 %v8011_v61  ;;  %2754 = vmatpush.msrb.mxu0 %v8012_v57  ;;  %v453_v17 = vadd.f32 %v452_v25, %v414_v23 }
 0x18d   :  { %2845 = vmatpush.msrb.mxu2 %v8013_v48  ;;  %2914 = vmatpush.msrb.mxu3 %v6208_v12 }
 0x18e   :  { %2597 = vmatpush.msra.mxu1 %v8014_v34  ;;  %2757 = vmatpush.msrb.mxu0 %v8015_v49  ;;  %v2960_v34 = vld [vmem:[#allocation8 + $0x40] sm:$0xff] }
 0x18f   :  { %2849 = vmatpush.msrb.mxu2 %v8016_v9  ;;  %2916 = vmatpush.msrb.mxu3 %v6234_v8  ;;  %v6635_v23 = vand.u32 4294901760, %v2960_v34 }
 0x190   :  { %2599 = vmatpush.msra.mxu1 %v8017_v5  ;;  %2760 = vmatpush.msrb.mxu0 %v6281_v63  ;;  %v521_v63 = vpop.f32.mrf.mxu0 }
 0x191   :  { %2853 = vmatpush.msrb.mxu2 %v8018_v45  ;;  %2918 = vmatpush.msrb.mxu3 %v6251_v47 }
 0x192   :  { %2601 = vmatpush.msra.mxu1 %v8019_v51  ;;  %2763 = vmatpush.msrb.mxu0 %v6299_v59  ;;  %v8025_v59 = vld [vmem:[#allocation24_spill] sm:$0xff] }
 0x193   :  { %2404 = vmatmul.f32.vlgmr.msrb.gmra.mxu1 %v8020_v4  ;;  %2857 = vmatpush.msrb.mxu2 %v8021_v20  ;;  %v2958_v20 = vld [vmem:[#allocation8 + $0x30] sm:$0xff] }
 0x194   :  { %2804 = vmatpush.msrb.mxu1 %v6194_v46  ;;  %2920 = vmatpush.msrb.mxu3 %v6267_v36  ;;  %v8024_v46 = vand.u32 4294901760, %v6315_v7 }
 0x195   :  { %2766 = vmatpush.msrb.mxu0 %v6315_v7  ;;  %2861 = vmatpush.msrb.mxu2 %v8022_v3  ;;  %v8027_v7 = vand.u32 4294901760, %v6338_v60  ;;  %v6647_v3 = vsub.f32 %v2961_v32, %v6621_v50 }
 0x196   :  { %2806 = vmatpush.msrb.mxu1 %v6208_v12  ;;  %2922 = vmatpush.msrb.mxu3 %v6283_v43  ;;  %v522_v12 = vadd.f32 %v521_v63, %v453_v17  ;;  %v6649_v17 = vand.u32 4294901760, %v2959_v55  ;;  %v2957_v63 = vld [vmem:[#allocation8 + $0x28] sm:$0xff] }
 0x197   :  { %2644 = vmatmul.f32.vlgmr.msra.gmra.mxu2 %v8023_v10  ;;  %2769 = vmatpush.msrb.mxu0 %v6323_v37  ;;  %v8028_v37 = vand.u32 4294901760, %v6355_v56 }
 0x198   :  { %2808 = vmatpush.msrb.mxu1 %v6234_v8  ;;  %2865 = vmatpush.msrb.mxu2 %v8024_v46  ;;  %v559_v8 = vadd.f32 %v558_v52, %v522_v12  ;;  %v6662_v52 = vand.u32 4294901760, %v2958_v20 }
 0x199   :  { %2924 = vmatpush.msrb.mxu3 %v6291_v39  ;;  %2566 = vmatmul.f32.vlgmr.msra.gmra.mxu0 %v8020_v4 }
 0x19a   :  { %2745 = vmatmul.f32.vlgmr.msra.gmra.mxu3 %v8025_v59  ;;  %2772 = vmatpush.msrb.mxu0 %v6338_v60  ;;  %v700_v60 = vpop.f32.mrf.mxu3 }
 0x19b   :  { %2810 = vmatpush.msrb.mxu1 %v6251_v47  ;;  %2869 = vmatpush.msrb.mxu2 %v8026_v6  ;;  %v599_v47 = vpop.f32.mrf.mxu2  ;;  %v6660_v6 = vsub.f32 %v2960_v34, %v6635_v23 }
 0x19c   :  { %2926 = vmatpush.msrb.mxu3 %v6307_v15  ;;  %2603 = vmatmul.f32.vlgmr.msra.gmra.mxu1 %v8020_v4 }
 0x19d   :  { %2775 = vmatpush.msrb.mxu0 %v6355_v56  ;;  %2812 = vmatpush.msrb.mxu1 %v6267_v36  ;;  %v600_v36 = vadd.f32 %v599_v47, %v559_v8  ;;  %v2966_v56 = vld [vmem:[#allocation8 + $0x70] sm:$0xff]  ;;  %v8030_v47 = vld [vmem:[#allocation15_spill] sm:$0xff] }
 0x19e   :  { %2873 = vmatpush.msrb.mxu2 %v8027_v7  ;;  %2928 = vmatpush.msrb.mxu3 %v6330_v26 }
 0x19f   :  { %2778 = vmatpush.msrb.mxu0 %v6367_v40  ;;  %2814 = vmatpush.msrb.mxu1 %v6283_v43  ;;  %v6556_v43 = vand.u32 4294901760, %v2967_v0  ;;  %v754_v40 = vpop.f32.mrf.mxu0  ;;  %v701_v29 = vadd.f32 %v700_v60, %v600_v36  ;;  %v7749_v60 = vand.u32 4294901760, %v6647_v3 }
 0x1a0   :  { %2877 = vmatpush.msrb.mxu2 %v8028_v37  ;;  %2930 = vmatpush.msrb.mxu3 %v6345_v11  ;;  %v6668_v37 = vand.u32 4294901760, %v2957_v63 }
 0x1a1   :  { %2781 = vmatpush.msrb.mxu0 %v6379_v27  ;;  %2816 = vmatpush.msrb.mxu1 %v6291_v39  ;;  %v2965_v39 = vld [vmem:[#allocation8 + $0x68] sm:$0xff]  ;;  %v6571_v27 = vsub.f32 %v2967_v0, %v6556_v43  ;;  %v2956_v0 = vld [vmem:[#allocation8 + $0x20] sm:$0xff]  ;;  %v3100_v32 = vsub.f32 %v6647_v3, %v7749_v60 }
 0x1a2   :  { %2881 = vmatpush.msrb.mxu2 %v2704_v24  ;;  %2932 = vmatpush.msrb.mxu3 %v6357_v1  ;;  %v2964_v24 = vld [vmem:[#allocation8 + $0x60] sm:$0xff]  ;;  %v899_v49 = vpop.f32.mrf.mxu3  ;;  %8031 = vst [vmem:[#allocation28_spill] sm:$0xff] %v6668_v37 }
 0x1a3   :  { %2784 = vmatpush.msrb.mxu0 %v6391_v22  ;;  %2818 = vmatpush.msrb.mxu1 %v6307_v15  ;;  %v6566_v15 = vand.u32 4294901760, %v2966_v56  ;;  %v755_v22 = vadd.f32 %v754_v40, %v701_v29 }
 0x1a4   :  { %2885 = vmatpush.msrb.mxu2 %v2710_v33  ;;  %2934 = vmatpush.msrb.mxu3 %v6369_v31  ;;  %v793_v33 = vpop.f32.mrf.mxu1 }
 0x1a5   :  { %2787 = vmatpush.msrb.mxu0 %v6404_v54  ;;  %2820 = vmatpush.msrb.mxu1 %v6330_v26  ;;  %v6576_v26 = vand.u32 4294901760, %v2965_v39  ;;  %v794_v54 = vadd.f32 %v793_v33, %v755_v22  ;;  %v6685_v22 = vsub.f32 %v2958_v20, %v6662_v52  ;;  %v2981_v20 = vld [vmem:[#allocation8 + $0xe8] sm:$0xff] }
 0x1a6   :  { %2889 = vmatpush.msrb.mxu2 %v2716_v58  ;;  %2936 = vmatpush.msrb.mxu3 %v6381_v13  ;;  %v6580_v58 = vand.u32 4294901760, %v2964_v24 }
 0x1a7   :  { %2790 = vmatpush.msrb.mxu0 %v6417_v30  ;;  %2822 = vmatpush.msrb.mxu1 %v6345_v11  ;;  %v6586_v11 = vsub.f32 %v2966_v56, %v6566_v15  ;;  %v6595_v30 = vsub.f32 %v2965_v39, %v6576_v26  ;;  %v940_v61 = vpop.f32.mrf.mxu0  ;;  %v6675_v56 = vsub.f32 %v2959_v55, %v6649_v17 }
 0x1a8   :  { %2893 = vmatpush.msrb.mxu2 %v2722_v16  ;;  %2938 = vmatpush.msrb.mxu3 %v6393_v2  ;;  %v7757_v16 = vand.u32 4294901760, %v6571_v27 }
 0x1a9   :  { %2793 = vmatpush.msrb.mxu0 %v6430_v14  ;;  %2824 = vmatpush.msrb.mxu1 %v6357_v1  ;;  %v862_v1 = vpop.f32.mrf.mxu2  ;;  %v6607_v14 = vand.u32 4294901760, %v2962_v38 }
 0x1aa   :  { %2897 = vmatpush.msrb.mxu2 %v2728_v18  ;;  %2940 = vmatpush.msrb.mxu3 %v6406_v41  ;;  %v6597_v18 = vand.u32 4294901760, %v2963_v21  ;;  %v863_v57 = vadd.f32 %v862_v1, %v794_v54  ;;  %v3064_v48 = vsub.f32 %v6571_v27, %v7757_v16  ;;  %v1134_v29 = vpop.f32.mrf.mxu3  ;;  %v7748_v54 = vand.u32 4294901760, %v6660_v6 }
 0x1ab   :  { %2796 = vmatpush.msrb.mxu0 %v6441_v62  ;;  %2826 = vmatpush.msrb.mxu1 %v6369_v31  ;;  %v6603_v31 = vsub.f32 %v2964_v24, %v6580_v58  ;;  %v7754_v62 = vand.u32 4294901760, %v6595_v30  ;;  %v6633_v51 = vsub.f32 %v2962_v38, %v6607_v14  ;;  %v2983_v24 = vld [vmem:[#allocation8 + $0xf8] sm:$0xff] }
 0x1ac   :  { %2901 = vmatpush.msrb.mxu2 %v2734_v28  ;;  %2942 = vmatpush.msrb.mxu3 %v6419_v19  ;;  %v7756_v28 = vand.u32 4294901760, %v6586_v11  ;;  %v1041_v5 = vpop.f32.mrf.mxu1  ;;  %v3065_v4 = vand.u32 4294901760, %v3064_v48  ;;  %v2955_v38 = vld [vmem:[#allocation8 + $0x18] sm:$0xff]  ;;  %v2982_v48 = vld [vmem:[#allocation8 + $0xf0] sm:$0xff] }
 0x1ad   :  { %2799 = vmatmul.f32.vlgmr.msrb.gmra.mxu0 %v8029_v44  ;;  %2828 = vmatpush.msrb.mxu1 %v6381_v13  ;;  %v6619_v13 = vsub.f32 %v2963_v21, %v6597_v18  ;;  %v7753_v9 = vand.u32 4294901760, %v6603_v31  ;;  %v3076_v25 = vsub.f32 %v6595_v30, %v7754_v62  ;;  %v7750_v7 = vand.u32 4294901760, %v6633_v51 }
 0x1ae   :  { %3217 = vmatpush.msra.mxu3 %v6556_v43  ;;  %3021 = vmatpush.msra.mxu0 %v6556_v43  ;;  %v3070_v45 = vsub.f32 %v6586_v11, %v7756_v28  ;;  %v6687_v21 = vand.u32 4294901760, %v2956_v0 }
 0x1af   :  { %2905 = vmatpush.msrb.mxu2 %v2740_v42  ;;  %v941_v42 = vadd.f32 %v940_v61, %v213_v53  ;;  %2830 = vmatpush.msrb.mxu1 %v6393_v2  ;;  %v6637_v2 = vadd.f32 %v899_v49, %v863_v57  ;;  %v7752_v10 = vand.u32 4294901760, %v6619_v13  ;;  %v3094_v33 = vsub.f32 %v6633_v51, %v7750_v7  ;;  %v1203_v55 = vpop.f32.mrf.mxu0 }
 0x1b0   :  { %3219 = vmatpush.msra.mxu3 %v6566_v15  ;;  %3023 = vmatpush.msra.mxu0 %v6566_v15  ;;  %v3071_v12 = vand.u32 4294901760, %v3070_v45  ;;  %8032 = vst [vmem:[#allocation23_spill] sm:$0xff] %v6687_v21  ;;  %v6695_v53 = vsub.f32 %v2957_v63, %v6668_v37  ;;  %v7747_v61 = vand.u32 4294901760, %v6675_v56  ;;  %v6702_v57 = vand.u32 4294901760, %v2983_v24  ;;  %v2953_v63 = vld [vmem:[#allocation8 + $0x8] sm:$0xff] }
 0x1b1   :  { %3164 = vmatpush.msra.mxu2 %v6571_v27  ;;  %2832 = vmatpush.msrb.mxu1 %v6406_v41  ;;  %v1042_v46 = vadd.f32 %v1041_v5, %v941_v42  ;;  %v3082_v41 = vsub.f32 %v6603_v31, %v7753_v9  ;;  %v2948_v8 = vmax.f32 %v6637_v2, 0.0  ;;  %v3088_v36 = vsub.f32 %v6619_v13, %v7752_v10  ;;  %v2954_v42 = vld [vmem:[#allocation8 + $0x10] sm:$0xff]  ;;  %v2977_v9 = vld [vmem:[#allocation8 + $0xc8] sm:$0xff] }
 0x1b2   :  { %2907 = vmatmul.f32.vlgmr.msrb.gmra.mxu2 %v8025_v59  ;;  %3025 = vmatpush.msra.mxu0 %v6576_v26  ;;  %v6706_v49 = vand.u32 4294901760, %v2955_v38  ;;  %v3095_v5 = vand.u32 4294901760, %v3094_v33  ;;  %v3106_v45 = vsub.f32 %v6660_v6, %v7748_v54  ;;  %v6713_v2 = vsub.f32 %v2956_v0, %v6687_v21  ;;  %v2980_v0 = vld [vmem:[#allocation8 + $0xe0] sm:$0xff] }
 0x1b3   :  { %3167 = vmatpush.msra.mxu2 %v6586_v11  ;;  %3221 = vmatpush.msra.mxu3 %v6576_v26  ;;  %v3083_v40 = vand.u32 4294901760, %v3082_v41  ;;  %v6690_v1 = vand.u32 4294901760, %v2948_v8  ;;  %v3089_v44 = vand.u32 4294901760, %v3088_v36  ;;  %v6722_v41 = vand.u32 4294901760, %v2982_v48 }
 0x1b4   :  { %2944 = vmatmul.f32.vlgmr.msrb.gmra.mxu3 %v8025_v59  ;;  %3027 = vmatpush.msra.mxu0 %v6580_v58  ;;  %v1095_v59 = vpop.f32.mrf.mxu2  ;;  %8033 = vst [vmem:[#allocation17_spill] sm:$0xff] %v6706_v49  ;;  %v6736_v36 = vsub.f32 %v2955_v38, %v6706_v49  ;;  %v3107_v33 = vand.u32 4294901760, %v3106_v45  ;;  %v2979_v45 = vld [vmem:[#allocation8 + $0xd8] sm:$0xff] }
 0x1b5   :  { %3170 = vmatpush.msra.mxu2 %v6595_v30  ;;  %3223 = vmatpush.msra.mxu3 %v6580_v58  ;;  %v1096_v39 = vadd.f32 %v1095_v59, %v1042_v46  ;;  %v7751_v46 = vand.u32 4294901760, %v6695_v53  ;;  %v3101_v59 = vand.u32 4294901760, %v3100_v32  ;;  %v7755_v32 = vand.u32 4294901760, %v6713_v2 }
 0x1b6   :  { %2834 = vmatpush.msrb.mxu1 %v6419_v19  ;;  %3029 = vmatpush.msra.mxu0 %v6597_v18  ;;  %v3077_v19 = vand.u32 4294901760, %v3076_v25  ;;  %v6717_v25 = vsub.f32 %v2948_v8, %v6690_v1  ;;  %v6731_v8 = vsub.f32 %v2983_v24, %v6702_v57 }
 0x1b7   :  { %2838 = vmatmul.f32.vlgmr.msrb.gmra.mxu1 %v8030_v47  ;;  %3173 = vmatpush.msra.mxu2 %v6603_v31  ;;  %v1135_v34 = vadd.f32 %v1134_v29, %v1096_v39  ;;  %v6728_v47 = vand.u32 4294901760, %v2954_v42  ;;  %v2952_v39 = vld [vmem:[#allocation8] sm:$0xff]  ;;  %v1240_v29 = vpop.f32.mrf.mxu1  ;;  %v3124_v38 = vsub.f32 %v6695_v53, %v7751_v46 }
 0x1b8   :  { %3066 = vmatpush.msra.mxu1 %v3065_v4  ;;  %3225 = vmatpush.msra.mxu3 %v6597_v18  ;;  %v7746_v4 = vand.u32 4294901760, %v6685_v22  ;;  %8035 = vst [vmem:[#allocation22_spill] sm:$0xff] %v6731_v8  ;;  %v6762_v54 = vand.u32 4294901760, %v2952_v39  ;;  %v7759_v60 = vand.u32 4294901760, %v6731_v8 }
 0x1b9   :  { %3031 = vmatpush.msra.mxu0 %v6607_v14  ;;  %3176 = vmatpush.msra.mxu2 %v6619_v13  ;;  %8034 = vst [vmem:[#allocation27_spill] sm:$0xff] %v6728_v47 }
 0x1ba   :  { %3072 = vmatpush.msra.mxu1 %v3071_v12  ;;  %3227 = vmatpush.msra.mxu3 %v6607_v14  ;;  %v3112_v12 = vsub.f32 %v6675_v56, %v7747_v61  ;;  %v3118_v24 = vsub.f32 %v6685_v22, %v7746_v4  ;;  %v6760_v61 = vsub.f32 %v2954_v42, %v6728_v47 }
 0x1bb   :  { %3033 = vmatpush.msra.mxu0 %v6621_v50  ;;  %3179 = vmatpush.msra.mxu2 %v6633_v51  ;;  %8038 = vst [vmem:[#allocation26_spill] sm:$0xff] %v6762_v54 }
 0x1bc   :  { %3078 = vmatpush.msra.mxu1 %v3077_v19  ;;  %3229 = vmatpush.msra.mxu3 %v6621_v50  ;;  %v1204_v19 = vadd.f32 %v1203_v55, %v1135_v34  ;;  %v7758_v34 = vand.u32 4294901760, %v6717_v25  ;;  %v6754_v55 = vsub.f32 %v2982_v48, %v6722_v41  ;;  %v3113_v4 = vand.u32 4294901760, %v3112_v12  ;;  %v1281_v10 = vpop.f32.mrf.mxu2 }
 0x1bd   :  { %3035 = vmatpush.msra.mxu0 %v6635_v23  ;;  %3182 = vmatpush.msra.mxu2 %v6647_v3  ;;  %v7760_v48 = vand.u32 4294901760, %v6736_v36  ;;  %v3119_v42 = vand.u32 4294901760, %v3118_v24  ;;  %v3130_v12 = vsub.f32 %v6713_v2, %v7755_v32  ;;  %v6794_v32 = vsub.f32 %v2952_v39, %v6762_v54  ;;  %v1382_v39 = vpop.f32.mrf.mxu3 }
 0x1be   :  { %3084 = vmatpush.msra.mxu1 %v3083_v40  ;;  %3231 = vmatpush.msra.mxu3 %v6635_v23  ;;  %v6738_v40 = vand.u32 4294901760, %v2981_v20  ;;  %8037 = vst [vmem:[#allocation20_spill] sm:$0xff] %v6754_v55  ;;  %v1241_v7 = vadd.f32 %v1240_v29, %v1204_v19  ;;  %v6778_v29 = vand.u32 4294901760, %v2979_v45  ;;  %v8042_v24 = vand.u32 4294901760, %v6760_v61 }
 0x1bf   :  { %3037 = vmatpush.msra.mxu0 %v6649_v17  ;;  %3185 = vmatpush.msra.mxu2 %v6660_v6  ;;  %v3131_v28 = vand.u32 4294901760, %v3130_v12  ;;  %v1436_v12 = vpop.f32.mrf.mxu0 }
 0x1c0   :  { %3090 = vmatpush.msra.mxu1 %v3089_v44  ;;  %3233 = vmatpush.msra.mxu3 %v6649_v17  ;;  %v6744_v44 = vand.u32 4294901760, %v2953_v63  ;;  %v6769_v46 = vsub.f32 %v2981_v20, %v6738_v40  ;;  %v3055_v20 = vsub.f32 %v6717_v25, %v7758_v34  ;;  %v1282_v34 = vadd.f32 %v1281_v10, %v1241_v7 }
 0x1c1   :  { %3039 = vmatpush.msra.mxu0 %v6662_v52  ;;  %3188 = vmatpush.msra.mxu2 %v6675_v56  ;;  %v6810_v10 = vsub.f32 %v2979_v45, %v6778_v29 }
 0x1c2   :  { %3096 = vmatpush.msra.mxu1 %v3095_v5  ;;  %3235 = vmatpush.msra.mxu3 %v6662_v52  ;;  %8036 = vst [vmem:[#allocation29_spill] sm:$0xff] %v6744_v44  ;;  %v6756_v5 = vand.u32 4294901760, %v2980_v0  ;;  %v6776_v19 = vsub.f32 %v2953_v63, %v6744_v44  ;;  %v3405_v63 = vsub.f32 %v6731_v8, %v7759_v60  ;;  %v6805_v60 = vand.u32 4294901760, %v2977_v9 }
 0x1c3   :  { %3041 = vmatpush.msra.mxu0 %v6668_v37  ;;  %3191 = vmatpush.msra.mxu2 %v6685_v22  ;;  %8039 = vst [vmem:[#allocation18_spill] sm:$0xff] %v6769_v46  ;;  %v3056_v7 = vand.u32 4294901760, %v3055_v20  ;;  %v3142_v8 = vsub.f32 %v6760_v61, %v8042_v24  ;;  %v1475_v24 = vpop.f32.mrf.mxu1 }
 0x1c4   :  { %3102 = vmatpush.msra.mxu1 %v3101_v59  ;;  %3237 = vmatpush.msra.mxu3 %v6668_v37  ;;  %v2978_v59 = vld [vmem:[#allocation8 + $0xd0] sm:$0xff]  ;;  %v6787_v62 = vsub.f32 %v2980_v0, %v6756_v5  ;;  %v3406_v45 = vand.u32 4294901760, %v3405_v63  ;;  %v6834_v63 = vsub.f32 %v2977_v9, %v6805_v60  ;;  %v2973_v37 = vld [vmem:[#allocation8 + $0xa8] sm:$0xff] }
 0x1c5   :  { %3043 = vmatpush.msra.mxu0 %v6687_v21  ;;  %3194 = vmatpush.msra.mxu2 %v6695_v53  ;;  %v6797_v16 = vand.u32 4294901760, %v2978_v59 }
 0x1c6   :  { %3108 = vmatpush.msra.mxu1 %v3107_v33  ;;  %3239 = vmatpush.msra.mxu3 %v6687_v21  ;;  %v3125_v33 = vand.u32 4294901760, %v3124_v38  ;;  %8040 = vst [vmem:[#allocation16_spill] sm:$0xff] %v6787_v62  ;;  %v2976_v38 = vld [vmem:[#allocation8 + $0xc0] sm:$0xff] }
 0x1c7   :  { %3045 = vmatpush.msra.mxu0 %v6706_v49  ;;  %3197 = vmatpush.msra.mxu2 %v6713_v2  ;;  %v6826_v21 = vsub.f32 %v2978_v59, %v6797_v16  ;;  %v8044_v59 = vand.u32 4294901760, %v6776_v19 }
 0x1c8   :  { %3114 = vmatpush.msra.mxu1 %v3113_v4  ;;  %3241 = vmatpush.msra.mxu3 %v6706_v49  ;;  %v3136_v4 = vsub.f32 %v6736_v36, %v7760_v48  ;;  %v8041_v48 = vand.u32 4294901760, %v6754_v55 }
 0x1c9   :  { %3047 = vmatpush.msra.mxu0 %v6728_v47  ;;  %3200 = vmatpush.msra.mxu2 %v6736_v36 }
 0x1ca   :  { %3120 = vmatpush.msra.mxu1 %v3119_v42  ;;  %3243 = vmatpush.msra.mxu3 %v6728_v47  ;;  %v3411_v0 = vsub.f32 %v6754_v55, %v8041_v48  ;;  %v6818_v42 = vand.u32 4294901760, %v2976_v38  ;;  %v2975_v47 = vld [vmem:[#allocation8 + $0xb8] sm:$0xff]  ;;  %v1383_v48 = vadd.f32 %v1382_v39, %v1282_v34  ;;  %v3137_v49 = vand.u32 4294901760, %v3136_v4  ;;  %v2974_v55 = vld [vmem:[#allocation8 + $0xb0] sm:$0xff] }
 0x1cb   :  { %3049 = vmatpush.msra.mxu0 %v6744_v44  ;;  %3203 = vmatpush.msra.mxu2 %v6760_v61  ;;  %v3148_v34 = vsub.f32 %v6776_v19, %v8044_v59  ;;  %v6841_v20 = vand.u32 4294901760, %v2975_v47  ;;  %v8047_v59 = vand.u32 4294901760, %v6571_v27  ;;  %v3143_v39 = vand.u32 4294901760, %v3142_v8  ;;  %v1544_v27 = vpop.f32.mrf.mxu2 }
 0x1cc   :  { %3126 = vmatpush.msra.mxu1 %v3125_v33  ;;  %3245 = vmatpush.msra.mxu3 %v6744_v44  ;;  %v8043_v33 = vand.u32 4294901760, %v6769_v46  ;;  %v1437_v4 = vadd.f32 %v1436_v12, %v1383_v48  ;;  %v3412_v9 = vand.u32 4294901760, %v3411_v0  ;;  %v8048_v12 = vand.u32 4294901760, %v6794_v32 }
 0x1cd   :  { %3051 = vmatpush.msra.mxu0 %v6762_v54  ;;  %3206 = vmatpush.msra.mxu2 %v6776_v19  ;;  %v7775_v48 = vand.u32 4294901760, %v6826_v21  ;;  %v6857_v0 = vand.u32 4294901760, %v2974_v55  ;;  %v8049_v8 = vand.u32 4294901760, %v6586_v11  ;;  %v8051_v11 = vand.u32 4294901760, %v6595_v30  ;;  %v2970_v30 = vld [vmem:[#allocation8 + $0x90] sm:$0xff] }
 0x1ce   :  { %v3417_v44 = vsub.f32 %v6769_v46, %v8043_v33  ;;  %3132 = vmatpush.msra.mxu1 %v3131_v28  ;;  %3247 = vmatpush.msra.mxu3 %v6762_v54  ;;  %v8045_v33 = vand.u32 4294901760, %v6717_v25  ;;  %v8046_v46 = vand.u32 4294901760, %v6787_v62  ;;  %v6849_v54 = vsub.f32 %v2976_v38, %v6818_v42 }
 0x1cf   :  { %3057 = vmatmul.f32.vlgmr.msra.gmra.mxu0 %v3056_v7  ;;  %v3154_v7 = vsub.f32 %v6794_v32, %v8048_v12  ;;  %3209 = vmatpush.msra.mxu2 %v6794_v32 }
 0x1d0   :  { %3251 = vmatmul.f32.vlgmr.msra.gmra.mxu3 %v8045_v33  ;;  %v3423_v28 = vsub.f32 %v6787_v62, %v8046_v46  ;;  %3258 = vmatpush.msrb.mxu0 %v8047_v59  ;;  %v1476_v33 = vadd.f32 %v1475_v24, %v1437_v4  ;;  %v3418_v46 = vand.u32 4294901760, %v3417_v44  ;;  %v2972_v62 = vld [vmem:[#allocation8 + $0xa0] sm:$0xff]  ;;  %v8050_v59 = vand.u32 4294901760, %v6810_v10 }
 0x1d1   :  { %3407 = vmatpush.msrb.mxu3 %v3406_v45  ;;  %3138 = vmatpush.msra.mxu1 %v3137_v49  ;;  %v3149_v45 = vand.u32 4294901760, %v3148_v34  ;;  %v6868_v24 = vsub.f32 %v2975_v47, %v6841_v20  ;;  %v6870_v49 = vand.u32 4294901760, %v2973_v37  ;;  %v7776_v4 = vand.u32 4294901760, %v6849_v54 }
 0x1d2   :  { %3212 = vmatmul.f32.vlgmr.msra.gmra.mxu2 %v6717_v25  ;;  %3262 = vmatpush.msrb.mxu0 %v8049_v8  ;;  %v3429_v12 = vsub.f32 %v6810_v10, %v8050_v59  ;;  %v3424_v44 = vand.u32 4294901760, %v3423_v28  ;;  %v2971_v25 = vld [vmem:[#allocation8 + $0x98] sm:$0xff]  ;;  %v3155_v34 = vand.u32 4294901760, %v3154_v7  ;;  %v3435_v8 = vsub.f32 %v6826_v21, %v7775_v48  ;;  %v1581_v28 = vpop.f32.mrf.mxu3 }
 0x1d3   :  { %3362 = vmatpush.msrb.mxu2 %v6702_v57  ;;  %3413 = vmatpush.msrb.mxu3 %v3412_v9  ;;  %v6880_v47 = vsub.f32 %v2974_v55, %v6857_v0  ;;  %v6882_v59 = vand.u32 4294901760, %v2972_v62  ;;  %v1545_v38 = vadd.f32 %v1544_v27, %v1476_v33  ;;  %v8052_v9 = vand.u32 4294901760, %v6834_v63  ;;  %v2969_v27 = vld [vmem:[#allocation8 + $0x88] sm:$0xff] }
 0x1d4   :  { %3144 = vmatpush.msra.mxu1 %v3143_v39  ;;  %3266 = vmatpush.msrb.mxu0 %v8051_v11  ;;  %v8053_v7 = vand.u32 4294901760, %v6603_v31  ;;  %v3430_v11 = vand.u32 4294901760, %v3429_v12  ;;  %v3452_v55 = vand.u32 4294901760, %v6868_v24  ;;  %v6892_v48 = vsub.f32 %v2973_v37, %v6870_v49 }
 0x1d5   :  { %3364 = vmatpush.msrb.mxu2 %v6722_v41  ;;  %3419 = vmatpush.msrb.mxu3 %v3418_v46  ;;  %v3441_v39 = vsub.f32 %v6834_v63, %v8052_v9  ;;  %v6894_v33 = vand.u32 4294901760, %v2971_v25  ;;  %v3447_v46 = vsub.f32 %v6849_v54, %v7776_v4  ;;  %v8054_v31 = vand.u32 4294901760, %v6619_v13  ;;  %v2968_v4 = vld [vmem:[#allocation8 + $0x80] sm:$0xff] }
 0x1d6   :  { %3150 = vmatpush.msra.mxu1 %v3149_v45  ;;  %3270 = vmatpush.msrb.mxu0 %v8053_v7  ;;  %v3436_v45 = vand.u32 4294901760, %v3435_v8  ;;  %v3458_v12 = vand.u32 4294901760, %v6880_v47  ;;  %v6904_v37 = vsub.f32 %v2972_v62, %v6882_v59  ;;  %v6906_v9 = vand.u32 4294901760, %v2970_v30 }
 0x1d7   :  { %3366 = vmatpush.msrb.mxu2 %v6738_v40  ;;  %3425 = vmatpush.msrb.mxu3 %v3424_v44  ;;  %v1582_v7 = vadd.f32 %v1581_v28, %v1545_v38  ;;  %v3442_v44 = vand.u32 4294901760, %v3441_v39  ;;  %v3453_v13 = vsub.f32 %v6868_v24, %v3452_v55  ;;  %v6916_v62 = vsub.f32 %v2971_v25, %v6894_v33 }
 0x1d8   :  { %3156 = vmatpush.msra.mxu1 %v3155_v34  ;;  %3274 = vmatpush.msrb.mxu0 %v8054_v31  ;;  %v3464_v34 = vand.u32 4294901760, %v6892_v48  ;;  %v6918_v8 = vand.u32 4294901760, %v2969_v27  ;;  %v8055_v38 = vand.u32 4294901760, %v6633_v51  ;;  %v3448_v39 = vand.u32 4294901760, %v3447_v46 }
 0x1d9   :  { %3158 = vmatmul.f32.vlgmr.msra.gmra.mxu1 %v6690_v1  ;;  %3368 = vmatpush.msrb.mxu2 %v6756_v5  ;;  %v3470_v28 = vand.u32 4294901760, %v6904_v37  ;;  %v6929_v25 = vsub.f32 %v2970_v30, %v6906_v9  ;;  %v2949_v31 = vmax.f32 %v1582_v7, 0.0  ;;  %v8056_v51 = vand.u32 4294901760, %v6647_v3 }
 0x1da   :  { %3325 = vmatpush.msrb.mxu1 %v6556_v43  ;;  %3431 = vmatpush.msrb.mxu3 %v3430_v11  ;;  %v3459_v43 = vsub.f32 %v6880_v47, %v3458_v12  ;;  %v6931_v11 = vand.u32 4294901760, %v2968_v4  ;;  %v3465_v46 = vsub.f32 %v6892_v48, %v3464_v34  ;;  %v6942_v30 = vsub.f32 %v2969_v27, %v6918_v8 }
 0x1db   :  { %3278 = vmatpush.msrb.mxu0 %v8055_v38  ;;  %3370 = vmatpush.msrb.mxu2 %v6778_v29  ;;  %v8057_v7 = vand.u32 4294901760, %v6660_v6  ;;  %v3471_v3 = vsub.f32 %v6904_v37, %v3470_v28  ;;  %v8058_v27 = vand.u32 4294901760, %v6675_v56  ;;  %v6958_v6 = vand.u32 4294901760, %v2949_v31 }
 0x1dc   :  { %3327 = vmatpush.msrb.mxu1 %v6566_v15  ;;  %3437 = vmatpush.msrb.mxu3 %v3436_v45  ;;  %v3454_v15 = vand.u32 4294901760, %v3453_v13  ;;  %v3476_v45 = vand.u32 4294901760, %v6916_v62  ;;  %v6953_v13 = vsub.f32 %v2968_v4, %v6931_v11  ;;  %v8059_v4 = vand.u32 4294901760, %v6685_v22 }
 0x1dd   :  { %3282 = vmatpush.msrb.mxu0 %v8056_v51  ;;  %3372 = vmatpush.msrb.mxu2 %v6797_v16  ;;  %v3472_v56 = vand.u32 4294901760, %v3471_v3  ;;  %v8060_v51 = vand.u32 4294901760, %v6695_v53  ;;  %v6977_v22 = vsub.f32 %v2949_v31, %v6958_v6  ;;  %v8064_v3 = vand.u32 4294901760, %v6776_v19  ;;  %v1723_v19 = vpop.f32.mrf.mxu1 }
 0x1de   :  { %3329 = vmatpush.msrb.mxu1 %v6576_v26  ;;  %3443 = vmatpush.msrb.mxu3 %v3442_v44  ;;  %v3460_v26 = vand.u32 4294901760, %v3459_v43  ;;  %v3482_v44 = vand.u32 4294901760, %v6929_v25  ;;  %v3477_v38 = vsub.f32 %v6916_v62, %v3476_v45  ;;  %v3494_v43 = vand.u32 4294901760, %v6953_v13 }
 0x1df   :  { %3286 = vmatpush.msrb.mxu0 %v8057_v7  ;;  %3374 = vmatpush.msrb.mxu2 %v6805_v60  ;;  %v3395_v7 = vand.u32 4294901760, %v6977_v22 }
 0x1e0   :  { %3331 = vmatpush.msrb.mxu1 %v6580_v58  ;;  %3449 = vmatpush.msrb.mxu3 %v3448_v39  ;;  %v3466_v58 = vand.u32 4294901760, %v3465_v46  ;;  %v3488_v39 = vand.u32 4294901760, %v6942_v30  ;;  %v8061_v46 = vand.u32 4294901760, %v6713_v2  ;;  %v3495_v31 = vsub.f32 %v6953_v13, %v3494_v43 }
 0x1e1   :  { %3290 = vmatpush.msrb.mxu0 %v8058_v27  ;;  %3376 = vmatpush.msrb.mxu2 %v6818_v42  ;;  %v1622_v27 = vpop.f32.mrf.mxu0 }
 0x1e2   :  { %3333 = vmatpush.msrb.mxu1 %v6597_v18  ;;  %3455 = vmatpush.msrb.mxu3 %v3454_v15  ;;  %v3483_v18 = vsub.f32 %v6929_v25, %v3482_v44  ;;  %v3489_v15 = vsub.f32 %v6942_v30, %v3488_v39 }
 0x1e3   :  { %3294 = vmatpush.msrb.mxu0 %v8059_v4  ;;  %3378 = vmatpush.msrb.mxu2 %v6841_v20 }
 0x1e4   :  { %3335 = vmatpush.msrb.mxu1 %v6607_v14  ;;  %3461 = vmatpush.msrb.mxu3 %v3460_v26  ;;  %v3478_v14 = vand.u32 4294901760, %v3477_v38  ;;  %v3484_v53 = vand.u32 4294901760, %v3483_v18  ;;  %v3490_v2 = vand.u32 4294901760, %v3489_v15  ;;  %v8063_v26 = vand.u32 4294901760, %v6760_v61  ;;  %v8065_v61 = vld [vmem:[#allocation28_spill] sm:$0xff]  ;;  %v8068_v38 = vld [vmem:[#allocation22_spill] sm:$0xff] }
 0x1e5   :  { %3298 = vmatpush.msrb.mxu0 %v8060_v51  ;;  %3380 = vmatpush.msrb.mxu2 %v6857_v0  ;;  %v8071_v51 = vand.u32 4294901760, %v8068_v38  ;;  %v8072_v15 = vld [vmem:[#allocation27_spill] sm:$0xff] }
 0x1e6   :  { %3337 = vmatpush.msrb.mxu1 %v6621_v50  ;;  %3467 = vmatpush.msrb.mxu3 %v3466_v58  ;;  %v8062_v50 = vand.u32 4294901760, %v6736_v36  ;;  %v214_v36 = vperm.slane %v6480_v35, 2  ;;  %v8066_v58 = vand.u32 4294901760, %v6794_v32  ;;  %v8070_v32 = vld [vmem:[#allocation20_spill] sm:$0xff] }
 0x1e7   :  { %3302 = vmatpush.msrb.mxu0 %v8061_v46  ;;  %3382 = vmatpush.msrb.mxu2 %v6870_v49  ;;  %v8073_v46 = vld [vmem:[#allocation18_spill] sm:$0xff] }
 0x1e8   :  { %3339 = vmatpush.msrb.mxu1 %v6635_v23  ;;  %3473 = vmatpush.msrb.mxu3 %v3472_v56  ;;  %v3496_v23 = vand.u32 4294901760, %v3495_v31  ;;  %v1623_v35 = vadd.f32 %v1622_v27, %v214_v36  ;;  %v8069_v56 = vld [vmem:[#allocation17_spill] sm:$0xff]  ;;  %v8078_v36 = vld [vmem:[#allocation26_spill] sm:$0xff]  ;;  %v8080_v27 = vand.u32 4294901760, %v6810_v10 }
 0x1e9   :  { %3306 = vmatpush.msrb.mxu0 %v8062_v50  ;;  %3384 = vmatpush.msrb.mxu2 %v6882_v59  ;;  %v8075_v31 = vld [vmem:[#allocation29_spill] sm:$0xff]  ;;  %v8076_v50 = vld [vmem:[#allocation16_spill] sm:$0xff] }
 0x1ea   :  { %3341 = vmatpush.msrb.mxu1 %v6649_v17  ;;  %3479 = vmatpush.msrb.mxu3 %v3478_v14  ;;  %v3396_v17 = vsub.f32 %v6977_v22, %v3395_v7  ;;  %v1724_v18 = vadd.f32 %v1723_v19, %v1623_v35  ;;  %v1777_v14 = vpop.f32.mrf.mxu2 }
 0x1eb   :  { %3310 = vmatpush.msrb.mxu0 %v8063_v26  ;;  %3386 = vmatpush.msrb.mxu2 %v6894_v33  ;;  %v8077_v26 = vand.u32 4294901760, %v8073_v46 }
 0x1ec   :  { %3343 = vmatpush.msrb.mxu1 %v6662_v52  ;;  %3485 = vmatpush.msrb.mxu3 %v3484_v53  ;;  %v8067_v52 = vld [vmem:[#allocation23_spill] sm:$0xff]  ;;  %v3397_v4 = vand.u32 4294901760, %v3396_v17  ;;  %v8074_v53 = vand.u32 4294901760, %v8070_v32 }
 0x1ed   :  { %3314 = vmatpush.msrb.mxu0 %v8064_v3  ;;  %3388 = vmatpush.msrb.mxu2 %v6906_v9  ;;  %v8079_v3 = vand.u32 4294901760, %v8076_v50 }
 0x1ee   :  { %3345 = vmatpush.msrb.mxu1 %v8065_v61  ;;  %3491 = vmatpush.msrb.mxu3 %v3490_v2  ;;  %v1778_v2 = vadd.f32 %v1777_v14, %v1724_v18  ;;  %v1885_v61 = vpop.f32.mrf.mxu0  ;;  %v2992_v18 = vld [vmem:[#allocation8 + $0x140] sm:$0xff] }
 0x1ef   :  { %3318 = vmatpush.msrb.mxu0 %v8066_v58  ;;  %3390 = vmatpush.msrb.mxu2 %v6918_v8  ;;  %v1922_v58 = vpop.f32.mrf.mxu1 }
 0x1f0   :  { %3347 = vmatpush.msrb.mxu1 %v8067_v52  ;;  %3497 = vmatpush.msrb.mxu3 %v3496_v23  ;;  %v1816_v23 = vpop.f32.mrf.mxu3  ;;  %v2994_v52 = vld [vmem:[#allocation8 + $0x150] sm:$0xff] }
 0x1f1   :  { %3320 = vmatmul.f32.vlgmr.msrb.gmra.mxu0 %v6690_v1  ;;  %3499 = vmatmul.f32.vlgmr.msrb.gmra.mxu3 %v6958_v6  ;;  %v1817_v17 = vadd.f32 %v1816_v23, %v1778_v2  ;;  %v7120_v19 = vand.u32 4294901760, %v2994_v52 }
 0x1f2   :  { %3505 = vmatpush.msra.mxu0 %v8068_v38  ;;  %3666 = vmatpush.msra.mxu3 %v6702_v57 }
 0x1f3   :  { %3349 = vmatpush.msrb.mxu1 %v8069_v56  ;;  %3392 = vmatpush.msrb.mxu2 %v6931_v11 }
 0x1f4   :  { %3398 = vmatmul.f32.vlgmr.msrb.gmra.mxu2 %v3397_v4  ;;  %3508 = vmatpush.msra.mxu0 %v8070_v32 }
 0x1f5   :  { %3599 = vmatpush.msra.mxu2 %v8071_v51  ;;  %3668 = vmatpush.msra.mxu3 %v6722_v41 }
 0x1f6   :  { %3351 = vmatpush.msrb.mxu1 %v8072_v15  ;;  %3511 = vmatpush.msra.mxu0 %v8073_v46 }
 0x1f7   :  { %3603 = vmatpush.msra.mxu2 %v8074_v53  ;;  %3670 = vmatpush.msra.mxu3 %v6738_v40  ;;  %v7146_v53 = vsub.f32 %v2994_v52, %v7120_v19 }
 0x1f8   :  { %3353 = vmatpush.msrb.mxu1 %v8075_v31  ;;  %3514 = vmatpush.msra.mxu0 %v8076_v50  ;;  %v7148_v31 = vand.u32 4294901760, %v2992_v18  ;;  %v2990_v50 = vld [vmem:[#allocation8 + $0x130] sm:$0xff] }
 0x1f9   :  { %3607 = vmatpush.msra.mxu2 %v8077_v26  ;;  %3672 = vmatpush.msra.mxu3 %v6756_v5 }
 0x1fa   :  { %3355 = vmatpush.msrb.mxu1 %v8078_v36  ;;  %3517 = vmatpush.msra.mxu0 %v6810_v10  ;;  %v8082_v10 = vand.u32 4294901760, %v6834_v63 }
 0x1fb   :  { %3357 = vmatmul.f32.vlgmr.msrb.gmra.mxu1 %v6690_v1  ;;  %3611 = vmatpush.msra.mxu2 %v8079_v3  ;;  %v8081_v1 = vand.u32 4294901760, %v6826_v21 }
 0x1fc   :  { %3558 = vmatpush.msra.mxu1 %v6702_v57  ;;  %3674 = vmatpush.msra.mxu3 %v6778_v29  ;;  %v1886_v57 = vadd.f32 %v1885_v61, %v1817_v17  ;;  %v2989_v61 = vld [vmem:[#allocation8 + $0x128] sm:$0xff] }
 0x1fd   :  { %3520 = vmatpush.msra.mxu0 %v6826_v21  ;;  %3615 = vmatpush.msra.mxu2 %v8080_v27  ;;  %v8083_v21 = vand.u32 4294901760, %v6849_v54  ;;  %v7170_v27 = vand.u32 4294901760, %v2990_v50 }
 0x1fe   :  { %3560 = vmatpush.msra.mxu1 %v6722_v41  ;;  %3676 = vmatpush.msra.mxu3 %v6797_v16  ;;  %v1923_v41 = vadd.f32 %v1922_v58, %v1886_v57  ;;  %v7782_v58 = vand.u32 4294901760, %v7146_v53 }
 0x1ff   :  { %3523 = vmatpush.msra.mxu0 %v6834_v63  ;;  %3619 = vmatpush.msra.mxu2 %v8081_v1 }
 0x200   :  { %3562 = vmatpush.msra.mxu1 %v6738_v40  ;;  %3678 = vmatpush.msra.mxu3 %v6805_v60  ;;  %v1963_v40 = vpop.f32.mrf.mxu2 }
 0x201   :  { %3526 = vmatpush.msra.mxu0 %v6849_v54  ;;  %3623 = vmatpush.msra.mxu2 %v8082_v10  ;;  %v2999_v54 = vld [vmem:[#allocation8 + $0x178] sm:$0xff]  ;;  %v7175_v10 = vsub.f32 %v2992_v18, %v7148_v31 }
 0x202   :  { %3564 = vmatpush.msra.mxu1 %v6756_v5  ;;  %3680 = vmatpush.msra.mxu3 %v6818_v42  ;;  %v1964_v5 = vadd.f32 %v1963_v40, %v1923_v41  ;;  %v7073_v63 = vand.u32 4294901760, %v2999_v54  ;;  %v2988_v40 = vld [vmem:[#allocation8 + $0x120] sm:$0xff] }
 0x203   :  { %3529 = vmatpush.msra.mxu0 %v6868_v24  ;;  %3627 = vmatpush.msra.mxu2 %v8083_v21  ;;  %v2118_v24 = vpop.f32.mrf.mxu0 }
 0x204   :  { %3566 = vmatpush.msra.mxu1 %v6778_v29  ;;  %3682 = vmatpush.msra.mxu3 %v6841_v20  ;;  %v2998_v29 = vld [vmem:[#allocation8 + $0x170] sm:$0xff] }
 0x205   :  { %3532 = vmatpush.msra.mxu0 %v6880_v47  ;;  %3631 = vmatpush.msra.mxu2 %v3452_v55  ;;  %v2996_v47 = vld [vmem:[#allocation8 + $0x160] sm:$0xff] }
 0x206   :  { %3568 = vmatpush.msra.mxu1 %v6797_v16  ;;  %3684 = vmatpush.msra.mxu3 %v6857_v0  ;;  %v2064_v16 = vpop.f32.mrf.mxu3 }
 0x207   :  { %3535 = vmatpush.msra.mxu0 %v6892_v48  ;;  %3635 = vmatpush.msra.mxu2 %v3458_v12  ;;  %v7080_v48 = vand.u32 4294901760, %v2998_v29  ;;  %v2065_v55 = vadd.f32 %v2064_v16, %v1964_v5  ;;  %v7088_v12 = vsub.f32 %v2999_v54, %v7073_v63  ;;  %v7195_v16 = vsub.f32 %v2990_v50, %v7170_v27  ;;  %v3013_v50 = vld [vmem:[#allocation8 + $0x1e8] sm:$0xff] }
 0x208   :  { %3570 = vmatpush.msra.mxu1 %v6805_v60  ;;  %3686 = vmatpush.msra.mxu3 %v6870_v49  ;;  %v2997_v60 = vld [vmem:[#allocation8 + $0x168] sm:$0xff] }
 0x209   :  { %3538 = vmatpush.msra.mxu0 %v6904_v37  ;;  %3639 = vmatpush.msra.mxu2 %v3464_v34  ;;  %v2995_v37 = vld [vmem:[#allocation8 + $0x158] sm:$0xff]  ;;  %v2119_v34 = vadd.f32 %v2118_v24, %v2065_v55  ;;  %v7201_v55 = vand.u32 4294901760, %v2988_v40 }
 0x20a   :  { %3572 = vmatpush.msra.mxu1 %v6818_v42  ;;  %3688 = vmatpush.msra.mxu3 %v6882_v59  ;;  %v2157_v42 = vpop.f32.mrf.mxu1 }
 0x20b   :  { %3541 = vmatpush.msra.mxu0 %v6916_v62  ;;  %3643 = vmatpush.msra.mxu2 %v3470_v28  ;;  %v7095_v28 = vand.u32 4294901760, %v2996_v47  ;;  %v2158_v62 = vadd.f32 %v2157_v42, %v2119_v34  ;;  %v2304_v56 = vpop.f32.mrf.mxu0  ;;  %8085 = vst [vmem:[#allocation19_spill] sm:$0xff] %v7201_v55  ;;  %v7779_v42 = vand.u32 4294901760, %v7175_v10 }
 0x20c   :  { %3574 = vmatpush.msra.mxu1 %v6841_v20  ;;  %3690 = vmatpush.msra.mxu3 %v6894_v33  ;;  %v7090_v20 = vand.u32 4294901760, %v2997_v60 }
 0x20d   :  { %3544 = vmatpush.msra.mxu0 %v6929_v25  ;;  %3647 = vmatpush.msra.mxu2 %v3476_v45  ;;  %v7105_v45 = vand.u32 4294901760, %v2995_v37  ;;  %v2226_v25 = vpop.f32.mrf.mxu2 }
 0x20e   :  { %3576 = vmatpush.msra.mxu1 %v6857_v0  ;;  %3692 = vmatpush.msra.mxu3 %v6906_v9  ;;  %v7100_v0 = vsub.f32 %v2998_v29, %v7080_v48  ;;  %v2227_v4 = vadd.f32 %v2226_v25, %v2158_v62  ;;  %v2263_v51 = vpop.f32.mrf.mxu3  ;;  %v7189_v29 = vand.u32 4294901760, %v2989_v61 }
 0x20f   :  { %3547 = vmatpush.msra.mxu0 %v6942_v30  ;;  %3651 = vmatpush.msra.mxu2 %v3482_v44  ;;  %v7788_v44 = vand.u32 4294901760, %v7088_v12  ;;  %v7116_v30 = vsub.f32 %v2996_v47, %v7095_v28  ;;  %v7127_v32 = vsub.f32 %v2995_v37, %v7105_v45  ;;  %v3776_v47 = vsub.f32 %v7146_v53, %v7782_v58  ;;  %v2987_v37 = vld [vmem:[#allocation8 + $0x118] sm:$0xff] }
 0x210   :  { %3578 = vmatpush.msra.mxu1 %v6870_v49  ;;  %3694 = vmatpush.msra.mxu3 %v6918_v8  ;;  %v7110_v49 = vsub.f32 %v2997_v60, %v7090_v20  ;;  %v7787_v38 = vand.u32 4294901760, %v7100_v0  ;;  %v7150_v2 = vadd.f32 %v2263_v51, %v2227_v4  ;;  %8084 = vst [vmem:[#allocation21_spill] sm:$0xff] %v7189_v29  ;;  %v3015_v60 = vld [vmem:[#allocation8 + $0x1f8] sm:$0xff]  ;;  %v7220_v18 = vand.u32 4294901760, %v2987_v37 }
 0x211   :  { %3550 = vmatpush.msra.mxu0 %v6953_v13  ;;  %3655 = vmatpush.msra.mxu2 %v3488_v39  ;;  %v2993_v39 = vld [vmem:[#allocation8 + $0x148] sm:$0xff]  ;;  %v3746_v14 = vsub.f32 %v7088_v12, %v7788_v44  ;;  %v7784_v13 = vand.u32 4294901760, %v7116_v30  ;;  %v7783_v26 = vand.u32 4294901760, %v7127_v32  ;;  %v7216_v4 = vand.u32 4294901760, %v3015_v60  ;;  %v3008_v44 = vld [vmem:[#allocation8 + $0x1c0] sm:$0xff] }
 0x212   :  { %3580 = vmatpush.msra.mxu1 %v6882_v59  ;;  %3696 = vmatpush.msra.mxu3 %v6931_v11  ;;  %v4414_v59 = vld [vmem:[#allocation7] sm:$0xf]  ;;  %v7134_v15 = vand.u32 4294901760, %v2993_v39  ;;  %v3752_v46 = vsub.f32 %v7100_v0, %v7787_v38  ;;  %v2950_v21 = vmax.f32 %v7150_v2, 0.0  ;;  %8086 = vst [vmem:[#allocation24_spill] sm:$0xff] %v7220_v18  ;;  %v7777_v51 = vand.u32 4294901760, %v7195_v16 }
 0x213   :  { %3553 = vmatmul.f32.vlgmr.msra.gmra.mxu0 %v6977_v22  ;;  %3698 = vmatmul.f32.vlgmr.msra.gmra.mxu3 %v6958_v6  ;;  %v215_v35 = vperm.slane %v4414_v59, 3  ;;  %v3747_v23 = vand.u32 4294901760, %v3746_v14 }
 0x214   :  { %3703 = vmatpush.msrb.mxu0 %v7073_v63  ;;  %3899 = vmatpush.msrb.mxu3 %v7073_v63  ;;  %v7161_v3 = vsub.f32 %v2993_v39, %v7134_v15  ;;  %v3753_v57 = vand.u32 4294901760, %v3752_v46  ;;  %v7204_v34 = vand.u32 4294901760, %v2950_v21  ;;  %v7213_v39 = vsub.f32 %v2989_v61, %v7189_v29 }
 0x215   :  { %3582 = vmatpush.msra.mxu1 %v6894_v33  ;;  %3659 = vmatpush.msra.mxu2 %v3494_v43  ;;  %v7786_v33 = vand.u32 4294901760, %v7110_v49  ;;  %v2991_v43 = vld [vmem:[#allocation8 + $0x138] sm:$0xff]  ;;  %v2459_v41 = vpop.f32.mrf.mxu2  ;;  %v7228_v46 = vsub.f32 %v2988_v40, %v7201_v55  ;;  %v7253_v40 = vsub.f32 %v2987_v37, %v7220_v18 }
 0x216   :  { %3661 = vmatmul.f32.vlgmr.msra.gmra.mxu2 %v6958_v6  ;;  %3705 = vmatpush.msrb.mxu0 %v7080_v48  ;;  %v2305_v6 = vadd.f32 %v2304_v56, %v215_v35  ;;  %v7163_v17 = vand.u32 4294901760, %v2991_v43  ;;  %v7780_v22 = vand.u32 4294901760, %v7161_v3  ;;  %v2498_v62 = vpop.f32.mrf.mxu3  ;;  %v2986_v35 = vld [vmem:[#allocation8 + $0x110] sm:$0xff]  ;;  %v7231_v2 = vsub.f32 %v2950_v21, %v7204_v34 }
 0x217   :  { %3846 = vmatpush.msrb.mxu2 %v7088_v12  ;;  %3901 = vmatpush.msrb.mxu3 %v7080_v48  ;;  %v3758_v36 = vsub.f32 %v7110_v49, %v7786_v33  ;;  %v3014_v56 = vld [vmem:[#allocation8 + $0x1f0] sm:$0xff]  ;;  %v7245_v21 = vsub.f32 %v3015_v60, %v7216_v4 }
 0x218   :  { %3584 = vmatpush.msra.mxu1 %v6906_v9  ;;  %3707 = vmatpush.msrb.mxu0 %v7090_v20  ;;  %v2405_v9 = vpop.f32.mrf.mxu1  ;;  %v7187_v5 = vsub.f32 %v2991_v43, %v7163_v17  ;;  %v3782_v25 = vsub.f32 %v7161_v3, %v7780_v22  ;;  %v3777_v43 = vand.u32 4294901760, %v3776_v47  ;;  %v3010_v22 = vld [vmem:[#allocation8 + $0x1d0] sm:$0xff] }
 0x219   :  { %3849 = vmatpush.msrb.mxu2 %v7100_v0  ;;  %3903 = vmatpush.msrb.mxu3 %v7090_v20  ;;  %v2406_v1 = vadd.f32 %v2405_v9, %v2305_v6  ;;  %v3759_v54 = vand.u32 4294901760, %v3758_v36  ;;  %v3788_v6 = vsub.f32 %v7175_v10, %v7779_v42  ;;  %v2567_v9 = vpop.f32.mrf.mxu0  ;;  %v2985_v36 = vld [vmem:[#allocation8 + $0x108] sm:$0xff]  ;;  %8088 = vst [vmem:[#allocation15_spill] sm:$0xff] %v7245_v21  ;;  %v7790_v42 = vand.u32 4294901760, %v7245_v21 }
 0x21a   :  { %3586 = vmatpush.msra.mxu1 %v6918_v8  ;;  %3709 = vmatpush.msrb.mxu0 %v7095_v28  ;;  %v3764_v8 = vsub.f32 %v7116_v30, %v7784_v13  ;;  %v7778_v59 = vand.u32 4294901760, %v7187_v5  ;;  %v3783_v61 = vand.u32 4294901760, %v3782_v25  ;;  %v7258_v47 = vand.u32 4294901760, %v2985_v36 }
 0x21b   :  { %3852 = vmatpush.msrb.mxu2 %v7110_v49  ;;  %3905 = vmatpush.msrb.mxu3 %v7095_v28  ;;  %v2460_v24 = vadd.f32 %v2459_v41, %v2406_v1  ;;  %v3012_v41 = vld [vmem:[#allocation8 + $0x1e0] sm:$0xff]  ;;  %v3789_v60 = vand.u32 4294901760, %v3788_v6  ;;  %v3011_v6 = vld [vmem:[#allocation8 + $0x1d8] sm:$0xff]  ;;  %v7311_v38 = vand.u32 4294901760, %v3010_v22 }
 0x21c   :  { %3588 = vmatpush.msra.mxu1 %v6931_v11  ;;  %3711 = vmatpush.msrb.mxu0 %v7105_v45  ;;  %v3770_v11 = vsub.f32 %v7127_v32, %v7783_v26  ;;  %v3794_v1 = vsub.f32 %v7187_v5, %v7778_v59  ;;  %8089 = vst [vmem:[#allocation28_spill] sm:$0xff] %v7258_v47  ;;  %v7292_v26 = vand.u32 4294901760, %v3011_v6 }
 0x21d   :  { %3592 = vmatmul.f32.vlgmr.msra.gmra.mxu1 %v3395_v7  ;;  %3855 = vmatpush.msrb.mxu2 %v7116_v30  ;;  %v3765_v7 = vand.u32 4294901760, %v3764_v8  ;;  %v2499_v14 = vadd.f32 %v2498_v62, %v2460_v24  ;;  %v7237_v8 = vand.u32 4294901760, %v3014_v56  ;;  %v7785_v62 = vand.u32 4294901760, %v7228_v46  ;;  %v2645_v13 = vpop.f32.mrf.mxu2 }
 0x21e   :  { %3748 = vmatpush.msrb.mxu1 %v3747_v23  ;;  %3907 = vmatpush.msrb.mxu3 %v7105_v45  ;;  %v3771_v52 = vand.u32 4294901760, %v3770_v11  ;;  %v7235_v23 = vand.u32 4294901760, %v2986_v35  ;;  %v3800_v11 = vsub.f32 %v7195_v16, %v7777_v51  ;;  %v7290_v58 = vsub.f32 %v2985_v36, %v7258_v47 }
 0x21f   :  { %3713 = vmatpush.msrb.mxu0 %v7120_v19  ;;  %3858 = vmatpush.msrb.mxu2 %v7127_v32  ;;  %v2568_v24 = vadd.f32 %v2567_v9, %v2499_v14  ;;  %v7268_v14 = vsub.f32 %v3014_v56, %v7237_v8  ;;  %v3795_v9 = vand.u32 4294901760, %v3794_v1  ;;  %v7792_v56 = vand.u32 4294901760, %v7253_v40 }
 0x220   :  { %3754 = vmatpush.msrb.mxu1 %v3753_v57  ;;  %3909 = vmatpush.msrb.mxu3 %v7120_v19  ;;  %8087 = vst [vmem:[#allocation25_spill] sm:$0xff] %v7235_v23  ;;  %v7781_v57 = vand.u32 4294901760, %v7213_v39  ;;  %v2604_v25 = vpop.f32.mrf.mxu1  ;;  %v7265_v37 = vsub.f32 %v2986_v35, %v7235_v23  ;;  %v3801_v35 = vand.u32 4294901760, %v3800_v11  ;;  %v3009_v11 = vld [vmem:[#allocation8 + $0x1c8] sm:$0xff] }
 0x221   :  { %3715 = vmatpush.msrb.mxu0 %v7134_v15  ;;  %3861 = vmatpush.msrb.mxu2 %v7146_v53  ;;  %8090 = vst [vmem:[#allocation23_spill] sm:$0xff] %v7268_v14  ;;  %v2605_v1 = vadd.f32 %v2604_v25, %v2568_v24  ;;  %v3007_v24 = vld [vmem:[#allocation8 + $0x1b8] sm:$0xff] }
 0x222   :  { %3760 = vmatpush.msrb.mxu1 %v3759_v54  ;;  %3911 = vmatpush.msrb.mxu3 %v7134_v15  ;;  %v2984_v54 = vld [vmem:[#allocation8 + $0x100] sm:$0xff]  ;;  %v3806_v51 = vsub.f32 %v7213_v39, %v7781_v57  ;;  %v3812_v57 = vsub.f32 %v7228_v46, %v7785_v62  ;;  %v4087_v62 = vsub.f32 %v7245_v21, %v7790_v42 }
 0x223   :  { %3717 = vmatpush.msrb.mxu0 %v7148_v31  ;;  %3864 = vmatpush.msrb.mxu2 %v7161_v3  ;;  %v7276_v59 = vand.u32 4294901760, %v2984_v54  ;;  %v7340_v21 = vsub.f32 %v3010_v22, %v7311_v38  ;;  %v8096_v22 = vand.u32 4294901760, %v7290_v58 }
 0x224   :  { %3766 = vmatpush.msrb.mxu1 %v3765_v7  ;;  %3913 = vmatpush.msrb.mxu3 %v7148_v31  ;;  %v7255_v7 = vand.u32 4294901760, %v3013_v50  ;;  %v3807_v36 = vand.u32 4294901760, %v3806_v51  ;;  %v4088_v42 = vand.u32 4294901760, %v4087_v62  ;;  %v3006_v62 = vld [vmem:[#allocation8 + $0x1b0] sm:$0xff] }
 0x225   :  { %3719 = vmatpush.msrb.mxu0 %v7163_v17  ;;  %3867 = vmatpush.msrb.mxu2 %v7175_v10  ;;  %8091 = vst [vmem:[#allocation22_spill] sm:$0xff] %v7276_v59  ;;  %v7309_v33 = vsub.f32 %v2984_v54, %v7276_v59  ;;  %v3813_v54 = vand.u32 4294901760, %v3812_v57 }
 0x226   :  { %3772 = vmatpush.msrb.mxu1 %v3771_v52  ;;  %3915 = vmatpush.msrb.mxu3 %v7163_v17  ;;  %v7789_v52 = vand.u32 4294901760, %v7231_v2 }
 0x227   :  { %3721 = vmatpush.msrb.mxu0 %v7170_v27  ;;  %3870 = vmatpush.msrb.mxu2 %v7187_v5 }
 0x228   :  { %3778 = vmatpush.msrb.mxu1 %v3777_v43  ;;  %3917 = vmatpush.msrb.mxu3 %v7170_v27  ;;  %v7270_v43 = vand.u32 4294901760, %v3012_v41 }
 0x229   :  { %3723 = vmatpush.msrb.mxu0 %v7189_v29  ;;  %3873 = vmatpush.msrb.mxu2 %v7195_v16 }
 0x22a   :  { %3784 = vmatpush.msrb.mxu1 %v3783_v61  ;;  %3919 = vmatpush.msrb.mxu3 %v7189_v29  ;;  %v7283_v61 = vsub.f32 %v3013_v50, %v7255_v7  ;;  %v3737_v50 = vsub.f32 %v7231_v2, %v7789_v52  ;;  %v7302_v25 = vsub.f32 %v3012_v41, %v7270_v43 }
 0x22b   :  { %3725 = vmatpush.msrb.mxu0 %v7201_v55  ;;  %3876 = vmatpush.msrb.mxu2 %v7213_v39  ;;  %v3818_v41 = vsub.f32 %v7253_v40, %v7792_v56  ;;  %v2646_v52 = vadd.f32 %v2645_v13, %v2605_v1  ;;  %v8093_v56 = vand.u32 4294901760, %v7268_v14  ;;  %v8094_v13 = vand.u32 4294901760, %v7265_v37 }
 0x22c   :  { %8092 = vst [vmem:[#allocation17_spill] sm:$0xff] %v7283_v61  ;;  %3790 = vmatpush.msrb.mxu1 %v3789_v60  ;;  %3921 = vmatpush.msrb.mxu3 %v7201_v55  ;;  %v7324_v60 = vsub.f32 %v3011_v6, %v7292_v26  ;;  %v7335_v1 = vand.u32 4294901760, %v3008_v44  ;;  %v3738_v6 = vand.u32 4294901760, %v3737_v50  ;;  %v8095_v57 = vand.u32 4294901760, %v7283_v61 }
 0x22d   :  { %3727 = vmatpush.msrb.mxu0 %v7220_v18  ;;  %3879 = vmatpush.msrb.mxu2 %v7228_v46  ;;  %v4093_v51 = vsub.f32 %v7268_v14, %v8093_v56  ;;  %v2800_v56 = vpop.f32.mrf.mxu0  ;;  %v7350_v50 = vand.u32 4294901760, %v3007_v24  ;;  %v8097_v55 = vand.u32 4294901760, %v7231_v2 }
 0x22e   :  { %3796 = vmatpush.msrb.mxu1 %v3795_v9  ;;  %3923 = vmatpush.msrb.mxu3 %v7220_v18  ;;  %v7319_v9 = vand.u32 4294901760, %v3009_v11  ;;  %v2746_v18 = vpop.f32.mrf.mxu3  ;;  %v4099_v14 = vsub.f32 %v7283_v61, %v8095_v57  ;;  %v8098_v61 = vand.u32 4294901760, %v7302_v25 }
 0x22f   :  { %3729 = vmatpush.msrb.mxu0 %v7235_v23  ;;  %3882 = vmatpush.msrb.mxu2 %v7253_v40  ;;  %v4094_v57 = vand.u32 4294901760, %v4093_v51  ;;  %v3003_v51 = vld [vmem:[#allocation8 + $0x198] sm:$0xff] }
 0x230   :  { %3802 = vmatpush.msrb.mxu1 %v3801_v35  ;;  %3925 = vmatpush.msrb.mxu3 %v7235_v23  ;;  %v3824_v35 = vsub.f32 %v7265_v37, %v8094_v13  ;;  %v3819_v13 = vand.u32 4294901760, %v3818_v41  ;;  %v2747_v23 = vadd.f32 %v2746_v18, %v2646_v52  ;;  %v4105_v29 = vsub.f32 %v7302_v25, %v8098_v61 }
 0x231   :  { %3731 = vmatpush.msrb.mxu0 %v7258_v47  ;;  %3885 = vmatpush.msrb.mxu2 %v7265_v37  ;;  %v7363_v52 = vsub.f32 %v3008_v44, %v7335_v1  ;;  %v4100_v61 = vand.u32 4294901760, %v4099_v14  ;;  %v7376_v41 = vsub.f32 %v3007_v24, %v7350_v50 }
 0x232   :  { %3808 = vmatpush.msrb.mxu1 %v3807_v36  ;;  %3927 = vmatpush.msrb.mxu3 %v7258_v47  ;;  %v7348_v36 = vsub.f32 %v3009_v11, %v7319_v9  ;;  %v3830_v47 = vsub.f32 %v7290_v58, %v8096_v22  ;;  %v3825_v11 = vand.u32 4294901760, %v3824_v35  ;;  %v2801_v22 = vadd.f32 %v2800_v56, %v2747_v23 }
 0x233   :  { %3733 = vmatpush.msrb.mxu0 %v7276_v59  ;;  %3888 = vmatpush.msrb.mxu2 %v7290_v58  ;;  %v7371_v35 = vand.u32 4294901760, %v3006_v62  ;;  %v8102_v23 = vand.u32 4294901760, %v7324_v60  ;;  %v4106_v14 = vand.u32 4294901760, %v4105_v29  ;;  %v7804_v44 = vand.u32 4294901760, %v7363_v52 }
 0x234   :  { %3814 = vmatpush.msrb.mxu1 %v3813_v54  ;;  %3929 = vmatpush.msrb.mxu3 %v7276_v59  ;;  %v2839_v18 = vpop.f32.mrf.mxu1  ;;  %v3005_v54 = vld [vmem:[#allocation8 + $0x1a8] sm:$0xff]  ;;  %v8099_v59 = vand.u32 4294901760, %v7088_v12  ;;  %v3004_v12 = vld [vmem:[#allocation8 + $0x1a0] sm:$0xff]  ;;  %v8105_v29 = vand.u32 4294901760, %v7348_v36 }
 0x235   :  { %3739 = vmatmul.f32.vlgmr.msrb.gmra.mxu0 %v3738_v6  ;;  %3933 = vmatmul.f32.vlgmr.msrb.gmra.mxu3 %v8097_v55  ;;  %v8100_v6 = vand.u32 4294901760, %v7309_v33  ;;  %v4111_v56 = vsub.f32 %v7324_v60, %v8102_v23  ;;  %v2908_v24 = vpop.f32.mrf.mxu2 }
 0x236   :  { %3940 = vmatpush.msra.mxu0 %v8099_v59  ;;  %4089 = vmatpush.msra.mxu3 %v4088_v42  ;;  %v8101_v42 = vand.u32 4294901760, %v7100_v0  ;;  %v3831_v59 = vand.u32 4294901760, %v3830_v47  ;;  %v8103_v0 = vand.u32 4294901760, %v7110_v49  ;;  %v8104_v47 = vand.u32 4294901760, %v7340_v21  ;;  %v3001_v49 = vld [vmem:[#allocation8 + $0x188] sm:$0xff] }
 0x237   :  { %v3836_v55 = vsub.f32 %v7309_v33, %v8100_v6  ;;  %3820 = vmatpush.msrb.mxu1 %v3819_v13  ;;  %3891 = vmatpush.msrb.mxu2 %v7309_v33  ;;  %v2840_v13 = vadd.f32 %v2839_v18, %v2801_v22  ;;  %v7384_v6 = vand.u32 4294901760, %v3005_v54  ;;  %v7394_v18 = vsub.f32 %v3006_v62, %v7371_v35 }
 0x238   :  { %3894 = vmatmul.f32.vlgmr.msrb.gmra.mxu2 %v7231_v2  ;;  %3944 = vmatpush.msra.mxu0 %v8101_v42  ;;  %v4117_v42 = vsub.f32 %v7340_v21, %v8104_v47  ;;  %v7396_v22 = vand.u32 4294901760, %v3004_v12  ;;  %v4112_v23 = vand.u32 4294901760, %v4111_v56  ;;  %v7408_v47 = vand.u32 4294901760, %v3003_v51 }
 0x239   :  { %4044 = vmatpush.msra.mxu2 %v7216_v4  ;;  %4095 = vmatpush.msra.mxu3 %v4094_v57  ;;  %v3837_v2 = vand.u32 4294901760, %v3836_v55  ;;  %v4123_v57 = vsub.f32 %v7348_v36, %v8105_v29  ;;  %v8106_v55 = vand.u32 4294901760, %v7116_v30  ;;  %v7406_v62 = vsub.f32 %v3005_v54, %v7384_v6 }
 0x23a   :  { %3826 = vmatpush.msrb.mxu1 %v3825_v11  ;;  %3948 = vmatpush.msra.mxu0 %v8103_v0  ;;  %v3002_v11 = vld [vmem:[#allocation8 + $0x190] sm:$0xff]  ;;  %v2909_v0 = vadd.f32 %v2908_v24, %v2840_v13  ;;  %v4129_v29 = vsub.f32 %v7363_v52, %v7804_v44  ;;  %v8107_v30 = vand.u32 4294901760, %v7127_v32  ;;  %v4140_v56 = vand.u32 4294901760, %v7394_v18 }
 0x23b   :  { %4046 = vmatpush.msra.mxu2 %v7237_v8  ;;  %4101 = vmatpush.msra.mxu3 %v4100_v61  ;;  %v2945_v61 = vpop.f32.mrf.mxu3  ;;  %v7418_v54 = vsub.f32 %v3004_v12, %v7396_v22  ;;  %v7420_v13 = vand.u32 4294901760, %v3002_v11  ;;  %v8108_v24 = vand.u32 4294901760, %v7376_v41  ;;  %v7430_v12 = vsub.f32 %v3003_v51, %v7408_v47 }
 0x23c   :  { %3832 = vmatpush.msrb.mxu1 %v3831_v59  ;;  %3952 = vmatpush.msra.mxu0 %v8106_v55  ;;  %v4118_v59 = vand.u32 4294901760, %v4117_v42  ;;  %v3000_v55 = vld [vmem:[#allocation8 + $0x180] sm:$0xff]  ;;  %v2946_v32 = vadd.f32 %v2945_v61, %v2909_v0  ;;  %v4146_v42 = vand.u32 4294901760, %v7406_v62  ;;  %v8109_v44 = vand.u32 4294901760, %v7146_v53 }
 0x23d   :  { %4048 = vmatpush.msra.mxu2 %v7255_v7  ;;  %4107 = vmatpush.msra.mxu3 %v4106_v14  ;;  %v4124_v14 = vand.u32 4294901760, %v4123_v57  ;;  %v4130_v57 = vand.u32 4294901760, %v4129_v29  ;;  %v7443_v51 = vsub.f32 %v3002_v11, %v7420_v13  ;;  %v7445_v0 = vand.u32 4294901760, %v3000_v55 }
 0x23e   :  { %3838 = vmatpush.msrb.mxu1 %v3837_v2  ;;  %3956 = vmatpush.msra.mxu0 %v8107_v30  ;;  %v4135_v2 = vsub.f32 %v7376_v41, %v8108_v24  ;;  %v7432_v30 = vand.u32 4294901760, %v3001_v49  ;;  %v8110_v53 = vand.u32 4294901760, %v7161_v3  ;;  %v4147_v61 = vsub.f32 %v7406_v62, %v4146_v42 }
 0x23f   :  { %3840 = vmatmul.f32.vlgmr.msrb.gmra.mxu1 %v7204_v34  ;;  %4050 = vmatpush.msra.mxu2 %v7270_v43  ;;  %v4158_v29 = vand.u32 4294901760, %v7430_v12  ;;  %v7467_v24 = vsub.f32 %v3000_v55, %v7445_v0  ;;  %v8113_v55 = vand.u32 4294901760, %v7195_v16 }
 0x240   :  { %4007 = vmatpush.msra.mxu1 %v7073_v63  ;;  %4113 = vmatpush.msra.mxu3 %v4112_v23  ;;  %v4141_v63 = vsub.f32 %v7394_v18, %v4140_v56  ;;  %v4152_v23 = vand.u32 4294901760, %v7418_v54  ;;  %v7456_v11 = vsub.f32 %v3001_v49, %v7432_v30  ;;  %v8112_v49 = vand.u32 4294901760, %v7187_v5 }
 0x241   :  { %3960 = vmatpush.msra.mxu0 %v8109_v44  ;;  %4052 = vmatpush.msra.mxu2 %v7292_v26  ;;  %v4136_v44 = vand.u32 4294901760, %v4135_v2  ;;  %v4159_v2 = vsub.f32 %v7430_v12, %v4158_v29 }
 0x242   :  { %4009 = vmatpush.msra.mxu1 %v7080_v48  ;;  %4119 = vmatpush.msra.mxu3 %v4118_v59  ;;  %v2951_v48 = vmax.f32 %v2946_v32, 0.0  ;;  %v8111_v59 = vand.u32 4294901760, %v7175_v10  ;;  %v4153_v3 = vsub.f32 %v7418_v54, %v4152_v23  ;;  %v4170_v32 = vand.u32 4294901760, %v7456_v11 }
 0x243   :  { %3964 = vmatpush.msra.mxu0 %v8110_v53  ;;  %4054 = vmatpush.msra.mxu2 %v7311_v38 }
 0x244   :  { %4011 = vmatpush.msra.mxu1 %v7090_v20  ;;  %4125 = vmatpush.msra.mxu3 %v4124_v14  ;;  %v4142_v20 = vand.u32 4294901760, %v4141_v63  ;;  %v4164_v14 = vand.u32 4294901760, %v7443_v51  ;;  %v7472_v10 = vand.u32 4294901760, %v2951_v48  ;;  %v4154_v5 = vand.u32 4294901760, %v4153_v3 }
 0x245   :  { %3968 = vmatpush.msra.mxu0 %v8111_v59  ;;  %4056 = vmatpush.msra.mxu2 %v7319_v9  ;;  %v8114_v63 = vand.u32 4294901760, %v7213_v39  ;;  %v4171_v53 = vsub.f32 %v7456_v11, %v4170_v32  ;;  %v8117_v59 = vand.u32 4294901760, %v7265_v37  ;;  %v8120_v37 = vand.u32 4294901760, %v7309_v33  ;;  %v8124_v33 = vld [vmem:[#allocation23_spill] sm:$0xff] }
 0x246   :  { %4013 = vmatpush.msra.mxu1 %v7095_v28  ;;  %4131 = vmatpush.msra.mxu3 %v4130_v57  ;;  %v4148_v28 = vand.u32 4294901760, %v4147_v61  ;;  %v4176_v57 = vand.u32 4294901760, %v7467_v24  ;;  %v7491_v16 = vsub.f32 %v2951_v48, %v7472_v10 }
 0x247   :  { %3972 = vmatpush.msra.mxu0 %v8112_v49  ;;  %4058 = vmatpush.msra.mxu2 %v7335_v1  ;;  %v8123_v49 = vld [vmem:[#allocation24_spill] sm:$0xff] }
 0x248   :  { %4015 = vmatpush.msra.mxu1 %v7105_v45  ;;  %4137 = vmatpush.msra.mxu3 %v4136_v44  ;;  %v4165_v45 = vsub.f32 %v7443_v51, %v4164_v14  ;;  %v8115_v44 = vand.u32 4294901760, %v7228_v46  ;;  %v4177_v48 = vsub.f32 %v7467_v24, %v4176_v57  ;;  %v4077_v61 = vand.u32 4294901760, %v7491_v16 }
 0x249   :  { %3976 = vmatpush.msra.mxu0 %v8113_v55  ;;  %4060 = vmatpush.msra.mxu2 %v7350_v50  ;;  %v4172_v46 = vand.u32 4294901760, %v4171_v53  ;;  %v8127_v55 = vld [vmem:[#allocation17_spill] sm:$0xff]  ;;  %v8132_v53 = vand.u32 4294901760, %v7302_v25 }
 0x24a   :  { %4017 = vmatpush.msra.mxu1 %v7120_v19  ;;  %4143 = vmatpush.msra.mxu3 %v4142_v20  ;;  %v4160_v19 = vand.u32 4294901760, %v4159_v2  ;;  %v4166_v39 = vand.u32 4294901760, %v4165_v45  ;;  %v8119_v20 = vld [vmem:[#allocation21_spill] sm:$0xff]  ;;  %v8129_v45 = vld [vmem:[#allocation28_spill] sm:$0xff] }
 0x24b   :  { %3980 = vmatpush.msra.mxu0 %v8114_v63  ;;  %4062 = vmatpush.msra.mxu2 %v7371_v35  ;;  %v8126_v2 = vld [vmem:[#allocation25_spill] sm:$0xff]  ;;  %v8130_v63 = vand.u32 4294901760, %v8127_v55 }
 0x24c   :  { %4019 = vmatpush.msra.mxu1 %v7134_v15  ;;  %4149 = vmatpush.msra.mxu3 %v4148_v28  ;;  %v8116_v15 = vand.u32 4294901760, %v7253_v40  ;;  %v8118_v40 = vand.u32 4294901760, %v7290_v58  ;;  %v8122_v58 = vld [vmem:[#allocation15_spill] sm:$0xff] }
 0x24d   :  { %3984 = vmatpush.msra.mxu0 %v8115_v44  ;;  %4064 = vmatpush.msra.mxu2 %v7384_v6  ;;  %v8125_v28 = vand.u32 4294901760, %v8122_v58  ;;  %v8133_v44 = vand.u32 4294901760, %v7324_v60 }
 0x24e   :  { %4021 = vmatpush.msra.mxu1 %v7148_v31  ;;  %4155 = vmatpush.msra.mxu3 %v4154_v5  ;;  %v4178_v31 = vand.u32 4294901760, %v4177_v48  ;;  %v8128_v5 = vand.u32 4294901760, %v8124_v33 }
 0x24f   :  { %3988 = vmatpush.msra.mxu0 %v8116_v15  ;;  %4066 = vmatpush.msra.mxu2 %v7396_v22 }
 0x250   :  { %4023 = vmatpush.msra.mxu1 %v7163_v17  ;;  %4161 = vmatpush.msra.mxu3 %v4160_v19  ;;  %v4078_v17 = vsub.f32 %v7491_v16, %v4077_v61  ;;  %v8131_v19 = vld [vmem:[#allocation22_spill] sm:$0xff] }
 0x251   :  { %3992 = vmatpush.msra.mxu0 %v8117_v59  ;;  %4068 = vmatpush.msra.mxu2 %v7408_v47 }
 0x252   :  { %4025 = vmatpush.msra.mxu1 %v7170_v27  ;;  %4167 = vmatpush.msra.mxu3 %v4166_v39  ;;  %v8121_v27 = vld [vmem:[#allocation19_spill] sm:$0xff]  ;;  %v4079_v3 = vand.u32 4294901760, %v4078_v17 }
 0x253   :  { %3996 = vmatpush.msra.mxu0 %v8118_v40  ;;  %4070 = vmatpush.msra.mxu2 %v7420_v13 }
 0x254   :  { %4027 = vmatpush.msra.mxu1 %v8119_v20  ;;  %4173 = vmatpush.msra.mxu3 %v4172_v46 }
 0x255   :  { %4000 = vmatpush.msra.mxu0 %v8120_v37  ;;  %4072 = vmatpush.msra.mxu2 %v7432_v30 }
 0x256   :  { %4029 = vmatpush.msra.mxu1 %v8121_v27  ;;  %4179 = vmatpush.msra.mxu3 %v4178_v31 }
 0x257   :  { %4002 = vmatmul.f32.vlgmr.msra.gmra.mxu0 %v7204_v34  ;;  %4181 = vmatmul.f32.vlgmr.msra.gmra.mxu3 %v7472_v10 }
 0x258   :  { %4187 = vmatpush.msrb.mxu0 %v8122_v58  ;;  %4348 = vmatpush.msrb.mxu3 %v7216_v4 }
 0x259   :  { %4031 = vmatpush.msra.mxu1 %v8123_v49  ;;  %4074 = vmatpush.msra.mxu2 %v7445_v0 }
 0x25a   :  { %4080 = vmatmul.f32.vlgmr.msra.gmra.mxu2 %v4079_v3  ;;  %4190 = vmatpush.msrb.mxu0 %v8124_v33 }
 0x25b   :  { %4281 = vmatpush.msrb.mxu2 %v8125_v28  ;;  %4350 = vmatpush.msrb.mxu3 %v7237_v8 }
 0x25c   :  { %4033 = vmatpush.msra.mxu1 %v8126_v2  ;;  %4193 = vmatpush.msrb.mxu0 %v8127_v55 }
 0x25d   :  { %4285 = vmatpush.msrb.mxu2 %v8128_v5  ;;  %4352 = vmatpush.msrb.mxu3 %v7255_v7 }
 0x25e   :  { %4035 = vmatpush.msra.mxu1 %v8129_v45  ;;  %4196 = vmatpush.msrb.mxu0 %v7302_v25  ;;  %v3213_v25 = vpop.f32.mrf.mxu2 }
 0x25f   :  { %4289 = vmatpush.msrb.mxu2 %v8130_v63  ;;  %4354 = vmatpush.msrb.mxu3 %v7270_v43 }
 0x260   :  { %4037 = vmatpush.msra.mxu1 %v8131_v19  ;;  %4199 = vmatpush.msrb.mxu0 %v7324_v60 }
 0x261   :  { %4039 = vmatmul.f32.vlgmr.msra.gmra.mxu1 %v7204_v34  ;;  %4293 = vmatpush.msrb.mxu2 %v8132_v53  ;;  %v8134_v34 = vand.u32 4294901760, %v7340_v21 }
 0x262   :  { %4240 = vmatpush.msrb.mxu1 %v7216_v4  ;;  %4356 = vmatpush.msrb.mxu3 %v7292_v26  ;;  %v8135_v4 = vand.u32 4294901760, %v7348_v36 }
 0x263   :  { %4202 = vmatpush.msrb.mxu0 %v7340_v21  ;;  %4297 = vmatpush.msrb.mxu2 %v8133_v44  ;;  %v8137_v21 = vand.u32 4294901760, %v7376_v41 }
 0x264   :  { %4242 = vmatpush.msrb.mxu1 %v7237_v8  ;;  %4358 = vmatpush.msrb.mxu3 %v7311_v38  ;;  %v8136_v8 = vand.u32 4294901760, %v7363_v52 }
 0x265   :  { %4205 = vmatpush.msrb.mxu0 %v7348_v36  ;;  %4301 = vmatpush.msrb.mxu2 %v8134_v34 }
 0x266   :  { %4244 = vmatpush.msrb.mxu1 %v7255_v7  ;;  %4360 = vmatpush.msrb.mxu3 %v7319_v9  ;;  %v3159_v7 = vpop.f32.mrf.mxu1 }
 0x267   :  { %4208 = vmatpush.msrb.mxu0 %v7363_v52  ;;  %4305 = vmatpush.msrb.mxu2 %v8135_v4 }
 0x268   :  { %4246 = vmatpush.msrb.mxu1 %v7270_v43  ;;  %4362 = vmatpush.msrb.mxu3 %v7335_v1 }
 0x269   :  { %4211 = vmatpush.msrb.mxu0 %v7376_v41  ;;  %4309 = vmatpush.msrb.mxu2 %v8136_v8 }
 0x26a   :  { %4248 = vmatpush.msrb.mxu1 %v7292_v26  ;;  %4364 = vmatpush.msrb.mxu3 %v7350_v50  ;;  %v3058_v26 = vpop.f32.mrf.mxu0 }
 0x26b   :  { %4214 = vmatpush.msrb.mxu0 %v7394_v18  ;;  %4313 = vmatpush.msrb.mxu2 %v8137_v21 }
 0x26c   :  { %4250 = vmatpush.msrb.mxu1 %v7311_v38  ;;  %4366 = vmatpush.msrb.mxu3 %v7371_v35  ;;  %v4413_v38 = vld [vmem:[%s7627_s4] ss:$0 sm:$0xff]  ;;  %s4551_s4 = smov [#allocation10]  }
 0x26d   :  { %4217 = vmatpush.msrb.mxu0 %v7406_v62  ;;  %4317 = vmatpush.msrb.mxu2 %v4140_v56  ;;  %v3059_v43 = vadd.f32 %v4413_v38, %v3058_v26  ;;  %s4390_s15 = sshll.u32 %s4551_s4, 4  ;;  %s4391_s15 = int_to_ptr.vmem [resolvable:$true] %s4390_s15 }
 0x26e   :  { %4252 = vmatpush.msrb.mxu1 %v7319_v9  ;;  %4368 = vmatpush.msrb.mxu3 %v7384_v6 }
 0x26f   :  { %4220 = vmatpush.msrb.mxu0 %v7418_v54  ;;  %4321 = vmatpush.msrb.mxu2 %v4146_v42  ;;  %v3160_v60 = vadd.f32 %v3159_v7, %v3059_v43 }
 0x270   :  { %4254 = vmatpush.msrb.mxu1 %v7335_v1  ;;  %4370 = vmatpush.msrb.mxu3 %v7396_v22  ;;  %v3252_v1 = vpop.f32.mrf.mxu3 }
 0x271   :  { %4223 = vmatpush.msrb.mxu0 %v7430_v12  ;;  %4325 = vmatpush.msrb.mxu2 %v4152_v23  ;;  %v3214_v9 = vadd.f32 %v3213_v25, %v3160_v60 }
 0x272   :  { %4256 = vmatpush.msrb.mxu1 %v7350_v50  ;;  %4372 = vmatpush.msrb.mxu3 %v7408_v47  ;;  %v3321_v36 = vpop.f32.mrf.mxu0 }
 0x273   :  { %4226 = vmatpush.msrb.mxu0 %v7443_v51  ;;  %4329 = vmatpush.msrb.mxu2 %v4158_v29  ;;  %v3253_v50 = vadd.f32 %v3252_v1, %v3214_v9 }
 0x274   :  { %4258 = vmatpush.msrb.mxu1 %v7371_v35  ;;  %4374 = vmatpush.msrb.mxu3 %v7420_v13 }
 0x275   :  { %4229 = vmatpush.msrb.mxu0 %v7456_v11  ;;  %4333 = vmatpush.msrb.mxu2 %v4164_v14  ;;  %v3322_v52 = vadd.f32 %v3321_v36, %v3253_v50 }
 0x276   :  { %4260 = vmatpush.msrb.mxu1 %v7384_v6  ;;  %4376 = vmatpush.msrb.mxu3 %v7432_v30 }
 0x277   :  { %4232 = vmatpush.msrb.mxu0 %v7467_v24  ;;  %4337 = vmatpush.msrb.mxu2 %v4170_v32  ;;  %v3399_v6 = vpop.f32.mrf.mxu2 }
 0x278   :  { %4262 = vmatpush.msrb.mxu1 %v7396_v22  ;;  %4378 = vmatpush.msrb.mxu3 %v7445_v0  ;;  %v3358_v41 = vpop.f32.mrf.mxu1  ;;  %v3500_v22 = vpop.f32.mrf.mxu3 }
 0x279   :  { %4235 = vmatmul.f32.vlgmr.msrb.gmra.mxu0 %v7491_v16  ;;  %4380 = vmatmul.f32.vlgmr.msrb.gmra.mxu3 %v7472_v10  ;;  %v3359_v35 = vadd.f32 %v3358_v41, %v3322_v52 }
 0x27a   :  { %4264 = vmatpush.msrb.mxu1 %v7408_v47  ;;  %4341 = vmatpush.msrb.mxu2 %v4176_v57 }
 0x27b   :  { %4343 = vmatmul.f32.vlgmr.msrb.gmra.mxu2 %v7472_v10  ;;  %v3400_v18 = vadd.f32 %v3399_v6, %v3359_v35 }
 0x27c   :  { %4266 = vmatpush.msrb.mxu1 %v7420_v13 }
 0x27d   :  { %v3501_v47 = vadd.f32 %v3500_v22, %v3400_v18 }
 0x27e   :  { %4268 = vmatpush.msrb.mxu1 %v7432_v30 }
 0x280   :  { %4270 = vmatpush.msrb.mxu1 %v7445_v0 }
 0x281   :  { %4274 = vmatmul.f32.vlgmr.msrb.gmra.mxu1 %v4077_v61 }
 0x290   :  { %v3554_v62 = vpop.f32.mrf.mxu0 }
 0x291   :  { %v3555_v54 = vadd.f32 %v3554_v62, %v3501_v47 }
 0x296   :  { %v3699_v30 = vpop.f32.mrf.mxu3 }
 0x299   :  { %v3662_v42 = vpop.f32.mrf.mxu2 }
 0x29a   :  { %v3593_v56 = vpop.f32.mrf.mxu1 }
 0x29b   :  { %v3594_v13 = vadd.f32 %v3593_v56, %v3555_v54 }
 0x29d   :  { %v3663_v12 = vadd.f32 %v3662_v42, %v3594_v13 }
 0x29f   :  { %v3700_v51 = vadd.f32 %v3699_v30, %v3663_v12 }
 0x2b2   :  { %v3740_v23 = vpop.f32.mrf.mxu0 }
 0x2b3   :  { %v3741_v29 = vadd.f32 %v3740_v23, %v3700_v51 }
 0x2b8   :  { %v3934_v10 = vpop.f32.mrf.mxu3 }
 0x2bb   :  { %v3895_v14 = vpop.f32.mrf.mxu2 }
 0x2bc   :  { %v3841_v0 = vpop.f32.mrf.mxu1 }
 0x2bd   :  { %v3842_v11 = vadd.f32 %v3841_v0, %v3741_v29 }
 0x2bf   :  { %v3896_v24 = vadd.f32 %v3895_v14, %v3842_v11 }
 0x2c1   :  { %v3935_v57 = vadd.f32 %v3934_v10, %v3896_v24 }
 0x2d4   :  { %v4003_v32 = vpop.f32.mrf.mxu0 }
 0x2d5   :  { %v4004_v39 = vadd.f32 %v4003_v32, %v3935_v57 }
 0x2da   :  { %v4182_v46 = vpop.f32.mrf.mxu3 }
 0x2dd   :  { %v4081_v15 = vpop.f32.mrf.mxu2 }
 0x2de   :  { %v4040_v16 = vpop.f32.mrf.mxu1 }
 0x2df   :  { %v4041_v48 = vadd.f32 %v4040_v16, %v4004_v39 }
 0x2e1   :  { %v4082_v61 = vadd.f32 %v4081_v15, %v4041_v48 }
 0x2e3   :  { %v4183_v31 = vadd.f32 %v4182_v46, %v4082_v61 }
 0x2f6   :  { %v4236_v59 = vpop.f32.mrf.mxu0 }
 0x2f7   :  { %v4237_v40 = vadd.f32 %v4236_v59, %v4183_v31 }
 0x2fc   :  { %v4381_v58 = vpop.f32.mrf.mxu3 }
 0x2fe   :  { %v4275_v17 = vpop.f32.mrf.mxu1  ;;  %v4344_v37 = vpop.f32.mrf.mxu2 }
 0x2ff   :  { %v4276_v20 = vadd.f32 %v4275_v17, %v4237_v40 }
 0x301   :  { %v4345_v27 = vadd.f32 %v4344_v37, %v4276_v20 }
 0x303   :  { %v4382_v3 = vadd.f32 %v4381_v58, %v4345_v27 }
 0x305   :  { %4384 = vst [vmem:[#allocation10] sm:$0xff] %v4382_v3 }
 0x306   :  { %4395 = dma.vmem_to_hbm [thread:$0]  %s4391_s15, 128, %s4393_s18, [#allocation4]  }
 0x307   :  { %4541 = dma.done.wait [#allocation4], 128  }
 0x308   :  { %4542 = vsyncadd [#allocation4], 4294967168 }
 0x309   :  { %4400 = vsyncpa [#allocation3], 1 }
 0x30a   :  { %4401 = vsyncpa [#allocation6], 1 }
 0x30b   :  { %4402 = vsyncpa [#allocation9], 1 }
 0x30c   :  { %4403 = vsyncpa [#allocation4], 1 }

</bundles_post_ra>
